<compile_context>
chip_gen: v7x
topology: tpu7x:2x2x1
jax: 0.10.0
libtpu: 0.0.40
codegen_flags: <defaults>
</compile_context>

<pallas_src>
import functools

import jax
import jax.numpy as jnp
from jax.experimental import pallas as pl
from jax.experimental.pallas import tpu as pltpu


def _rup(v, m):
    return ((v + m - 1) // m) * m


def _tpu_kind():
    try:
        return jax.devices()[0].device_kind.lower()
    except Exception:
        return ""


def _num_tensorcores(kind):
    # v5e / v6e: 1 TensorCore per chip; v7x (and v4/v5p megacore): 2.
    if "v5 lite" in kind or "v5e" in kind or "v6" in kind:
        return 1
    return 2


def _vmem_cap_bytes(kind):
    if "v5 lite" in kind or "v5e" in kind or "v6" in kind:
        return 100 * 1024 * 1024       # 128 MiB physical VMEM
    return 48 * 1024 * 1024            # v7x: 64 MiB physical -> leave headroom


def asmk_kernel(x_ref, c_ref, hcsq_ref, w_ref, out_ref, *, n_actual):
    tb, n_pad, d_pad = x_ref.shape
    k_pad = c_ref.shape[0]
    rows = tb * n_pad

    x = x_ref[...].reshape(rows, d_pad)     # collapse (TB, N) -> tile-aligned rows
    c = c_ref[...]                          # (Kpad, Dpad)
    half_c_sq = hcsq_ref[...]               # (1, Kpad) f32; padded cols = +1e30
    w = w_ref[...]                          # (1, Kpad) f32; padded cols = 0

    # score = x.c^T - 0.5*||c||^2  =>  d2 = ||x||^2 - 2*score, so
    # argmin(d2) == argmax(score); only the per-row max becomes a distance.
    dots = jax.lax.dot_general(
        x, c, (((1,), (1,)), ((), ())),
        preferred_element_type=jnp.float32)                   # (rows, Kpad) MXU
    score = dots - half_c_sq                                   # (rows, Kpad)
    max_score = jnp.max(score, axis=1, keepdims=True)          # (rows, 1)

    x32 = x.astype(jnp.float32)
    x_sq = jnp.sum(x32 * x32, axis=1, keepdims=True)           # (rows, 1)
    min_d2 = x_sq - 2.0 * max_score                            # (rows, 1)
    min_d = jnp.sqrt(jnp.maximum(min_d2, 0.0)).reshape(tb, n_pad, 1)

    # Adaptive per-batch threshold: mean + unbiased std over the N real rows
    # (padded rows excluded).  Reciprocal constants are trace-time floats.
    inv_n = 1.0 / n_actual
    # TODO(synk): N == 1 gives NaN in the reference too (ddof=1); guarded div.
    inv_nm1 = 1.0 / max(n_actual - 1, 1)
    row_valid = (jax.lax.broadcasted_iota(jnp.int32, (n_pad, 1), 0)
                 < n_actual)                                   # (Npad, 1)
    md = jnp.where(row_valid, min_d, 0.0)                      # (TB, Npad, 1)
    mean = jnp.sum(md, axis=1, keepdims=True) * inv_n          # (TB, 1, 1)
    diff = jnp.where(row_valid, min_d - mean, 0.0)
    var = jnp.sum(diff * diff, axis=1, keepdims=True) * inv_nm1
    thr = mean + jnp.sqrt(var)                                 # (TB, 1, 1)
    mask = jnp.logical_and(min_d < thr, row_valid)             # (TB, Npad, 1)

    # Fused selection: row n contributes to cluster k iff its score equals the
    # row max and it passes the threshold.  Padded clusters (score = -1e30)
    # never win; padded rows are masked out by `mask`.
    sel = jnp.logical_and(
        score.reshape(tb, n_pad, k_pad) >= max_score.reshape(tb, n_pad, 1),
        mask)
    counts = jnp.sum(jnp.where(sel, 1.0, 0.0), axis=1)         # (TB, Kpad)
    asmk = counts * w                                          # (TB, Kpad)

    # L2 normalize (== F.normalize(p=2, eps=1e-12)); rsqrt uses the EUP slot.
    nrm2 = jnp.sum(asmk * asmk, axis=1, keepdims=True)         # (TB, 1)
    out_ref[...] = asmk * jax.lax.rsqrt(jnp.maximum(nrm2, 1e-24))


def prepare_asmk_params(centroids, weights, *, compute_dtype=None):
    """Pad / precompute the parameter operands once; reuse across calls."""
    K, D = centroids.shape
    k_pad = max(_rup(K, 128), 128)
    d_pad = max(_rup(D, 128), 128)
    cdt = compute_dtype if compute_dtype is not None else centroids.dtype
    cp = jnp.zeros((k_pad, d_pad), dtype=cdt).at[:K, :D].set(
        centroids.astype(cdt))
    # Pre-halved centroid norms; padded clusters get +huge so they never win.
    half_c_sq = jnp.full((1, k_pad), 1e30, dtype=jnp.float32).at[0, :K].set(
        0.5 * jnp.sum(centroids.astype(jnp.float32) ** 2, axis=1))
    wp = jnp.zeros((1, k_pad), dtype=jnp.float32).at[0, :K].set(
        weights.astype(jnp.float32))
    return cp, half_c_sq, wp, K, D


def asmk_pooling(x, centroids=None, weights=None, *, tb=None, params=None):
    B, N, D = x.shape
    if params is None:
        params = prepare_asmk_params(centroids, weights)
    cp, half_c_sq, wp, K, Dc = params
    assert Dc == D

    k_pad, d_pad = cp.shape
    n_pad = max(_rup(N, 8), 8)

    kind = _tpu_kind()
    vmem_cap = _vmem_cap_bytes(kind)

    # Batch tile: always a multiple of 8 (full-sublane output tile).  On
    # single-TC chips (v5e/v6e) cover all batches in one grid step (extra steps
    # are pure per-step overhead); on 2-TC chips keep 8-row blocks so the
    # "parallel" batch axis can shard across cores once B > 8.
    if tb is None:
        one_block = _rup(B, 8)
        x_tile_bytes = 2 * one_block * n_pad * d_pad * jnp.dtype(x.dtype).itemsize
        tb = one_block if (_num_tensorcores(kind) == 1
                           and x_tile_bytes < vmem_cap // 4) else 8
    tb = min(max(8, _rup(tb, 8)), _rup(B, 8))
    b_pad = _rup(B, tb)
    n_blocks = b_pad // tb

    # Cast x to the matmul dtype (f32 by default; pass compute_dtype=bf16 to
    # prepare_asmk_params on v6e/v7x to halve x DMA bytes / double MXU rate).
    if x.dtype != cp.dtype:
        x = x.astype(cp.dtype)

    # Pad x only if its shape is not already block-aligned (no extra full HBM
    # copy of the dominant input when B/N/D are aligned).
    if (B, N, D) != (b_pad, n_pad, d_pad):
        x = jnp.pad(x, ((0, b_pad - B), (0, n_pad - N), (0, d_pad - D)))

    itemsize = jnp.dtype(x.dtype).itemsize
    rows = tb * n_pad
    vmem_est = (2 * (rows * d_pad * itemsize          # x block (double-buffered)
                     + k_pad * d_pad * itemsize       # centroids
                     + 2 * k_pad * 4                  # half_c_sq + weights
                     + tb * k_pad * 4)                # out block
                + 5 * rows * k_pad * 4                # (rows, K) f32 planes
                + 4 * rows * 4)                       # (rows, 1) columns
    vmem_limit = int(min(max(vmem_est, 32 * 1024 * 1024), vmem_cap))

    out = pl.pallas_call(
        functools.partial(asmk_kernel, n_actual=N),
        out_shape=jax.ShapeDtypeStruct((b_pad, k_pad), jnp.float32),
        grid=(n_blocks,),
        in_specs=[
            pl.BlockSpec((tb, n_pad, d_pad), lambda b: (b, 0, 0)),
            pl.BlockSpec((k_pad, d_pad), lambda b: (0, 0)),
            pl.BlockSpec((1, k_pad), lambda b: (0, 0)),
            pl.BlockSpec((1, k_pad), lambda b: (0, 0)),
        ],
        out_specs=pl.BlockSpec((tb, k_pad), lambda b: (b, 0)),
        compiler_params=pltpu.CompilerParams(
            dimension_semantics=("parallel",),
            vmem_limit_bytes=vmem_limit),
    )(x, cp, half_c_sq, wp)
    return out[:B, :K]


def asmk_reference(x, centroids, weights):
    # Pure-JAX reference mirroring the PyTorch forward.
    K = centroids.shape[0]
    diff = x[:, :, None, :] - centroids[None, None, :, :]
    dist = jnp.sqrt(jnp.sum(diff * diff, axis=-1))                 # (B, N, K)
    nearest = jnp.argmin(dist, axis=2)                             # (B, N)
    min_d = jnp.min(dist, axis=2)                                  # (B, N)
    mean = jnp.mean(min_d, axis=1, keepdims=True)
    std = jnp.std(min_d, axis=1, keepdims=True, ddof=1)
    mask = min_d < (mean + std)                                    # (B, N)
    onehot = jax.nn.one_hot(nearest, K, dtype=jnp.float32)         # (B, N, K)
    counts = jnp.sum(onehot * mask[..., None].astype(jnp.float32), axis=1)
    asmk = counts * weights[None, :]
    nrm = jnp.sqrt(jnp.sum(asmk * asmk, axis=1, keepdims=True))
    return asmk / jnp.maximum(nrm, 1e-12)


if __name__ == "__main__":
    key = jax.random.PRNGKey(0)
    kx, kc = jax.random.split(key)

    # Module defaults: num_clusters=64, dim=128; small batch / descriptor count.
    B, N, D, K = 4, 64, 128, 64

    x = jax.random.normal(kx, (B, N, D), dtype=jnp.float32)
    # Deterministic parameter init matching the module's __init__:
    # centroids ~ U[0,1), weights = ones.
    centroids = jax.random.uniform(kc, (K, D), dtype=jnp.float32)
    weights = jnp.ones((K,), dtype=jnp.float32)

    params = prepare_asmk_params(centroids, weights)   # hoisted out of the call
    out = asmk_pooling(x, params=params)
    jax.block_until_ready(out)

    ref = asmk_reference(x, centroids, weights)
    assert out.shape == (B, K)
    assert jnp.allclose(out, ref, atol=1e-4, rtol=1e-4), (out, ref)

    print("KERNEL_OK")
</pallas_src>

<mosaic_0001>
module attributes {stable_mosaic.version = 11 : i64} {
  func.func @asmk_kernel(%arg0: i32, %arg1: memref<8x64x128xf32, #tpu.memory_space<vmem>>, %arg2: memref<128x128xf32, #tpu.memory_space<vmem>>, %arg3: memref<1x128xf32, #tpu.memory_space<vmem>>, %arg4: memref<1x128xf32, #tpu.memory_space<vmem>>, %arg5: memref<8x128xf32, #tpu.memory_space<vmem>>) attributes {dimension_semantics = [#tpu.dimension_semantics<parallel>], iteration_bounds = array<i64: 1>, scalar_prefetch = 0 : i64, scratch_operands = 0 : i64, tpu.core_type = #tpu.core_type<tc>, window_params = [{transform_indices = @transform_0, window_bounds = array<i64: 8, 64, 128>}, {pipeline_mode = #tpu.pipeline_mode<synchronous>, transform_indices = @transform_1, window_bounds = array<i64: 128, 128>}, {pipeline_mode = #tpu.pipeline_mode<synchronous>, transform_indices = @transform_2, window_bounds = array<i64: 1, 128>}, {pipeline_mode = #tpu.pipeline_mode<synchronous>, transform_indices = @transform_3, window_bounds = array<i64: 1, 128>}, {transform_indices = @transform_4, window_bounds = array<i64: 8, 128>}]} {
    %c0 = arith.constant 0 : index
    %c0_0 = arith.constant 0 : index
    %c0_1 = arith.constant 0 : index
    %0 = vector.load %arg1[%c0, %c0_0, %c0_1] : memref<8x64x128xf32, #tpu.memory_space<vmem>>, vector<8x64x128xf32>
    %1 = vector.shape_cast %0 : vector<8x64x128xf32> to vector<512x128xf32>
    %c0_2 = arith.constant 0 : index
    %c0_3 = arith.constant 0 : index
    %2 = vector.load %arg2[%c0_2, %c0_3] : memref<128x128xf32, #tpu.memory_space<vmem>>, vector<128x128xf32>
    %c0_4 = arith.constant 0 : index
    %c0_5 = arith.constant 0 : index
    %3 = vector.load %arg3[%c0_4, %c0_5] : memref<1x128xf32, #tpu.memory_space<vmem>>, vector<1x128xf32>
    %c0_6 = arith.constant 0 : index
    %c0_7 = arith.constant 0 : index
    %4 = vector.load %arg4[%c0_6, %c0_7] : memref<1x128xf32, #tpu.memory_space<vmem>>, vector<1x128xf32>
    %cst = arith.constant dense<0.000000e+00> : vector<512x128xf32>
    %5 = tpu.matmul %1, %2, %cst {dimension_numbers = #tpu.dot_dimension_numbers<[1], [1], [0], [0], [0, 0, 1, 0], [], []>} : vector<512x128xf32>, vector<128x128xf32>, vector<512x128xf32> -> vector<512x128xf32>
    %6 = vector.broadcast %3 : vector<1x128xf32> to vector<512x128xf32>
    %7 = arith.subf %5, %6 : vector<512x128xf32>
    %cst_8 = arith.constant dense<0xFF800000> : vector<512xf32>
    %8 = vector.multi_reduction <maximumf>, %7, %cst_8 [1] : vector<512x128xf32> to vector<512xf32>
    %9 = vector.shape_cast %8 : vector<512xf32> to vector<512x1xf32>
    %10 = arith.mulf %1, %1 : vector<512x128xf32>
    %cst_9 = arith.constant dense<0.000000e+00> : vector<512xf32>
    %11 = vector.multi_reduction <add>, %10, %cst_9 [1] : vector<512x128xf32> to vector<512xf32>
    %12 = vector.shape_cast %11 : vector<512xf32> to vector<512x1xf32>
    %cst_10 = arith.constant 2.000000e+00 : f32
    %13 = vector.broadcast %cst_10 : f32 to vector<512x1xf32>
    %14 = arith.mulf %13, %9 : vector<512x1xf32>
    %15 = arith.subf %12, %14 : vector<512x1xf32>
    %cst_11 = arith.constant 0.000000e+00 : f32
    %16 = vector.broadcast %cst_11 : f32 to vector<512x1xf32>
    %17 = arith.maximumf %15, %16 : vector<512x1xf32>
    %18 = math.sqrt %17 : vector<512x1xf32>
    %19 = vector.shape_cast %18 : vector<512x1xf32> to vector<8x64x1xf32>
    %20 = tpu.iota {dimensions = array<i32: 0>} : vector<64x1xi32>
    %c64_i32 = arith.constant 64 : i32
    %21 = vector.broadcast %c64_i32 : i32 to vector<64x1xi32>
    %22 = arith.cmpi slt, %20, %21 : vector<64x1xi32>
    %cst_12 = arith.constant 0.000000e+00 : f32
    %23 = vector.shape_cast %22 : vector<64x1xi1> to vector<1x64x1xi1>
    %24 = vector.broadcast %23 : vector<1x64x1xi1> to vector<8x64x1xi1>
    %25 = vector.broadcast %cst_12 : f32 to vector<8x64x1xf32>
    %26 = arith.select %24, %19, %25 : vector<8x64x1xi1>, vector<8x64x1xf32>
    %cst_13 = arith.constant dense<0.000000e+00> : vector<8x1xf32>
    %27 = vector.multi_reduction <add>, %26, %cst_13 [1] : vector<8x64x1xf32> to vector<8x1xf32>
    %28 = vector.shape_cast %27 : vector<8x1xf32> to vector<8x1x1xf32>
    %cst_14 = arith.constant 1.562500e-02 : f32
    %29 = vector.broadcast %cst_14 : f32 to vector<8x1x1xf32>
    %30 = arith.mulf %28, %29 : vector<8x1x1xf32>
    %31 = vector.broadcast %30 : vector<8x1x1xf32> to vector<8x64x1xf32>
    %32 = arith.subf %19, %31 : vector<8x64x1xf32>
    %cst_15 = arith.constant 0.000000e+00 : f32
    %33 = vector.shape_cast %22 : vector<64x1xi1> to vector<1x64x1xi1>
    %34 = vector.broadcast %33 : vector<1x64x1xi1> to vector<8x64x1xi1>
    %35 = vector.broadcast %cst_15 : f32 to vector<8x64x1xf32>
    %36 = arith.select %34, %32, %35 : vector<8x64x1xi1>, vector<8x64x1xf32>
    %37 = arith.mulf %36, %36 : vector<8x64x1xf32>
    %cst_16 = arith.constant dense<0.000000e+00> : vector<8x1xf32>
    %38 = vector.multi_reduction <add>, %37, %cst_16 [1] : vector<8x64x1xf32> to vector<8x1xf32>
    %39 = vector.shape_cast %38 : vector<8x1xf32> to vector<8x1x1xf32>
    %cst_17 = arith.constant 0.0158730168 : f32
    %40 = vector.broadcast %cst_17 : f32 to vector<8x1x1xf32>
    %41 = arith.mulf %39, %40 : vector<8x1x1xf32>
    %42 = math.sqrt %41 : vector<8x1x1xf32>
    %43 = arith.addf %30, %42 : vector<8x1x1xf32>
    %44 = vector.broadcast %43 : vector<8x1x1xf32> to vector<8x64x1xf32>
    %45 = arith.cmpf olt, %19, %44 : vector<8x64x1xf32>
    %46 = vector.shape_cast %22 : vector<64x1xi1> to vector<1x64x1xi1>
    %47 = vector.broadcast %46 : vector<1x64x1xi1> to vector<8x64x1xi1>
    %48 = arith.andi %45, %47 : vector<8x64x1xi1>
    %49 = vector.shape_cast %7 : vector<512x128xf32> to vector<8x64x128xf32>
    %50 = vector.shape_cast %9 : vector<512x1xf32> to vector<8x64x1xf32>
    %51 = vector.broadcast %50 : vector<8x64x1xf32> to vector<8x64x128xf32>
    %52 = arith.cmpf oge, %49, %51 : vector<8x64x128xf32>
    %53 = vector.broadcast %48 : vector<8x64x1xi1> to vector<8x64x128xi1>
    %54 = arith.andi %52, %53 : vector<8x64x128xi1>
    %cst_18 = arith.constant 1.000000e+00 : f32
    %cst_19 = arith.constant 0.000000e+00 : f32
    %55 = vector.broadcast %cst_18 : f32 to vector<8x64x128xf32>
    %56 = vector.broadcast %cst_19 : f32 to vector<8x64x128xf32>
    %57 = arith.select %54, %55, %56 : vector<8x64x128xi1>, vector<8x64x128xf32>
    %cst_20 = arith.constant dense<0.000000e+00> : vector<8x128xf32>
    %58 = vector.multi_reduction <add>, %57, %cst_20 [1] : vector<8x64x128xf32> to vector<8x128xf32>
    %59 = vector.broadcast %4 : vector<1x128xf32> to vector<8x128xf32>
    %60 = arith.mulf %58, %59 : vector<8x128xf32>
    %61 = arith.mulf %60, %60 : vector<8x128xf32>
    %cst_21 = arith.constant dense<0.000000e+00> : vector<8xf32>
    %62 = vector.multi_reduction <add>, %61, %cst_21 [1] : vector<8x128xf32> to vector<8xf32>
    %63 = vector.shape_cast %62 : vector<8xf32> to vector<8x1xf32>
    %cst_22 = arith.constant 1.000000e-24 : f32
    %64 = vector.broadcast %cst_22 : f32 to vector<8x1xf32>
    %65 = arith.maximumf %63, %64 : vector<8x1xf32>
    %66 = math.rsqrt %65 : vector<8x1xf32>
    %67 = vector.broadcast %66 : vector<8x1xf32> to vector<8x128xf32>
    %68 = arith.mulf %60, %67 : vector<8x128xf32>
    %c0_23 = arith.constant 0 : index
    %c0_24 = arith.constant 0 : index
    %69 = vector.load %arg5[%c0_23, %c0_24] : memref<8x128xf32, #tpu.memory_space<vmem>>, vector<8x128xf32>
    tpu.vector_store %arg5[%c0_23, %c0_24], %68 {strides = array<i32>} : memref<8x128xf32, #tpu.memory_space<vmem>>, vector<8x128xf32>,
    return
  }
  func.func @transform_0(%arg0: i32) -> (i32, i32, i32) {
    %c0_i32 = arith.constant 0 : i32
    %c0_i32_0 = arith.constant 0 : i32
    %c0_i32_1 = arith.constant 0 : i32
    return %arg0, %c0_i32, %c0_i32_0 : i32, i32, i32
  }
  func.func @transform_1(%arg0: i32) -> (i32, i32) {
    %c0_i32 = arith.constant 0 : i32
    %c0_i32_0 = arith.constant 0 : i32
    %c0_i32_1 = arith.constant 0 : i32
    return %c0_i32, %c0_i32_0 : i32, i32
  }
  func.func @transform_2(%arg0: i32) -> (i32, i32) {
    %c0_i32 = arith.constant 0 : i32
    %c0_i32_0 = arith.constant 0 : i32
    %c0_i32_1 = arith.constant 0 : i32
    return %c0_i32, %c0_i32_0 : i32, i32
  }
  func.func @transform_3(%arg0: i32) -> (i32, i32) {
    %c0_i32 = arith.constant 0 : i32
    %c0_i32_0 = arith.constant 0 : i32
    %c0_i32_1 = arith.constant 0 : i32
    return %c0_i32, %c0_i32_0 : i32, i32
  }
  func.func @transform_4(%arg0: i32) -> (i32, i32) {
    %c0_i32 = arith.constant 0 : i32
    %c0_i32_0 = arith.constant 0 : i32
    return %arg0, %c0_i32 : i32, i32
  }
}

</mosaic_0001>

<bundles_post_ra>
// kernel: tpu_custom_call.1
= control target key start
LH: loop header
LB: loop body
LE: loop exit
PB: predicated region body
PF: predicated region fallthrough
CT: control target
= control target key end

     0   :  { %9 = vsyncpa [#allocation3], 0  ;;  %s6037_s0 = inlined_call_operand.hbm [shape: f32[8,64,128], index: 0, kind: input, shape index: {}]   ;;  %s6038_s1 = inlined_call_operand.hbm [shape: f32[128,128], index: 1, kind: input, shape index: {}]   ;;  %s6039_s2 = inlined_call_operand.vmem [shape: f32[1,128], index: 2, kind: input, shape index: {}]   ;;  %s6040_s3 = inlined_call_operand.vmem [shape: f32[1,128], index: 3, kind: input, shape index: {}]   ;;  %s6041_s4 = inlined_call_operand.hbm [shape: f32[8,128], index: 4, kind: output, shape index: {}]  }
   0x1   :  { %10 = vsyncpa [#allocation6], 0 }
   0x2   :  { %11 = vsyncpa [#allocation4], 0  ;;  %s3274_s15 = smov [#allocation2]   ;;  %s3202_s19 = scalar_lea.hbm %s6037_s0, 8192 }
   0x3   :  { %s17_s16 = sshll.u32 %s3274_s15, 4  ;;  %p3203_p0 = scmp.ne.s32.totalorder %s6037_s0, %s3202_s19  ;;  %s18_s16 = int_to_ptr.vmem [resolvable:$true] %s17_s16 }
   0x4   :  { %p3206_p1 = scmp.lt.u32.totalorder %s3202_s19, %s6037_s0 }
   0x6   :  { %p3208_p2 = pnand %p3206_p1, %p3203_p0 }
   0x8   :  { %3211 = shalt.err (!%p3208_p2)
}
   0x9   :  { %s3212_s24 = scalar_lea.vmem %s18_s16, 8192  ;;  %p3217_p4 = scmp.lt.s32.totalorder %s18_s16, %s18_s16 }
   0xa   :  { %p3213_p3 = scmp.ne.s32.totalorder %s18_s16, %s3212_s24  ;;  %p3218_p5 = scmp.lt.s32.totalorder %s3212_s24, %s3212_s24 }
   0xc   :  { %p3219_p6 = por %p3218_p5, %p3217_p4 }
   0xe   :  { %p3220_p7 = pnand %p3219_p6, %p3213_p3 }
  0x10   :  { %3223 = shalt.err (!%p3220_p7)
}
  0x11   :  { %s3275_s25 = smov 128   ;;  %s3276_s26 = smov 8  }
  0x12   :  { %23 = dma.hbm_to_vmem [thread:$0]  %s6037_s0, 8192, %s18_s16, [#allocation3], %s3275_s25, %s3275_s25, %s3276_s26  }
  0x13   :  { %s3277_s29 = smov [#allocation5]   ;;  %s3224_s7 = scalar_lea.hbm %s6038_s1, 2048 }
  0x14   :  { %s29_s30 = sshll.u32 %s3277_s29, 4  ;;  %p3225_p8 = scmp.ne.s32.totalorder %s6038_s1, %s3224_s7  ;;  %s30_s30 = int_to_ptr.vmem [resolvable:$true] %s29_s30 }
  0x15   :  { %p3228_p9 = scmp.lt.u32.totalorder %s3224_s7, %s6038_s1 }
  0x17   :  { %p3230_p10 = pnand %p3228_p9, %p3225_p8 }
  0x19   :  { %3233 = shalt.err (!%p3230_p10)
}
  0x1a   :  { %s3234_s12 = scalar_lea.vmem %s30_s30, 2048  ;;  %p3239_p12 = scmp.lt.s32.totalorder %s30_s30, %s30_s30 }
  0x1b   :  { %p3235_p11 = scmp.ne.s32.totalorder %s30_s30, %s3234_s12  ;;  %p3240_p13 = scmp.lt.s32.totalorder %s3234_s12, %s3234_s12 }
  0x1d   :  { %p3241_p0 = por %p3240_p13, %p3239_p12 }
  0x1f   :  { %p3242_p1 = pnand %p3241_p0, %p3235_p11 }
  0x21   :  { %3245 = shalt.err (!%p3242_p1)
}
  0x22   :  { %35 = dma.hbm_to_vmem [thread:$0]  %s6038_s1, 2048, %s30_s30, [#allocation6], %s3275_s25, %s3275_s25, %s3276_s26  }
  0x23   :  { %3268 = dma.done.wait [#allocation3], 8192  }
  0x24   :  { %3269 = vsyncadd [#allocation3], 4294959104 }
  0x25   :  { %3270 = dma.done.wait [#allocation6], 2048  }
  0x26   :  { %3271 = vsyncadd [#allocation6], 4294965248  ;;  %v110_v0 = vld [vmem:[#allocation5] sm:$0xff]  ;;  %v111_v1 = vld [vmem:[#allocation5 + $0x8] sm:$0xff] }
  0x27   :  { %v112_v2 = vld [vmem:[#allocation5 + $0x10] sm:$0xff]  ;;  %v3002_v3 = vpack.c.bf16 %v111_v1, %v110_v0  ;;  %v113_v4 = vld [vmem:[#allocation5 + $0x18] sm:$0xff]  ;;  %v46_v6 = vld [vmem:[#allocation2] sm:$0xff] }
  0x28   :  { %v3006_v5 = vpack.c.bf16 %v113_v4, %v112_v2  ;;  %v114_v7 = vld [vmem:[#allocation5 + $0x20] sm:$0xff]  ;;  %v115_v8 = vld [vmem:[#allocation5 + $0x28] sm:$0xff]  ;;  %2906 = vmatprep.mubr.f32.mxu0 %v46_v6  ;;  %v116_v15 = vld [vmem:[#allocation5 + $0x30] sm:$0xff]  ;;  %v711_v23 = vmul.f32 %v46_v6, %v46_v6 }
  0x29   :  { %3003 = vmatprep.subr.bf16.mxu0 %v3002_v3  ;;  %3034 = vmatprep.subr.bf16.mxu1 %v3002_v3  ;;  %v78_v9 = vld [vmem:[#allocation2 + $0x100] sm:$0xff]  ;;  %v3010_v10 = vpack.c.bf16 %v115_v8, %v114_v7  ;;  %v3331_v12 = vld [vmem:[#allocation2 + $0x48] sm:$0xff]  ;;  %v117_v16 = vld [vmem:[#allocation5 + $0x38] sm:$0xff] }
  0x2a   :  { %3005 = vmatpush3.bf16.xpose.msra.mxu0 %v3002_v3  ;;  %3042 = vmatpush3.bf16.xpose.msra.mxu1 %v3002_v3  ;;  %v3329_v11 = vld [vmem:[#allocation2 + $0x40] sm:$0xff]  ;;  %v720_v14 = vmul.f32 %v3331_v12, %v3331_v12  ;;  %v3339_v18 = vld [vmem:[#allocation2 + $0x88] sm:$0xff]  ;;  %v3014_v19 = vpack.c.bf16 %v117_v16, %v116_v15  ;;  %v3349_v27 = vld [vmem:[#allocation2 + $0x50] sm:$0xff]  ;;  %v743_v39 = vmul.f32 %v78_v9, %v78_v9 }
  0x2b   :  { %3007 = vmatprep.subr.bf16.mxu0 %v3006_v5  ;;  %3035 = vmatprep.subr.bf16.mxu1 %v3006_v5  ;;  %v719_v13 = vmul.f32 %v3329_v11, %v3329_v11  ;;  %v3337_v17 = vld [vmem:[#allocation2 + $0x80] sm:$0xff]  ;;  %v728_v20 = vmul.f32 %v3339_v18, %v3339_v18  ;;  %v3345_v22 = vld [vmem:[#allocation2 + $0x8] sm:$0xff]  ;;  %v721_v29 = vmul.f32 %v3349_v27, %v3349_v27  ;;  %v3357_v32 = vld [vmem:[#allocation2 + $0x90] sm:$0xff] }
  0x2c   :  { %2954 = vmatprep.mubr.f32.mxu1 %v78_v9  ;;  %793 = vadd.xlane.f32.xlu0 %v720_v14  ;;  %v727_v21 = vmul.f32 %v3337_v17, %v3337_v17  ;;  %v712_v24 = vmul.f32 %v3345_v22, %v3345_v22  ;;  %v118_v25 = vld [vmem:[#allocation5 + $0x40] sm:$0xff]  ;;  %v119_v26 = vld [vmem:[#allocation5 + $0x48] sm:$0xff]  ;;  %v729_v35 = vmul.f32 %v3357_v32, %v3357_v32  ;;  %v120_v36 = vld [vmem:[#allocation5 + $0x50] sm:$0xff] }
  0x2d   :  { %791 = vadd.xlane.f32.xlu1 %v719_v13  ;;  %v3351_v28 = vld [vmem:[#allocation2 + $0xc0] sm:$0xff]  ;;  %v3018_v31 = vpack.c.bf16 %v119_v26, %v118_v25  ;;  %v3359_v33 = vld [vmem:[#allocation2 + $0xc8] sm:$0xff]  ;;  %v121_v37 = vld [vmem:[#allocation5 + $0x58] sm:$0xff] }
  0x2e   :  { %v735_v30 = vmul.f32 %v3351_v28, %v3351_v28  ;;  %v736_v34 = vmul.f32 %v3359_v33, %v3359_v33  ;;  %v3365_v38 = vld [vmem:[#allocation2 + $0x108] sm:$0xff]  ;;  %v3022_v41 = vpack.c.bf16 %v121_v37, %v120_v36  ;;  %v3369_v42 = vld [vmem:[#allocation2 + $0x10] sm:$0xff]  ;;  %v3371_v43 = vld [vmem:[#allocation2 + $0x58] sm:$0xff] }
  0x2f   :  { %v744_v40 = vmul.f32 %v3365_v38, %v3365_v38  ;;  %v713_v44 = vmul.f32 %v3369_v42, %v3369_v42  ;;  %v722_v45 = vmul.f32 %v3371_v43, %v3371_v43  ;;  %v122_v46 = vld [vmem:[#allocation5 + $0x60] sm:$0xff]  ;;  %v123_v47 = vld [vmem:[#allocation5 + $0x68] sm:$0xff]  ;;  %v3379_v49 = vld [vmem:[#allocation2 + $0xd0] sm:$0xff] }
  0x30   :  { %807 = vadd.xlane.f32.xlu0 %v727_v21  ;;  %v3377_v48 = vld [vmem:[#allocation2 + $0x140] sm:$0xff]  ;;  %v737_v50 = vmul.f32 %v3379_v49, %v3379_v49  ;;  %v3026_v52 = vpack.c.bf16 %v123_v47, %v122_v46  ;;  %v80_v53 = vld [vmem:[#allocation2 + $0x110] sm:$0xff]  ;;  %v3385_v54 = vld [vmem:[#allocation2 + $0x148] sm:$0xff] }
  0x31   :  { %809 = vadd.xlane.f32.xlu1 %v728_v20  ;;  %v751_v51 = vmul.f32 %v3377_v48, %v3377_v48  ;;  %v752_v55 = vmul.f32 %v3385_v54, %v3385_v54  ;;  %v745_v56 = vmul.f32 %v80_v53, %v80_v53  ;;  %v124_v57 = vld [vmem:[#allocation5 + $0x70] sm:$0xff]  ;;  %v125_v58 = vld [vmem:[#allocation5 + $0x78] sm:$0xff]  ;;  %v3389_v59 = vld [vmem:[#allocation2 + $0x188] sm:$0xff] }
  0x32   :  { %3009 = vmatpush3.bf16.xpose.msra.mxu0 %v3006_v5  ;;  %3043 = vmatpush3.bf16.xpose.msra.mxu1 %v3006_v5  ;;  %v3391_v60 = vld [vmem:[#allocation2 + $0x98] sm:$0xff]  ;;  %v760_v62 = vmul.f32 %v3389_v59, %v3389_v59  ;;  %v3030_v63 = vpack.c.bf16 %v125_v58, %v124_v57  ;;  %v3397_v1 = vld [vmem:[#allocation2 + $0x180] sm:$0xff]  ;;  %v88_v8 = vld [vmem:[#allocation2 + $0x150] sm:$0xff] }
  0x33   :  { %3011 = vmatprep.subr.bf16.mxu0 %v3010_v10  ;;  %3036 = vmatprep.subr.bf16.mxu1 %v3010_v10  ;;  %v730_v61 = vmul.f32 %v3391_v60, %v3391_v60  ;;  %v49_v0 = vld [vmem:[#allocation2 + $0x18] sm:$0xff]  ;;  %v759_v2 = vmul.f32 %v3397_v1, %v3397_v1  ;;  %v3401_v4 = vld [vmem:[#allocation2 + $0x60] sm:$0xff]  ;;  %v3413_v15 = vld [vmem:[#allocation2 + $0x1c8] sm:$0xff] }
  0x34   :  { %777 = vadd.xlane.f32.xlu0 %v712_v24  ;;  %v714_v3 = vmul.f32 %v49_v0, %v49_v0  ;;  %v3403_v5 = vld [vmem:[#allocation2 + $0xd8] sm:$0xff]  ;;  %v723_v6 = vmul.f32 %v3401_v4, %v3401_v4  ;;  %v3409_v9 = vld [vmem:[#allocation2 + $0x1c0] sm:$0xff]  ;;  %v768_v16 = vmul.f32 %v3413_v15, %v3413_v15  ;;  %v3420_v20 = vld [vmem:[#allocation2 + $0x68] sm:$0xff] }
  0x35   :  { %775 = vadd.xlane.f32.xlu1 %v711_v23  ;;  %v738_v7 = vmul.f32 %v3403_v5, %v3403_v5  ;;  %v767_v13 = vmul.f32 %v3409_v9, %v3409_v9  ;;  %v81_v14 = vld [vmem:[#allocation2 + $0x118] sm:$0xff]  ;;  %v3422_v21 = vld [vmem:[#allocation2 + $0xa0] sm:$0xff]  ;;  %v724_v26 = vmul.f32 %v3420_v20, %v3420_v20  ;;  %v3471_v58 = vld [vmem:[#allocation2 + $0xf0] sm:$0xff] }
  0x36   :  { %v50_v23 = vld [vmem:[#allocation2 + $0x20] sm:$0xff]  ;;  %v731_v25 = vmul.f32 %v3422_v21, %v3422_v21 }
  0x37   :  { %v82_v24 = vld [vmem:[#allocation2 + $0x120] sm:$0xff] }
  0x38   :  { %823 = vadd.xlane.f32.xlu0 %v735_v30  ;;  %v89_v30 = vld [vmem:[#allocation2 + $0x158] sm:$0xff]  ;;  %v90_v47 = vld [vmem:[#allocation2 + $0x160] sm:$0xff] }
  0x39   :  { %795 = vadd.xlane.f32.xlu1 %v721_v29  ;;  %v83_v29 = vld [vmem:[#allocation2 + $0x128] sm:$0xff]  ;;  %v754_v37 = vmul.f32 %v89_v30, %v89_v30 }
  0x3a   :  { %3013 = vmatpush3.bf16.xpose.msra.mxu0 %v3010_v10  ;;  %3044 = vmatpush3.bf16.xpose.msra.mxu1 %v3010_v10  ;;  %v753_v10 = vmul.f32 %v88_v8, %v88_v8 }
  0x3b   :  { %3015 = vmatprep.subr.bf16.mxu0 %v3014_v19  ;;  %3037 = vmatprep.subr.bf16.mxu1 %v3014_v19 }
  0x3c   :  { %811 = vadd.xlane.f32.xlu0 %v729_v35  ;;  %v3432_v35 = vld [vmem:[#allocation2 + $0x130] sm:$0xff] }
  0x3d   :  { %825 = vadd.xlane.f32.xlu1 %v736_v34  ;;  %v52_v34 = vld [vmem:[#allocation2 + $0x30] sm:$0xff] }
  0x3e   :  { %v717_v57 = vmul.f32 %v52_v34, %v52_v34 }
  0x40   :  { %841 = vadd.xlane.f32.xlu0 %v744_v40  ;;  %v715_v40 = vmul.f32 %v50_v23, %v50_v23 }
  0x41   :  { %839 = vadd.xlane.f32.xlu1 %v743_v39  ;;  %v3440_v39 = vld [vmem:[#allocation2 + $0x138] sm:$0xff] }
  0x42   :  { %3017 = vmatpush3.bf16.xpose.msra.mxu0 %v3014_v19  ;;  %3045 = vmatpush3.bf16.xpose.msra.mxu1 %v3014_v19  ;;  %v746_v19 = vmul.f32 %v81_v14, %v81_v14 }
  0x43   :  { %3019 = vmatprep.subr.bf16.mxu0 %v3018_v31  ;;  %3038 = vmatprep.subr.bf16.mxu1 %v3018_v31 }
  0x44   :  { %797 = vadd.xlane.f32.xlu0 %v722_v45 }
  0x45   :  { %779 = vadd.xlane.f32.xlu1 %v713_v44  ;;  %v3446_v44 = vld [vmem:[#allocation2 + $0xe0] sm:$0xff] }
  0x46   :  { %v739_v45 = vmul.f32 %v3446_v44, %v3446_v44 }
  0x48   :  { %855 = vadd.xlane.f32.xlu0 %v751_v51  ;;  %v67_v51 = vld [vmem:[#allocation2 + $0xa8] sm:$0xff] }
  0x49   :  { %827 = vadd.xlane.f32.xlu1 %v737_v50  ;;  %v755_v50 = vmul.f32 %v90_v47, %v90_v47 }
  0x4a   :  { %3021 = vmatpush3.bf16.xpose.msra.mxu0 %v3018_v31  ;;  %3046 = vmatpush3.bf16.xpose.msra.mxu1 %v3018_v31  ;;  %v3430_v31 = vld [vmem:[#allocation2 + $0x190] sm:$0xff] }
  0x4b   :  { %3023 = vmatprep.subr.bf16.mxu0 %v3022_v41  ;;  %3039 = vmatprep.subr.bf16.mxu1 %v3022_v41  ;;  %v761_v36 = vmul.f32 %v3430_v31, %v3430_v31 }
  0x4c   :  { %843 = vadd.xlane.f32.xlu0 %v745_v56 }
  0x4d   :  { %857 = vadd.xlane.f32.xlu1 %v752_v55  ;;  %v97_v55 = vld [vmem:[#allocation2 + $0x198] sm:$0xff] }
  0x4e   :  { %v762_v56 = vmul.f32 %v97_v55, %v97_v55 }
  0x50   :  { %873 = vadd.xlane.f32.xlu0 %v760_v62  ;;  %v741_v62 = vmul.f32 %v3471_v58, %v3471_v58 }
  0x51   :  { %813 = vadd.xlane.f32.xlu1 %v730_v61 }
  0x52   :  { %3025 = vmatpush3.bf16.xpose.msra.mxu0 %v3022_v41  ;;  %3047 = vmatpush3.bf16.xpose.msra.mxu1 %v3022_v41  ;;  %v747_v41 = vmul.f32 %v82_v24, %v82_v24 }
  0x53   :  { %3027 = vmatprep.subr.bf16.mxu0 %v3026_v52  ;;  %3040 = vmatprep.subr.bf16.mxu1 %v3026_v52 }
  0x54   :  { %781 = vadd.xlane.f32.xlu0 %v714_v3  ;;  %v105_v3 = vld [vmem:[#allocation2 + $0x1d8] sm:$0xff] }
  0x55   :  { %871 = vadd.xlane.f32.xlu1 %v759_v2 }
  0x58   :  { %829 = vadd.xlane.f32.xlu0 %v738_v7  ;;  %v69_v7 = vld [vmem:[#allocation2 + $0xb8] sm:$0xff] }
  0x59   :  { %799 = vadd.xlane.f32.xlu1 %v723_v6  ;;  %v749_v6 = vmul.f32 %v3432_v35, %v3432_v35 }
  0x5a   :  { %3029 = vmatpush3.bf16.xpose.msra.mxu0 %v3026_v52  ;;  %3048 = vmatpush3.bf16.xpose.msra.mxu1 %v3026_v52  ;;  %v3461_v52 = vld [vmem:[#allocation2 + $0x170] sm:$0xff] }
  0x5b   :  { %3031 = vmatprep.subr.bf16.mxu0 %v3030_v63  ;;  %3041 = vmatprep.subr.bf16.mxu1 %v3030_v63 }
  0x5c   :  { %887 = vadd.xlane.f32.xlu0 %v767_v13 }
  0x5d   :  { %859 = vadd.xlane.f32.xlu1 %v753_v10 }
  0x60   :  { %845 = vadd.xlane.f32.xlu0 %v746_v19  ;;  %v3500_v19 = vld [vmem:[#allocation2 + $0x1f0] sm:$0xff] }
  0x61   :  { %889 = vadd.xlane.f32.xlu1 %v768_v16 }
  0x62   :  { %3033 = vmatpush3.bf16.xpose.msra.mxu0 %v3030_v63  ;;  %3049 = vmatpush3.bf16.xpose.msra.mxu1 %v3030_v63  ;;  %v75_v63 = vld [vmem:[#allocation2 + $0xe8] sm:$0xff] }
  0x64   :  { %801 = vadd.xlane.f32.xlu0 %v724_v26 }
  0x65   :  { %815 = vadd.xlane.f32.xlu1 %v731_v25 }
  0x68   :  { %861 = vadd.xlane.f32.xlu0 %v754_v37 }
  0x69   :  { %2907 = vmatmul.mubr.f32.vlgmr.msra.gmra.mrb[0].mxu0 %v3345_v22  ;;  %2955 = vmatmul.mubr.f32.vlgmr.msra.gmra.mrb[0].mxu1 %v3365_v38  ;;  %v3428_v22 = vld [vmem:[#allocation2 + $0x28] sm:$0xff]  ;;  %v3437_v38 = vld [vmem:[#allocation2 + $0x38] sm:$0xff] }
  0x6a   :  { %2909 = vmatprep.mubr.f32.mxu0 %v3369_v42  ;;  %2957 = vmatprep.mubr.f32.mxu1 %v80_v53  ;;  %v60_v42 = vld [vmem:[#allocation2 + $0x70] sm:$0xff]  ;;  %v748_v53 = vmul.f32 %v83_v29, %v83_v29  ;;  %v716_v61 = vmul.f32 %v3428_v22, %v3428_v22  ;;  %v718_v10 = vmul.f32 %v3437_v38, %v3437_v38 }
  0x6b   :  { %875 = vadd.xlane.f32.xlu1 %v761_v36  ;;  %v725_v46 = vmul.f32 %v60_v42, %v60_v42 }
  0x6c   :  { %847 = vadd.xlane.f32.xlu0 %v747_v41 }
  0x6d   :  { %2910 = vmatmul.mubr.f32.gmra.mrb[2].mxu0 %v49_v0  ;;  %2958 = vmatmul.mubr.f32.gmra.mrb[2].mxu1 %v81_v14  ;;  %v98_v0 = vld [vmem:[#allocation2 + $0x1a0] sm:$0xff]  ;;  %v757_v14 = vmul.f32 %v3461_v52, %v3461_v52 }
  0x6e   :  { %2912 = vmatprep.mubr.f32.mxu0 %v50_v23  ;;  %2960 = vmatprep.mubr.f32.mxu1 %v82_v24  ;;  %v763_v13 = vmul.f32 %v98_v0, %v98_v0  ;;  %v750_v24 = vmul.f32 %v3440_v39, %v3440_v39 }
  0x6f   :  { %783 = vadd.xlane.f32.xlu1 %v715_v40 }
  0x70   :  { %803 = vadd.xlane.f32.xlu0 %v725_v46 }
  0x71   :  { %2913 = vmatmul.mubr.f32.gmra.mrb[4].mxu0 %v3428_v22  ;;  %2961 = vmatmul.mubr.f32.gmra.mrb[4].mxu1 %v83_v29 }
  0x72   :  { %2915 = vmatprep.mubr.f32.mxu0 %v52_v34  ;;  %2963 = vmatprep.mubr.f32.mxu1 %v3432_v35 }
  0x73   :  { %831 = vadd.xlane.f32.xlu1 %v739_v45 }
  0x74   :  { %863 = vadd.xlane.f32.xlu0 %v755_v50 }
  0x75   :  { %2916 = vmatmul.mubr.f32.gmra.mrb[6].mxu0 %v3437_v38  ;;  %2964 = vmatmul.mubr.f32.gmra.mrb[6].mxu1 %v3440_v39 }
  0x76   :  { %2918 = vmatprep.mubr.f32.mxu0 %v3329_v11  ;;  %2966 = vmatprep.mubr.f32.mxu1 %v3377_v48  ;;  %v3453_v11 = vld [vmem:[#allocation2 + $0x1d0] sm:$0xff] }
  0x77   :  { %v769_v48 = vmul.f32 %v3453_v11, %v3453_v11 }
  0x78   :  { %849 = vadd.xlane.f32.xlu0 %v748_v53 }
  0x79   :  { %2919 = vmatmul.mubr.f32.gmra.mrb[8].mxu0 %v3331_v12  ;;  %2967 = vmatmul.mubr.f32.gmra.mrb[8].mxu1 %v3385_v54  ;;  %v3459_v12 = vld [vmem:[#allocation2 + $0x168] sm:$0xff]  ;;  %v3466_v54 = vld [vmem:[#allocation2 + $0x178] sm:$0xff] }
  0x7a   :  { %2969 = vmatprep.mubr.f32.mxu1 %v88_v8  ;;  %2921 = vmatprep.mubr.f32.mxu0 %v3349_v27  ;;  %v732_v27 = vmul.f32 %v67_v51, %v67_v51 }
  0x7b   :  { %891 = vadd.xlane.f32.xlu1 %v769_v48 }
  0x7c   :  { %787 = vadd.xlane.f32.xlu0 %v717_v57 }
  0x7d   :  { %2970 = vmatmul.mubr.f32.gmra.mrb[10].mxu1 %v89_v30  ;;  %2922 = vmatmul.mubr.f32.gmra.mrb[10].mxu0 %v3371_v43  ;;  %v61_v43 = vld [vmem:[#allocation2 + $0x78] sm:$0xff] }
  0x7e   :  { %2924 = vmatprep.mubr.f32.mxu0 %v3401_v4  ;;  %2972 = vmatprep.mubr.f32.mxu1 %v90_v47  ;;  %v100_v4 = vld [vmem:[#allocation2 + $0x1b0] sm:$0xff]  ;;  %v726_v16 = vmul.f32 %v61_v43, %v61_v43  ;;  %v3550_v47 = vld [vmem:[%s6039_s2] ss:$0 sm:$0xff] }
  0x7f   :  { %817 = vadd.xlane.f32.xlu1 %v732_v27 }
  0x80   :  { %835 = vadd.xlane.f32.xlu0 %v741_v62 }
  0x81   :  { %2925 = vmatmul.mubr.f32.gmra.mrb[12].mxu0 %v3420_v20  ;;  %2973 = vmatmul.mubr.f32.gmra.mrb[12].mxu1 %v3459_v12 }
  0x82   :  { %2927 = vmatprep.mubr.f32.mxu0 %v60_v42  ;;  %2975 = vmatprep.mubr.f32.mxu1 %v3461_v52 }
  0x83   :  { %877 = vadd.xlane.f32.xlu1 %v762_v56 }
  0x85   :  { %2928 = vmatmul.mubr.f32.gmra.mrb[14].mxu0 %v61_v43  ;;  %2976 = vmatmul.mubr.f32.gmra.mrb[14].mxu1 %v3466_v54 }
  0x86   :  { %2930 = vmatprep.mubr.f32.mxu0 %v3337_v17  ;;  %2978 = vmatprep.mubr.f32.mxu1 %v3397_v1  ;;  %v106_v17 = vld [vmem:[#allocation2 + $0x1e0] sm:$0xff]  ;;  %v740_v1 = vmul.f32 %v75_v63, %v75_v63 }
  0x87   :  { %785 = vadd.xlane.f32.xlu1 %v716_v61  ;;  %v771_v2 = vmul.f32 %v106_v17, %v106_v17 }
  0x89   :  { %2931 = vmatmul.mubr.f32.gmra.mrb[16].mxu0 %v3339_v18  ;;  %2979 = vmatmul.mubr.f32.gmra.mrb[16].mxu1 %v3389_v59  ;;  %v99_v18 = vld [vmem:[#allocation2 + $0x1a8] sm:$0xff]  ;;  %v68_v59 = vld [vmem:[#allocation2 + $0xb0] sm:$0xff] }
  0x8a   :  { %2933 = vmatprep.mubr.f32.mxu0 %v3357_v32  ;;  %2981 = vmatprep.mubr.f32.mxu1 %v3430_v31  ;;  %v770_v32 = vmul.f32 %v105_v3, %v105_v3  ;;  %v733_v8 = vmul.f32 %v68_v59, %v68_v59  ;;  %v764_v20 = vmul.f32 %v99_v18, %v99_v18 }
  0x8b   :  { %833 = vadd.xlane.f32.xlu1 %v740_v1  ;;  %895 = vadd.xlane.f32.xlu0 %v771_v2 }
  0x8d   :  { %2934 = vmatmul.mubr.f32.gmra.mrb[18].mxu0 %v3391_v60  ;;  %2982 = vmatmul.mubr.f32.gmra.mrb[18].mxu1 %v97_v55  ;;  %v3485_v60 = vld [vmem:[#allocation2 + $0x1b8] sm:$0xff] }
  0x8e   :  { %2936 = vmatprep.mubr.f32.mxu0 %v3422_v21  ;;  %2984 = vmatprep.mubr.f32.mxu1 %v98_v0 }
  0x8f   :  { %893 = vadd.xlane.f32.xlu1 %v770_v32  ;;  %851 = vadd.xlane.f32.xlu0 %v749_v6 }
  0x91   :  { %2937 = vmatmul.mubr.f32.gmra.mrb[20].mxu0 %v67_v51  ;;  %2985 = vmatmul.mubr.f32.gmra.mrb[20].mxu1 %v99_v18 }
  0x92   :  { %2939 = vmatprep.mubr.f32.mxu0 %v68_v59  ;;  %2987 = vmatprep.mubr.f32.mxu1 %v100_v4 }
  0x93   :  { %819 = vadd.xlane.f32.xlu1 %v733_v8  ;;  %789 = vadd.xlane.f32.xlu0 %v718_v10 }
  0x95   :  { %2940 = vmatmul.mubr.f32.gmra.mrb[22].mxu0 %v69_v7  ;;  %2988 = vmatmul.mubr.f32.gmra.mrb[22].mxu1 %v3485_v60 }
  0x96   :  { %2942 = vmatprep.mubr.f32.mxu0 %v3351_v28  ;;  %2990 = vmatprep.mubr.f32.mxu1 %v3409_v9  ;;  %v765_v28 = vmul.f32 %v100_v4, %v100_v4  ;;  %v107_v9 = vld [vmem:[#allocation2 + $0x1e8] sm:$0xff] }
  0x97   :  { %879 = vadd.xlane.f32.xlu1 %v763_v13  ;;  %867 = vadd.xlane.f32.xlu0 %v757_v14  ;;  %v772_v23 = vmul.f32 %v107_v9, %v107_v9 }
  0x99   :  { %2943 = vmatmul.mubr.f32.gmra.mrb[24].mxu0 %v3359_v33  ;;  %2991 = vmatmul.mubr.f32.gmra.mrb[24].mxu1 %v3413_v15  ;;  %v756_v33 = vmul.f32 %v3459_v12, %v3459_v12  ;;  %v734_v15 = vmul.f32 %v69_v7, %v69_v7 }
  0x9a   :  { %2945 = vmatprep.mubr.f32.mxu0 %v3379_v49  ;;  %2993 = vmatprep.mubr.f32.mxu1 %v3453_v11  ;;  %v77_v49 = vld [vmem:[#allocation2 + $0xf8] sm:$0xff] }
  0x9b   :  { %805 = vadd.xlane.f32.xlu1 %v726_v16  ;;  %883 = vadd.xlane.f32.xlu0 %v765_v28  ;;  %v742_v21 = vmul.f32 %v77_v49, %v77_v49 }
  0x9d   :  { %2946 = vmatmul.mubr.f32.gmra.mrb[26].mxu0 %v3403_v5  ;;  %2994 = vmatmul.mubr.f32.gmra.mrb[26].mxu1 %v105_v3  ;;  %v3506_v5 = vld [vmem:[#allocation2 + $0x1f8] sm:$0xff] }
  0x9e   :  { %2996 = vmatprep.mubr.f32.mxu1 %v106_v17  ;;  %2948 = vmatprep.mubr.f32.mxu0 %v3446_v44 }
  0x9f   :  { %865 = vadd.xlane.f32.xlu1 %v756_v33 }
  0xa1   :  { %2997 = vmatmul.mubr.f32.gmra.mrb[28].mxu1 %v107_v9  ;;  %2949 = vmatmul.mubr.f32.gmra.mrb[28].mxu0 %v75_v63 }
  0xa2   :  { %2951 = vmatprep.mubr.f32.mxu0 %v3471_v58  ;;  %2999 = vmatprep.mubr.f32.mxu1 %v3500_v19 }
  0xa3   :  { %821 = vadd.xlane.f32.xlu1 %v734_v15 }
  0xa5   :  { %2952 = vmatmul.mubr.f32.gmra.mrb[30].mxu0 %v77_v49  ;;  %3000 = vmatmul.mubr.f32.gmra.mrb[30].mxu1 %v3506_v5 }
  0xa7   :  { %881 = vadd.xlane.f32.xlu1 %v764_v20 }
  0xab   :  { %837 = vadd.xlane.f32.xlu1 %v742_v21 }
  0xaf   :  { %897 = vadd.xlane.f32.xlu1 %v772_v23 }
  0xb3   :  { %853 = vadd.xlane.f32.xlu1 %v750_v24 }
  0xb9   :  { %v3525_v35 = vpop.xlane.xlu0 %793 }
  0xba   :  { %v3511_v25 = vpop.xlane.xlu1 %791 }
  0xbd   :  { %v3529_v37 = vpop.xlane.xlu0 %807 }
  0xbe   :  { %v3513_v26 = vpop.xlane.xlu1 %809  ;;  %6284 = vst [vmem:[#allocation14_spill] sm:$0xff] %v3529_v37 }
  0xbf   :  { %6281 = vst [vmem:[#allocation11_spill] sm:$0xff] %v3513_v26 }
  0xc1   :  { %v3533_v39 = vpop.xlane.xlu0 %777 }
  0xc2   :  { %v3515_v22 = vpop.xlane.xlu1 %775 }
  0xc5   :  { %v3537_v41 = vpop.xlane.xlu0 %823 }
  0xc6   :  { %v3517_v29 = vpop.xlane.xlu1 %795  ;;  %6286 = vst [vmem:[#allocation16_spill] sm:$0xff] %v3537_v41 }
  0xc9   :  { %v3541_v44 = vpop.xlane.xlu0 %811 }
  0xca   :  { %v3519_v30 = vpop.xlane.xlu1 %825  ;;  %6288 = vst [vmem:[#allocation18_spill] sm:$0xff] %v3541_v44 }
  0xcb   :  { %6282 = vst [vmem:[#allocation12_spill] sm:$0xff] %v3519_v30 }
  0xcd   :  { %v3545_v46 = vpop.xlane.xlu0 %841 }
  0xce   :  { %v3521_v31 = vpop.xlane.xlu1 %839 }
  0xd1   :  { %v3564_v43 = vpop.xlane.xlu0 %797 }
  0xd2   :  { %v3523_v34 = vpop.xlane.xlu1 %779 }
  0xd5   :  { %v3584_v59 = vpop.xlane.xlu0 %855 }
  0xd6   :  { %v3527_v36 = vpop.xlane.xlu1 %827 }
  0xd7   :  { %6283 = vst [vmem:[#allocation13_spill] sm:$0xff] %v3527_v36 }
  0xd9   :  { %v3604_v15 = vpop.xlane.xlu0 %843 }
  0xda   :  { %v3531_v38 = vpop.xlane.xlu1 %857 }
  0xde   :  { %v3535_v40 = vpop.xlane.xlu1 %813 }
  0xdf   :  { %6285 = vst [vmem:[#allocation15_spill] sm:$0xff] %v3535_v40 }
  0xe2   :  { %v3539_v42 = vpop.xlane.xlu1 %871 }
  0xe3   :  { %6287 = vst [vmem:[#allocation17_spill] sm:$0xff] %v3539_v42 }
  0xe6   :  { %v3543_v45 = vpop.xlane.xlu1 %799 }
  0xea   :  { %v3562_v53 = vpop.xlane.xlu1 %859 }
  0xee   :  { %v3582_v3 = vpop.xlane.xlu1 %889 }
  0xef   :  { %6294 = vst [vmem:[#allocation24_spill] sm:$0xff] %v3582_v3 }
  0xf2   :  { %v3602_v49 = vpop.xlane.xlu1 %815 }
  0xf3   :  { %6299 = vst [vmem:[#allocation29_spill] sm:$0xff] %v3602_v49 }
 0x13c   :  { %v2908_v11 = vpop.f32.mrb[0].mxu0  ;;  %v2956_v48 = vpop.f32.mrb[0].mxu1 }
 0x13d   :  { %v3553_v50 = vsub.f32 %v2908_v11, %v3550_v47  ;;  %v194_v12 = vpop.f32.mrb[1].mxu0  ;;  %v354_v51 = vpop.f32.mrb[1].mxu1  ;;  %v3559_v27 = vsub.f32 %v2956_v48, %v3550_v47 }
 0x13e   :  { %v3556_v52 = vsub.f32 %v194_v12, %v3550_v47  ;;  %v3567_v55 = vsub.f32 %v354_v51, %v3550_v47 }
 0x13f   :  { %6289 = vst [vmem:[#allocation19_spill] sm:$0xff] %v3559_v27  ;;  %585 = vmax.xlane.f32.xlu1 %v3553_v50 }
 0x140   :  { %6290 = vst [vmem:[#allocation20_spill] sm:$0xff] %v3567_v55  ;;  %583 = vmax.xlane.f32.xlu0 %v3556_v52  ;;  %v2911_v56 = vpop.f32.mrb[2].mxu0  ;;  %v2959_v57 = vpop.f32.mrb[2].mxu1 }
 0x141   :  { %v204_v58 = vpop.f32.mrb[3].mxu0  ;;  %v364_v61 = vpop.f32.mrb[3].mxu1  ;;  %v3572_v62 = vsub.f32 %v2911_v56, %v3550_v47  ;;  %v3580_v18 = vsub.f32 %v2959_v57, %v3550_v47 }
 0x142   :  { %v3576_v17 = vsub.f32 %v204_v58, %v3550_v47  ;;  %v3592_v10 = vsub.f32 %v364_v61, %v3550_v47  ;;  %v3631_v61 = vpop.xlane.xlu1 %875 }
 0x143   :  { %649 = vmax.xlane.f32.xlu1 %v3559_v27  ;;  %6291 = vst [vmem:[#allocation21_spill] sm:$0xff] %v3572_v62  ;;  %6293 = vst [vmem:[#allocation23_spill] sm:$0xff] %v3580_v18 }
 0x144   :  { %647 = vmax.xlane.f32.xlu0 %v3567_v55  ;;  %6292 = vst [vmem:[#allocation22_spill] sm:$0xff] %v3576_v17  ;;  %v2914_v63 = vpop.f32.mrb[4].mxu0  ;;  %v2962_v0 = vpop.f32.mrb[4].mxu1  ;;  %6296 = vst [vmem:[#allocation26_spill] sm:$0xff] %v3592_v10 }
 0x145   :  { %v214_v1 = vpop.f32.mrb[5].mxu0  ;;  %v374_v2 = vpop.f32.mrb[5].mxu1  ;;  %v3588_v4 = vsub.f32 %v2914_v63, %v3550_v47  ;;  %v3600_v33 = vsub.f32 %v2962_v0, %v3550_v47  ;;  %6303 = vst [vmem:[#allocation33_spill] sm:$0xff] %v3631_v61 }
 0x146   :  { %v3624_v56 = vsub.f32 %v214_v1, %v3550_v47  ;;  %v3633_v63 = vpop.xlane.xlu0 %873  ;;  %v3644_v1 = vsub.f32 %v374_v2, %v3550_v47 }
 0x147   :  { %589 = vmax.xlane.f32.xlu1 %v3572_v62  ;;  %6295 = vst [vmem:[#allocation25_spill] sm:$0xff] %v3588_v4  ;;  %6298 = vst [vmem:[#allocation28_spill] sm:$0xff] %v3600_v33 }
 0x148   :  { %587 = vmax.xlane.f32.xlu0 %v3576_v17  ;;  %v2917_v32 = vpop.f32.mrb[6].mxu0  ;;  %v2965_v6 = vpop.f32.mrb[6].mxu1  ;;  %6302 = vst [vmem:[#allocation32_spill] sm:$0xff] %v3624_v56  ;;  %6304 = vst [vmem:[#allocation34_spill] sm:$0xff] %v3633_v63 }
 0x149   :  { %v224_v7 = vpop.f32.mrb[7].mxu0  ;;  %v384_v8 = vpop.f32.mrb[7].mxu1  ;;  %v3596_v13 = vsub.f32 %v2917_v32, %v3550_v47  ;;  %6306 = vst [vmem:[#allocation36_spill] sm:$0xff] %v3644_v1  ;;  %v3653_v30 = vsub.f32 %v2965_v6, %v3550_v47 }
 0x14a   :  { %v3612_v11 = vsub.f32 %v224_v7, %v3550_v47  ;;  %v3671_v6 = vpop.xlane.xlu1 %783  ;;  %v3680_v61 = vsub.f32 %v384_v8, %v3550_v47 }
 0x14b   :  { %653 = vmax.xlane.f32.xlu1 %v3580_v18  ;;  %6297 = vst [vmem:[#allocation27_spill] sm:$0xff] %v3596_v13  ;;  %6307 = vst [vmem:[#allocation37_spill] sm:$0xff] %v3653_v30 }
 0x14c   :  { %593 = vmax.xlane.f32.xlu0 %v3588_v4  ;;  %v2920_v14 = vpop.f32.mrb[8].mxu0  ;;  %v2968_v16 = vpop.f32.mrb[8].mxu1  ;;  %6300 = vst [vmem:[#allocation30_spill] sm:$0xff] %v3612_v11  ;;  %6314 = vst [vmem:[#allocation44_spill] sm:$0xff] %v3680_v61 }
 0x14d   :  { %v234_v28 = vpop.f32.mrb[9].mxu0  ;;  %v394_v9 = vpop.f32.mrb[9].mxu1  ;;  %v3617_v48 = vsub.f32 %v2920_v14, %v3550_v47  ;;  %v3636_v0 = vsub.f32 %v2968_v16, %v3550_v47 }
 0x14e   :  { %v3662_v44 = vsub.f32 %v234_v28, %v3550_v47  ;;  %v3700_v42 = vsub.f32 %v394_v9, %v3550_v47 }
 0x14f   :  { %651 = vmax.xlane.f32.xlu1 %v3592_v10  ;;  %6301 = vst [vmem:[#allocation31_spill] sm:$0xff] %v3617_v48  ;;  %6305 = vst [vmem:[#allocation35_spill] sm:$0xff] %v3636_v0 }
 0x150   :  { %597 = vmax.xlane.f32.xlu0 %v3596_v13  ;;  %v2971_v20 = vpop.f32.mrb[10].mxu1  ;;  %v3607_v21 = vpop.f32.mrb[10].mxu0  ;;  %6310 = vst [vmem:[#allocation40_spill] sm:$0xff] %v3662_v44  ;;  %6320 = vst [vmem:[#allocation50_spill] sm:$0xff] %v3700_v42 }
 0x151   :  { %v3609_v23 = vpop.f32.mrb[11].mxu1  ;;  %v244_v24 = vpop.f32.mrb[11].mxu0  ;;  %v3676_v37 = vsub.f32 %v2971_v20, %v3550_v47 }
 0x152   :  { %v3697_v8 = vsub.f32 %v244_v24, %v3550_v47  ;;  %v3715_v24 = vpop.xlane.xlu1 %831 }
 0x153   :  { %657 = vmax.xlane.f32.xlu1 %v3600_v33  ;;  %6313 = vst [vmem:[#allocation43_spill] sm:$0xff] %v3676_v37  ;;  %6325 = vst [vmem:[#allocation55_spill] sm:$0xff] %v3715_v24  ;;  %v3732_v24 = vsub.f32 %v3609_v23, %v3550_v47 }
 0x154   :  { %595 = vmax.xlane.f32.xlu0 %v3612_v11  ;;  %v3619_v12 = vpop.f32.mrb[12].mxu1  ;;  %v3621_v51 = vpop.f32.mrb[12].mxu0  ;;  %6319 = vst [vmem:[#allocation49_spill] sm:$0xff] %v3697_v8 }
 0x155   :  { %v3626_v57 = vpop.f32.mrb[13].mxu0  ;;  %v3628_v58 = vpop.f32.mrb[13].mxu1  ;;  %6330 = vst [vmem:[#allocation60_spill] sm:$0xff] %v3732_v24 }
 0x157   :  { %591 = vmax.xlane.f32.xlu1 %v3624_v56 }
 0x158   :  { %601 = vmax.xlane.f32.xlu0 %v3617_v48  ;;  %v3639_v32 = vpop.f32.mrb[14].mxu1  ;;  %v3641_v7 = vpop.f32.mrb[14].mxu0 }
 0x159   :  { %v3646_v14 = vpop.f32.mrb[15].mxu1  ;;  %v3648_v36 = vpop.f32.mrb[15].mxu0 }
 0x15b   :  { %655 = vmax.xlane.f32.xlu1 %v3644_v1 }
 0x15c   :  { %665 = vmax.xlane.f32.xlu0 %v3636_v0  ;;  %v2980_v3 = vpop.f32.mrb[16].mxu1  ;;  %v2932_v16 = vpop.f32.mrb[16].mxu0 }
 0x15d   :  { %v3656_v48 = vsub.f32 %v2980_v3, %v3550_v47  ;;  %v434_v41 = vpop.f32.mrb[17].mxu1  ;;  %v3659_v2 = vsub.f32 %v2932_v16, %v3550_v47  ;;  %v274_v49 = vpop.f32.mrb[17].mxu0 }
 0x15e   :  { %v3665_v40 = vsub.f32 %v434_v41, %v3550_v47  ;;  %v3668_v0 = vsub.f32 %v274_v49, %v3550_v47  ;;  %v3673_v3 = vpop.xlane.xlu0 %781 }
 0x15f   :  { %6308 = vst [vmem:[#allocation38_spill] sm:$0xff] %v3656_v48  ;;  %6309 = vst [vmem:[#allocation39_spill] sm:$0xff] %v3659_v2  ;;  %661 = vmax.xlane.f32.xlu1 %v3653_v30 }
 0x160   :  { %6311 = vst [vmem:[#allocation41_spill] sm:$0xff] %v3665_v40  ;;  %6312 = vst [vmem:[#allocation42_spill] sm:$0xff] %v3668_v0  ;;  %599 = vmax.xlane.f32.xlu0 %v3662_v44  ;;  %v2935_v16 = vpop.f32.mrb[18].mxu0  ;;  %v2983_v28 = vpop.f32.mrb[18].mxu1 }
 0x161   :  { %v3683_v41 = vsub.f32 %v2935_v16, %v3550_v47  ;;  %v284_v49 = vpop.f32.mrb[19].mxu0  ;;  %v3686_v26 = vsub.f32 %v2983_v28, %v3550_v47  ;;  %v444_v63 = vpop.f32.mrb[19].mxu1 }
 0x162   :  { %v3689_v30 = vsub.f32 %v284_v49, %v3550_v47  ;;  %v3692_v20 = vsub.f32 %v444_v63, %v3550_v47  ;;  %v3717_v9 = vpop.xlane.xlu0 %829 }
 0x163   :  { %6315 = vst [vmem:[#allocation45_spill] sm:$0xff] %v3683_v41  ;;  %6316 = vst [vmem:[#allocation46_spill] sm:$0xff] %v3686_v26  ;;  %659 = vmax.xlane.f32.xlu1 %v3680_v61 }
 0x164   :  { %6317 = vst [vmem:[#allocation47_spill] sm:$0xff] %v3689_v30  ;;  %6318 = vst [vmem:[#allocation48_spill] sm:$0xff] %v3692_v20  ;;  %669 = vmax.xlane.f32.xlu0 %v3676_v37  ;;  %v2938_v16 = vpop.f32.mrb[20].mxu0  ;;  %v2986_v44 = vpop.f32.mrb[20].mxu1 }
 0x165   :  { %v3703_v28 = vsub.f32 %v2938_v16, %v3550_v47  ;;  %v294_v49 = vpop.f32.mrb[21].mxu0  ;;  %v3706_v33 = vsub.f32 %v2986_v44, %v3550_v47  ;;  %v454_v63 = vpop.f32.mrb[21].mxu1  ;;  %6326 = vst [vmem:[#allocation56_spill] sm:$0xff] %v3717_v9  ;;  %v3722_v44 = vsub.f32 %v3607_v21, %v3550_v47  ;;  %v3743_v21 = vsub.f32 %v3619_v12, %v3550_v47 }
 0x166   :  { %v3709_v61 = vsub.f32 %v294_v49, %v3550_v47  ;;  %v3712_v37 = vsub.f32 %v454_v63, %v3550_v47 }
 0x167   :  { %6321 = vst [vmem:[#allocation51_spill] sm:$0xff] %v3703_v28  ;;  %6322 = vst [vmem:[#allocation52_spill] sm:$0xff] %v3706_v33  ;;  %663 = vmax.xlane.f32.xlu1 %v3700_v42 }
 0x168   :  { %6323 = vst [vmem:[#allocation53_spill] sm:$0xff] %v3709_v61  ;;  %6324 = vst [vmem:[#allocation54_spill] sm:$0xff] %v3712_v37  ;;  %603 = vmax.xlane.f32.xlu0 %v3697_v8  ;;  %v2941_v16 = vpop.f32.mrb[22].mxu0  ;;  %v2989_v1 = vpop.f32.mrb[22].mxu1 }
 0x169   :  { %6327 = vst [vmem:[#allocation57_spill] sm:$0xff] %v3722_v44  ;;  %v3725_v49 = vsub.f32 %v2941_v16, %v3550_v47  ;;  %v304_v18 = vpop.f32.mrb[23].mxu0  ;;  %v3728_v63 = vsub.f32 %v2989_v1, %v3550_v47  ;;  %v464_v42 = vpop.f32.mrb[23].mxu1  ;;  %6333 = vst [vmem:[#allocation63_spill] sm:$0xff] %v3743_v21  ;;  %v3748_v1 = vsub.f32 %v3621_v51, %v3550_v47 }
 0x16a   :  { %v3735_v8 = vsub.f32 %v304_v18, %v3550_v47  ;;  %v3738_v9 = vsub.f32 %v464_v42, %v3550_v47  ;;  %v3765_v51 = vsub.f32 %v3628_v58, %v3550_v47  ;;  %v3780_v58 = vsub.f32 %v3626_v57, %v3550_v47 }
 0x16b   :  { %6328 = vst [vmem:[#allocation58_spill] sm:$0xff] %v3725_v49  ;;  %6329 = vst [vmem:[#allocation59_spill] sm:$0xff] %v3728_v63  ;;  %605 = vmax.xlane.f32.xlu1 %v3722_v44 }
 0x16c   :  { %6331 = vst [vmem:[#allocation61_spill] sm:$0xff] %v3735_v8  ;;  %6332 = vst [vmem:[#allocation62_spill] sm:$0xff] %v3738_v9  ;;  %667 = vmax.xlane.f32.xlu0 %v3732_v24  ;;  %v2944_v23 = vpop.f32.mrb[24].mxu0  ;;  %v2992_v16 = vpop.f32.mrb[24].mxu1 }
 0x16d   :  { %6334 = vst [vmem:[#allocation64_spill] sm:$0xff] %v3748_v1  ;;  %v3751_v18 = vsub.f32 %v2944_v23, %v3550_v47  ;;  %v314_v10 = vpop.f32.mrb[25].mxu0  ;;  %v3754_v42 = vsub.f32 %v2992_v16, %v3550_v47  ;;  %v474_v44 = vpop.f32.mrb[25].mxu1  ;;  %6339 = vst [vmem:[#allocation69_spill] sm:$0xff] %v3765_v51 }
 0x16e   :  { %v3757_v27 = vsub.f32 %v314_v10, %v3550_v47  ;;  %v3760_v12 = vsub.f32 %v474_v44, %v3550_v47  ;;  %v3767_v24 = vpop.xlane.xlu1 %891  ;;  %v3769_v23 = vpop.xlane.xlu0 %887  ;;  %6344 = vst [vmem:[#allocation74_spill] sm:$0xff] %v3780_v58 }
 0x16f   :  { %6335 = vst [vmem:[#allocation65_spill] sm:$0xff] %v3751_v18  ;;  %6336 = vst [vmem:[#allocation66_spill] sm:$0xff] %v3754_v42  ;;  %673 = vmax.xlane.f32.xlu1 %v3743_v21 }
 0x170   :  { %6337 = vst [vmem:[#allocation67_spill] sm:$0xff] %v3757_v27  ;;  %6338 = vst [vmem:[#allocation68_spill] sm:$0xff] %v3760_v12  ;;  %609 = vmax.xlane.f32.xlu0 %v3748_v1  ;;  %v2947_v16 = vpop.f32.mrb[26].mxu0  ;;  %v2995_v55 = vpop.f32.mrb[26].mxu1 }
 0x171   :  { %6340 = vst [vmem:[#allocation70_spill] sm:$0xff] %v3767_v24  ;;  %6341 = vst [vmem:[#allocation71_spill] sm:$0xff] %v3769_v23  ;;  %v3773_v10 = vsub.f32 %v2947_v16, %v3550_v47  ;;  %v3776_v44 = vsub.f32 %v2995_v55, %v3550_v47  ;;  %v484_v13 = vpop.f32.mrb[27].mxu1  ;;  %v324_v21 = vpop.f32.mrb[27].mxu0  ;;  %v3791_v16 = vsub.f32 %v3641_v7, %v3550_v47 }
 0x172   :  { %v3783_v24 = vsub.f32 %v484_v13, %v3550_v47  ;;  %v3786_v23 = vsub.f32 %v324_v21, %v3550_v47  ;;  %v3795_v55 = vsub.f32 %v3639_v32, %v3550_v47  ;;  %v3813_v32 = vsub.f32 %v3648_v36, %v3550_v47 }
 0x173   :  { %6342 = vst [vmem:[#allocation72_spill] sm:$0xff] %v3773_v10  ;;  %6343 = vst [vmem:[#allocation73_spill] sm:$0xff] %v3776_v44  ;;  %671 = vmax.xlane.f32.xlu1 %v3765_v51  ;;  %v3828_v36 = vsub.f32 %v3646_v14, %v3550_v47 }
 0x174   :  { %6345 = vst [vmem:[#allocation75_spill] sm:$0xff] %v3783_v24  ;;  %6346 = vst [vmem:[#allocation76_spill] sm:$0xff] %v3786_v23  ;;  %607 = vmax.xlane.f32.xlu0 %v3780_v58  ;;  %v2998_v57 = vpop.f32.mrb[28].mxu1  ;;  %v2950_v1 = vpop.f32.mrb[28].mxu0 }
 0x175   :  { %6347 = vst [vmem:[#allocation77_spill] sm:$0xff] %v3791_v16  ;;  %6348 = vst [vmem:[#allocation78_spill] sm:$0xff] %v3795_v55  ;;  %v3799_v13 = vsub.f32 %v2998_v57, %v3550_v47  ;;  %v3802_v21 = vsub.f32 %v2950_v1, %v3550_v47  ;;  %v334_v11 = vpop.f32.mrb[29].mxu0  ;;  %v494_v51 = vpop.f32.mrb[29].mxu1 }
 0x176   :  { %v3805_v4 = vsub.f32 %v334_v11, %v3550_v47  ;;  %v3808_v7 = vsub.f32 %v494_v51, %v3550_v47  ;;  %6353 = vst [vmem:[#allocation83_spill] sm:$0xff] %v3813_v32  ;;  %v3815_v58 = vpop.xlane.xlu1 %817  ;;  %v3817_v57 = vpop.xlane.xlu0 %845  ;;  %6357 = vst [vmem:[#allocation87_spill] sm:$0xff] %v3828_v36 }
 0x177   :  { %6349 = vst [vmem:[#allocation79_spill] sm:$0xff] %v3799_v13  ;;  %6350 = vst [vmem:[#allocation80_spill] sm:$0xff] %v3802_v21  ;;  %613 = vmax.xlane.f32.xlu1 %v3791_v16 }
 0x178   :  { %6351 = vst [vmem:[#allocation81_spill] sm:$0xff] %v3805_v4  ;;  %6352 = vst [vmem:[#allocation82_spill] sm:$0xff] %v3808_v7  ;;  %677 = vmax.xlane.f32.xlu0 %v3795_v55  ;;  %v2953_v1 = vpop.f32.mrb[30].mxu0  ;;  %v3001_v56 = vpop.f32.mrb[30].mxu1 }
 0x179   :  { %6354 = vst [vmem:[#allocation84_spill] sm:$0xff] %v3815_v58  ;;  %v3821_v11 = vsub.f32 %v2953_v1, %v3550_v47  ;;  %v3824_v51 = vsub.f32 %v3001_v56, %v3550_v47  ;;  %v504_v62 = vpop.f32.mrb[31].mxu1  ;;  %v344_v16 = vpop.f32.mrb[31].mxu0 }
 0x17a   :  { %v3831_v58 = vsub.f32 %v504_v62, %v3550_v47  ;;  %v3834_v17 = vsub.f32 %v344_v16, %v3550_v47  ;;  %v3838_v1 = vpop.xlane.xlu1 %877  ;;  %v3841_v56 = vpop.xlane.xlu0 %801 }
 0x17b   :  { %6355 = vst [vmem:[#allocation85_spill] sm:$0xff] %v3821_v11  ;;  %6356 = vst [vmem:[#allocation86_spill] sm:$0xff] %v3824_v51  ;;  %611 = vmax.xlane.f32.xlu1 %v3813_v32 }
 0x17c   :  { %6358 = vst [vmem:[#allocation88_spill] sm:$0xff] %v3831_v58  ;;  %6359 = vst [vmem:[#allocation89_spill] sm:$0xff] %v3834_v17  ;;  %675 = vmax.xlane.f32.xlu0 %v3828_v36 }
 0x17d   :  { %6360 = vst [vmem:[#allocation90_spill] sm:$0xff] %v3838_v1 }
 0x17e   :  { %v3846_v62 = vpop.xlane.xlu1 %785  ;;  %v3848_v47 = vpop.xlane.xlu0 %861 }
 0x17f   :  { %617 = vmax.xlane.f32.xlu1 %v3659_v2 }
 0x180   :  { %679 = vmax.xlane.f32.xlu0 %v3665_v40 }
 0x182   :  { %v3852_v14 = vpop.xlane.xlu1 %833  ;;  %v3855_v16 = vpop.xlane.xlu0 %847 }
 0x183   :  { %681 = vmax.xlane.f32.xlu1 %v3656_v48  ;;  %6361 = vst [vmem:[#allocation91_spill] sm:$0xff] %v3852_v14 }
 0x184   :  { %621 = vmax.xlane.f32.xlu0 %v3683_v41 }
 0x186   :  { %v3860_v48 = vpop.xlane.xlu1 %893  ;;  %v3862_v40 = vpop.xlane.xlu0 %803 }
 0x187   :  { %615 = vmax.xlane.f32.xlu1 %v3668_v0  ;;  %6362 = vst [vmem:[#allocation92_spill] sm:$0xff] %v3860_v48 }
 0x188   :  { %685 = vmax.xlane.f32.xlu0 %v3686_v26 }
 0x18a   :  { %v3866_v26 = vpop.xlane.xlu1 %819  ;;  %v3869_v55 = vpop.xlane.xlu0 %863 }
 0x18b   :  { %619 = vmax.xlane.f32.xlu1 %v3689_v30  ;;  %6363 = vst [vmem:[#allocation93_spill] sm:$0xff] %v3866_v26  ;;  %6364 = vst [vmem:[#allocation94_spill] sm:$0xff] %v3869_v55 }
 0x18c   :  { %683 = vmax.xlane.f32.xlu0 %v3692_v20 }
 0x18e   :  { %v3874_v20 = vpop.xlane.xlu1 %879  ;;  %v3876_v36 = vpop.xlane.xlu0 %849 }
 0x18f   :  { %631 = vmax.xlane.f32.xlu1 %v3757_v27  ;;  %6365 = vst [vmem:[#allocation95_spill] sm:$0xff] %v3874_v20 }
 0x190   :  { %625 = vmax.xlane.f32.xlu0 %v3703_v28 }
 0x193   :  { %695 = vmax.xlane.f32.xlu1 %v3760_v12 }
 0x194   :  { %689 = vmax.xlane.f32.xlu0 %v3706_v33  ;;  %v3880_v33 = vpop.xlane.xlu1 %805 }
 0x197   :  { %637 = vmax.xlane.f32.xlu1 %v3773_v10  ;;  %v3883_v10 = vpop.xlane.xlu0 %787 }
 0x198   :  { %623 = vmax.xlane.f32.xlu0 %v3709_v61 }
 0x19b   :  { %699 = vmax.xlane.f32.xlu1 %v3783_v24  ;;  %v3890_v27 = vpop.xlane.xlu0 %835 }
 0x19c   :  { %687 = vmax.xlane.f32.xlu0 %v3712_v37  ;;  %v3888_v37 = vpop.xlane.xlu1 %865  ;;  %6367 = vst [vmem:[#allocation97_spill] sm:$0xff] %v3890_v27 }
 0x19d   :  { %6366 = vst [vmem:[#allocation96_spill] sm:$0xff] %v3888_v37 }
 0x19f   :  { %705 = vmax.xlane.f32.xlu1 %v3799_v13  ;;  %v773_v13 = vmul.f32 %v3500_v19, %v3500_v19 }
 0x1a0   :  { %629 = vmax.xlane.f32.xlu0 %v3725_v49  ;;  %v3898_v49 = vpop.xlane.xlu0 %895 }
 0x1a1   :  { %6369 = vst [vmem:[#allocation99_spill] sm:$0xff] %v3898_v49 }
 0x1a3   :  { %639 = vmax.xlane.f32.xlu1 %v3805_v4  ;;  %v3896_v4 = vpop.xlane.xlu1 %821 }
 0x1a4   :  { %693 = vmax.xlane.f32.xlu0 %v3728_v63  ;;  %6368 = vst [vmem:[#allocation98_spill] sm:$0xff] %v3896_v4  ;;  %v774_v63 = vmul.f32 %v3506_v5, %v3506_v5  ;;  %v3907_v19 = vpop.xlane.xlu0 %851 }
 0x1a7   :  { %645 = vmax.xlane.f32.xlu1 %v3821_v11  ;;  %v3905_v11 = vpop.xlane.xlu1 %881 }
 0x1a8   :  { %627 = vmax.xlane.f32.xlu0 %v3735_v8  ;;  %6370 = vst [vmem:[#allocation100_spill] sm:$0xff] %v3905_v11 }
 0x1ab   :  { %709 = vmax.xlane.f32.xlu1 %v3824_v51 }
 0x1ac   :  { %691 = vmax.xlane.f32.xlu0 %v3738_v9  ;;  %v3910_v9 = vpop.xlane.xlu1 %837 }
 0x1ad   :  { %6371 = vst [vmem:[#allocation101_spill] sm:$0xff] %v3910_v9 }
 0x1af   :  { %899 = vadd.xlane.f32.xlu1 %v773_v13  ;;  %v790_v13 = vpop.xlane.xlu0 %789 }
 0x1b0   :  { %633 = vmax.xlane.f32.xlu0 %v3751_v18  ;;  %v3914_v51 = vpop.xlane.xlu1 %897 }
 0x1b1   :  { %6372 = vst [vmem:[#allocation102_spill] sm:$0xff] %v3914_v51 }
 0x1b3   :  { %707 = vmax.xlane.f32.xlu1 %v3831_v58  ;;  %v3916_v5 = vpop.xlane.xlu0 %867 }
 0x1b4   :  { %697 = vmax.xlane.f32.xlu0 %v3754_v42  ;;  %6373 = vst [vmem:[#allocation103_spill] sm:$0xff] %v3916_v5  ;;  %v3919_v58 = vpop.xlane.xlu1 %853 }
 0x1b7   :  { %901 = vadd.xlane.f32.xlu1 %v774_v63  ;;  %v3921_v18 = vpop.xlane.xlu0 %883  ;;  %v758_v63 = vmul.f32 %v3466_v54, %v3466_v54 }
 0x1b8   :  { %701 = vmax.xlane.f32.xlu0 %v3776_v44  ;;  %6374 = vst [vmem:[#allocation104_spill] sm:$0xff] %v3921_v18 }
 0x1bc   :  { %635 = vmax.xlane.f32.xlu0 %v3786_v23  ;;  %v766_v23 = vmul.f32 %v3485_v60, %v3485_v60 }
 0x1c0   :  { %641 = vmax.xlane.f32.xlu0 %v3802_v21 }
 0x1c4   :  { %703 = vmax.xlane.f32.xlu0 %v3808_v7 }
 0x1c8   :  { %643 = vmax.xlane.f32.xlu0 %v3834_v17 }
 0x1cc   :  { %v3928_v44 = vpop.xlane.xlu1 %585  ;;  %869 = vadd.xlane.f32.xlu0 %v758_v63 }
 0x1cd   :  { %v3930_v21 = vpop.xlane.xlu0 %583  ;;  %v904_v8 = vmul.f32 2.0, %v3928_v44 }
 0x1ce   :  { %v903_v7 = vmul.f32 2.0, %v3930_v21 }
 0x1cf   :  { %v968_v54 = vsub.f32 %v3533_v39, %v904_v8 }
 0x1d0   :  { %v3934_v24 = vpop.xlane.xlu1 %649  ;;  %885 = vadd.xlane.f32.xlu0 %v766_v23  ;;  %v967_v17 = vsub.f32 %v3515_v22, %v903_v7 }
 0x1d1   :  { %6375 = vst [vmem:[#allocation105_spill] sm:$0xff] %v3934_v24  ;;  %v3936_v28 = vpop.xlane.xlu0 %647  ;;  %v3944_v63 = vmax.f32 %v968_v54, 0.0  ;;  %v936_v14 = vmul.f32 2.0, %v3934_v24 }
 0x1d2   :  { %6376 = vst [vmem:[#allocation106_spill] sm:$0xff] %v3936_v28  ;;  %v3947_v12 = vmax.f32 %v967_v17, 0.0 }
 0x1d3   :  { %3056 = vrsqrt.f32 %v3944_v63  ;;  %vm1104_vm1 = vcmp.eq.f32.partialorder %v3944_v63, inf  ;;  %vm1106_vm2 = vcmp.eq.f32.partialorder %v3944_v63, 0.0 }
 0x1d4   :  { %v3940_v61 = vpop.xlane.xlu1 %589  ;;  %3058 = vrsqrt.f32 %v3947_v12  ;;  %vm1097_vm0 = vcmp.eq.f32.partialorder %v3947_v12, inf  ;;  %vm1099_vm4 = vcmp.eq.f32.partialorder %v3947_v12, 0.0 }
 0x1d5   :  { %v3942_v60 = vpop.xlane.xlu0 %587  ;;  %v906_v30 = vmul.f32 2.0, %v3940_v61 }
 0x1d6   :  { %v905_v42 = vmul.f32 2.0, %v3942_v60 }
 0x1d7   :  { %v970_v39 = vsub.f32 %v3673_v3, %v906_v30 }
 0x1d8   :  { %v969_v23 = vsub.f32 %v3523_v34, %v905_v42  ;;  %v3951_v41 = vpop.xlane.xlu1 %653 }
 0x1d9   :  { %6377 = vst [vmem:[#allocation107_spill] sm:$0xff] %v3951_v41  ;;  %v3953_v2 = vpop.xlane.xlu0 %593  ;;  %v3967_v42 = vmax.f32 %v970_v39, 0.0 }
 0x1da   :  { %v3956_v22 = vmax.f32 %v969_v23, 0.0  ;;  %v908_v8 = vmul.f32 2.0, %v3953_v2 }
 0x1db   :  { %vm1118_vm6 = vcmp.eq.f32.partialorder %v3967_v42, inf  ;;  %vm1120_vm7 = vcmp.eq.f32.partialorder %v3967_v42, 0.0 }
 0x1dc   :  { %v3961_v17 = vpop.xlane.xlu1 %651  ;;  %3060 = vrsqrt.f32 %v3956_v22  ;;  %v972_v54 = vsub.f32 %v3846_v62, %v908_v8  ;;  %v935_v8 = vmul.f32 2.0, %v3936_v28  ;;  %vm1111_vm3 = vcmp.eq.f32.partialorder %v3956_v22, inf }
 0x1dd   :  { %6378 = vst [vmem:[#allocation108_spill] sm:$0xff] %v3961_v17  ;;  %v3964_v7 = vpop.xlane.xlu0 %597  ;;  %3062 = vrsqrt.f32 %v3967_v42  ;;  %v3057_v49 = vpop.eup %3056  ;;  %v937_v32 = vmul.f32 2.0, %v3961_v17  ;;  %vm1113_vm5 = vcmp.eq.f32.partialorder %v3956_v22, 0.0 }
 0x1de   :  { %6379 = vst [vmem:[#allocation109_spill] sm:$0xff] %v3964_v7  ;;  %v910_v34 = vmul.f32 2.0, %v3964_v7  ;;  %v3976_v3 = vmax.f32 %v972_v54, 0.0  ;;  %v3059_v51 = vpop.eup %3058  ;;  %v1103_v18 = vmul.f32 %v3057_v49, %v3944_v63 }
 0x1df   :  { %v1001_v49 = vsub.f32 %v3604_v15, %v937_v32 }
 0x1e0   :  { %v3970_v23 = vpop.xlane.xlu1 %657  ;;  %v974_v27 = vsub.f32 %v790_v13, %v910_v34  ;;  %3064 = vrsqrt.f32 %v3976_v3  ;;  %vm1132_vm8 = vcmp.eq.f32.partialorder %v3976_v3, inf  ;;  %vm1134_vm12 = vcmp.eq.f32.partialorder %v3976_v3, 0.0 }
 0x1e1   :  { %6380 = vst [vmem:[#allocation110_spill] sm:$0xff] %v3970_v23  ;;  %v3972_v0 = vpop.xlane.xlu0 %595  ;;  %v4029_v4 = vmax.f32 %v1001_v49, 0.0 }
 0x1e2   :  { %v909_v30 = vmul.f32 2.0, %v3972_v0  ;;  %v3984_v48 = vmax.f32 %v974_v27, 0.0 }
 0x1e4   :  { %v973_v9 = vsub.f32 %v3883_v10, %v909_v30  ;;  %v3980_v39 = vpop.xlane.xlu1 %591  ;;  %v1096_v10 = vmul.f32 %v3059_v51, %v3947_v12  ;;  %v1000_v30 = vsub.f32 %v3545_v46, %v936_v14  ;;  %vm1146_vm13 = vcmp.eq.f32.partialorder %v3984_v48, inf }
 0x1e5   :  { %v907_v62 = vmul.f32 2.0, %v3980_v39  ;;  %vm1148_vm15 = vcmp.eq.f32.partialorder %v3984_v48, 0.0 }
 0x1e6   :  { %v3986_v13 = vmax.f32 %v973_v9, 0.0  ;;  %v3061_v34 = vpop.eup %3060  ;;  %v999_v9 = vsub.f32 %v3521_v31, %v935_v8  ;;  %v4006_v46 = vmax.f32 %v1000_v30, 0.0  ;;  %v1098_v51 = vsel %vm1097_vm0, %v3947_v12, %v1096_v10 }
 0x1e7   :  { %v971_v54 = vsub.f32 %v3671_v6, %v907_v62  ;;  %v1110_v6 = vmul.f32 %v3061_v34, %v3956_v22  ;;  %v1105_v31 = vsel %vm1104_vm1, %v3944_v63, %v1103_v18  ;;  %v3063_v14 = vpop.eup %3062  ;;  %v938_v62 = vmul.f32 2.0, %v3951_v41 }
 0x1e8   :  { %v3994_v26 = vpop.xlane.xlu1 %655  ;;  %3066 = vrsqrt.f32 %v3986_v13  ;;  %v1100_v8 = vand.u32 2147483648, %v3947_v12  ;;  %v1107_v34 = vand.u32 2147483648, %v3944_v63  ;;  %v4017_v20 = vmax.f32 %v999_v9, 0.0 }
 0x1e9   :  { %6381 = vst [vmem:[#allocation111_spill] sm:$0xff] %v3994_v26  ;;  %v3997_v27 = vmax.f32 %v971_v54, 0.0  ;;  %3068 = vrsqrt.f32 %v3984_v48  ;;  %v1112_v15 = vsel %vm1111_vm3, %v3956_v22, %v1110_v6  ;;  %v939_v32 = vmul.f32 2.0, %v3994_v26 }
 0x1ea   :  { %v4022_v18 = vsel %vm1099_vm4, %v1100_v8, %v1098_v51  ;;  %v4026_v10 = vsel %vm1106_vm2, %v1107_v34, %v1105_v31  ;;  %v1114_v30 = vand.u32 2147483648, %v3956_v22  ;;  %v1117_v9 = vmul.f32 %v3063_v14, %v3967_v42  ;;  %v3065_v11 = vpop.eup %3064  ;;  %v4044_v14 = vpop.xlane.xlu0 %601 }
 0x1eb   :  { %3070 = vrsqrt.f32 %v3997_v27  ;;  %v1002_v6 = vsub.f32 %v3817_v57, %v938_v62  ;;  %v940_v63 = vmul.f32 2.0, %v3970_v23  ;;  %v1640_v49 = vadd.f32 %v4026_v10, %v4022_v18  ;;  %6383 = vst [vmem:[#allocation113_spill] sm:$0xff] %v4044_v14 }
 0x1ec   :  { %v4015_v54 = vpop.xlane.xlu1 %661  ;;  %3072 = vrsqrt.f32 %v4006_v46  ;;  %v4036_v51 = vsel %vm1113_vm5, %v1114_v30, %v1112_v15  ;;  %v1003_v22 = vsub.f32 %v3855_v16, %v939_v32  ;;  %v1119_v57 = vsel %vm1118_vm6, %v3967_v42, %v1117_v9 }
 0x1ed   :  { %6382 = vst [vmem:[#allocation112_spill] sm:$0xff] %v4015_v54  ;;  %v942_v12 = vmul.f32 2.0, %v4015_v54  ;;  %3074 = vrsqrt.f32 %v4017_v20  ;;  %v1131_v62 = vmul.f32 %v3065_v11, %v3976_v3  ;;  %v1641_v15 = vadd.f32 %v1640_v49, %v4036_v51 }
 0x1ee   :  { %3076 = vrsqrt.f32 %v4029_v4  ;;  %v4051_v1 = vmax.f32 %v1002_v6, 0.0  ;;  %v1121_v16 = vand.u32 2147483648, %v3967_v42  ;;  %v4059_v9 = vmax.f32 %v1003_v22, 0.0 }
 0x1ef   :  { %v1006_v8 = vsub.f32 %v3919_v58, %v942_v12  ;;  %v1004_v58 = vsub.f32 %v3876_v36, %v940_v63  ;;  %vm1125_vm9 = vcmp.eq.f32.partialorder %v3997_v27, inf  ;;  %vm1127_vm10 = vcmp.eq.f32.partialorder %v3997_v27, 0.0 }
 0x1f0   :  { %v4061_v11 = vsel %vm1120_vm7, %v1121_v16, %v1119_v57  ;;  %v1128_v6 = vand.u32 2147483648, %v3997_v27  ;;  %v1133_v49 = vsel %vm1132_vm8, %v3976_v3, %v1131_v62  ;;  %3078 = vrsqrt.f32 %v4051_v1  ;;  %v4075_v57 = vpop.xlane.xlu0 %665 }
 0x1f1   :  { %v1642_v36 = vadd.f32 %v1641_v15, %v4061_v11  ;;  %v1135_v22 = vand.u32 2147483648, %v3976_v3  ;;  %vm1139_vm11 = vcmp.eq.f32.partialorder %v3986_v13, inf  ;;  %6385 = vst [vmem:[#allocation115_spill] sm:$0xff] %v4075_v57  ;;  %3080 = vrsqrt.f32 %v4059_v9 }
 0x1f2   :  { %v3067_v31 = vpop.eup %3066  ;;  %v1142_v16 = vand.u32 2147483648, %v3986_v13  ;;  %vm1141_vm14 = vcmp.eq.f32.partialorder %v3986_v13, 0.0  ;;  %v4098_v54 = vmax.f32 %v1006_v8, 0.0  ;;  %vm1328_vm0 = vcmp.eq.f32.partialorder %v4006_v46, inf }
 0x1f3   :  { %v3069_v34 = vpop.eup %3068  ;;  %v1138_v12 = vmul.f32 %v3067_v31, %v3986_v13  ;;  %vm1321_vm1 = vcmp.eq.f32.partialorder %v4017_v20, inf  ;;  %vm1335_vm2 = vcmp.eq.f32.partialorder %v4029_v4, inf  ;;  %vm1323_vm3 = vcmp.eq.f32.partialorder %v4017_v20, 0.0 }
 0x1f4   :  { %v1145_v42 = vmul.f32 %v3069_v34, %v3984_v48  ;;  %vm1330_vm4 = vcmp.eq.f32.partialorder %v4006_v46, 0.0  ;;  %vm1337_vm5 = vcmp.eq.f32.partialorder %v4029_v4, 0.0  ;;  %vm1342_vm6 = vcmp.eq.f32.partialorder %v4051_v1, inf }
 0x1f5   :  { %v3071_v30 = vpop.eup %3070  ;;  %v1140_v34 = vsel %vm1139_vm11, %v3986_v13, %v1138_v12  ;;  %vm1349_vm7 = vcmp.eq.f32.partialorder %v4059_v9, inf  ;;  %vm1344_vm8 = vcmp.eq.f32.partialorder %v4051_v1, 0.0 }
 0x1f6   :  { %v1124_v32 = vmul.f32 %v3071_v30, %v3997_v27  ;;  %v3073_v15 = vpop.eup %3072  ;;  %v4083_v30 = vsel %vm1134_vm12, %v1135_v22, %v1133_v49  ;;  %v1147_v3 = vsel %vm1146_vm13, %v3984_v48, %v1145_v42  ;;  %vm1370_vm12 = vcmp.eq.f32.partialorder %v4098_v54, inf }
 0x1f7   :  { %v1327_v49 = vmul.f32 %v3073_v15, %v4006_v46 }
 0x1f8   :  { %v1126_v63 = vsel %vm1125_vm9, %v3997_v27, %v1124_v32  ;;  %v4081_v27 = vmax.f32 %v1004_v58, 0.0  ;;  %v3075_v32 = vpop.eup %3074  ;;  %v1149_v58 = vand.u32 2147483648, %v3984_v48  ;;  %vm1351_vm9 = vcmp.eq.f32.partialorder %v4059_v9, 0.0 }
 0x1f9   :  { %v4072_v31 = vsel %vm1127_vm10, %v1128_v6, %v1126_v63  ;;  %v4090_v6 = vpop.xlane.xlu1 %659  ;;  %v3077_v63 = vpop.eup %3076  ;;  %v1320_v13 = vmul.f32 %v3075_v32, %v4017_v20 }
 0x1fa   :  { %6384 = vst [vmem:[#allocation114_spill] sm:$0xff] %v4072_v31  ;;  %v1643_v62 = vadd.f32 %v1642_v36, %v4072_v31  ;;  %6386 = vst [vmem:[#allocation116_spill] sm:$0xff] %v4090_v6  ;;  %v4092_v36 = vsel %vm1141_vm14, %v1142_v16, %v1140_v34  ;;  %3082 = vrsqrt.f32 %v4081_v27  ;;  %v4102_v42 = vsel %vm1148_vm15, %v1149_v58, %v1147_v3  ;;  %v3079_v32 = vpop.eup %3078 }
 0x1fb   :  { %6387 = vst [vmem:[#allocation117_spill] sm:$0xff] %v4102_v42  ;;  %v941_v34 = vmul.f32 2.0, %v4090_v6  ;;  %v1334_v15 = vmul.f32 %v3077_v63, %v4029_v4  ;;  %3084 = vrsqrt.f32 %v4098_v54  ;;  %v1322_v3 = vsel %vm1321_vm1, %v4017_v20, %v1320_v13  ;;  %v3081_v6 = vpop.eup %3080 }
 0x1fc   :  { %v1644_v12 = vadd.f32 %v1643_v62, %v4083_v30  ;;  %v4104_v62 = vpop.xlane.xlu0 %599  ;;  %v1324_v63 = vand.u32 2147483648, %v4017_v20  ;;  %v1341_v26 = vmul.f32 %v3079_v32, %v4051_v1  ;;  %vm1356_vm10 = vcmp.eq.f32.partialorder %v4081_v27, inf }
 0x1fd   :  { %6388 = vst [vmem:[#allocation118_spill] sm:$0xff] %v4104_v62  ;;  %v1005_v48 = vsub.f32 %v3907_v19, %v941_v34  ;;  %v1336_v34 = vsel %vm1335_vm2, %v4029_v4, %v1334_v15  ;;  %vm1358_vm11 = vcmp.eq.f32.partialorder %v4081_v27, 0.0  ;;  %vm1372_vm15 = vcmp.eq.f32.partialorder %v4098_v54, 0.0 }
 0x1fe   :  { %v1645_v22 = vadd.f32 %v1644_v12, %v4092_v36  ;;  %v1329_v12 = vsel %vm1328_vm0, %v4006_v46, %v1327_v49  ;;  %v1338_v49 = vand.u32 2147483648, %v4029_v4  ;;  %v1343_v32 = vsel %vm1342_vm6, %v4051_v1, %v1341_v26 }
 0x1ff   :  { %v4115_v58 = vmax.f32 %v1005_v48, 0.0  ;;  %v4126_v48 = vsel %vm1323_vm3, %v1324_v63, %v1322_v3  ;;  %v1345_v63 = vand.u32 2147483648, %v4051_v1 }
 0x200   :  { %v1646_v16 = vadd.f32 %v1645_v22, %v4102_v42  ;;  %v1331_v22 = vand.u32 2147483648, %v4006_v46  ;;  %v4123_v23 = vpop.xlane.xlu0 %669  ;;  %v4134_v46 = vsel %vm1337_vm5, %v1338_v49, %v1336_v34  ;;  %v4148_v49 = vpop.xlane.xlu1 %663 }
 0x201   :  { %6389 = vst [vmem:[#allocation119_spill] sm:$0xff] %v4123_v23  ;;  %3086 = vrsqrt.f32 %v4115_v58  ;;  %6391 = vst [vmem:[#allocation121_spill] sm:$0xff] %v4148_v49  ;;  %vm1363_vm13 = vcmp.eq.f32.partialorder %v4115_v58, inf  ;;  %vm1365_vm14 = vcmp.eq.f32.partialorder %v4115_v58, 0.0 }
 0x202   :  { %v1647_v8 = vrot.slane %v1646_v16, 4  ;;  %v4128_v5 = vsel %vm1330_vm4, %v1331_v22, %v1329_v12 }
 0x204   :  { %v1648_v19 = vadd.f32 %v1647_v8, %v1646_v16  ;;  %v1348_v16 = vmul.f32 %v3081_v6, %v4059_v9  ;;  %v3083_v15 = vpop.eup %3082  ;;  %v1692_v8 = vadd.f32 %v4128_v5, %v4126_v48  ;;  %v4143_v3 = vpop.xlane.xlu0 %603 }
 0x205   :  { %6390 = vst [vmem:[#allocation120_spill] sm:$0xff] %v4143_v3  ;;  %v3085_v12 = vpop.eup %3084  ;;  %v1355_v34 = vmul.f32 %v3083_v15, %v4081_v27  ;;  %v4176_v17 = vpop.xlane.xlu1 %605 }
 0x206   :  { %v1649_v13 = vrot.slane %v1648_v19, 2  ;;  %v1350_v4 = vsel %vm1349_vm7, %v4059_v9, %v1348_v16  ;;  %v1693_v6 = vadd.f32 %v1692_v8, %v4134_v46  ;;  %vm2248_vm7 = vcmp.ge.f32.partialorder %v3556_v52, %v3930_v21  ;;  %v6407_v21 = vld [vmem:[#allocation114_spill] sm:$0xff] }
 0x207   :  { %v1357_v8 = vsel %vm1356_vm10, %v4081_v27, %v1355_v34  ;;  %v912_v34 = vmul.f32 2.0, %v4044_v14 }
 0x208   :  { %v1650_v20 = vadd.f32 %v1649_v13, %v1648_v19  ;;  %v1352_v19 = vand.u32 2147483648, %v4059_v9  ;;  %v4154_v13 = vsel %vm1344_vm8, %v1345_v63, %v1343_v32  ;;  %vm2249_vm8 = vcmp.ge.f32.partialorder %v3553_v50, %v3928_v44 }
 0x20a   :  { %v1651_v41 = vrot.slane %v1650_v20, 1  ;;  %v4156_v16 = vsel %vm1351_vm9, %v1352_v19, %v1350_v4  ;;  %v1359_v4 = vand.u32 2147483648, %v4081_v27 }
 0x20b   :  { %v3087_v32 = vpop.eup %3086 }
 0x20c   :  { %v1652_v22 = vadd.f32 %v1651_v41, %v1650_v20  ;;  %v1369_v41 = vmul.f32 %v3085_v12, %v4098_v54  ;;  %v1694_v20 = vadd.f32 %v1693_v6, %v4154_v13  ;;  %v4179_v24 = vsel %vm1358_vm11, %v1359_v4, %v1357_v8 }
 0x20d   :  { %v1362_v55 = vmul.f32 %v3087_v32, %v4115_v58  ;;  %v1373_v32 = vand.u32 2147483648, %v4098_v54 }
 0x20e   :  { %v4152_v26 = vmul.f32 0.015625, %v1652_v22  ;;  %v1695_v12 = vadd.f32 %v1694_v20, %v4156_v16  ;;  %v4171_v22 = vpop.xlane.xlu0 %667  ;;  %v1371_v28 = vsel %vm1370_vm12, %v4098_v54, %v1369_v41 }
 0x20f   :  { %6392 = vst [vmem:[#allocation122_spill] sm:$0xff] %v4171_v22  ;;  %v1364_v14 = vsel %vm1363_vm13, %v4115_v58, %v1362_v55  ;;  %v976_v55 = vsub.f32 %v3525_v35, %v912_v34  ;;  %v914_v35 = vmul.f32 2.0, %v4176_v17 }
 0x210   :  { %v1752_v15 = vsub.f32 %v4022_v18, %v4152_v26  ;;  %v1753_v1 = vsub.f32 %v4026_v10, %v4152_v26  ;;  %v1754_v9 = vsub.f32 %v4036_v51, %v4152_v26  ;;  %v1755_v6 = vsub.f32 %v4061_v11, %v4152_v26 }
 0x211   :  { %v1756_v27 = vsub.f32 %v4072_v31, %v4152_v26  ;;  %v1757_v8 = vsub.f32 %v4083_v30, %v4152_v26  ;;  %v1759_v54 = vsub.f32 %v4102_v42, %v4152_v26 }
 0x212   :  { %v1880_v63 = vmul.f32 %v1752_v15, %v1752_v15  ;;  %v1881_v19 = vmul.f32 %v1753_v1, %v1753_v1  ;;  %v1882_v20 = vmul.f32 %v1754_v9, %v1754_v9  ;;  %v1696_v15 = vadd.f32 %v1695_v12, %v4179_v24 }
 0x213   :  { %v1366_v1 = vand.u32 2147483648, %v4115_v58  ;;  %v1883_v4 = vmul.f32 %v1755_v6, %v1755_v6  ;;  %v911_v9 = vmul.f32 2.0, %v4104_v62  ;;  %v1884_v7 = vmul.f32 %v1756_v27, %v1756_v27 }
 0x214   :  { %v1944_v37 = vadd.f32 %v1881_v19, %v1880_v63  ;;  %v4197_v63 = vpop.xlane.xlu0 %609  ;;  %v1758_v19 = vsub.f32 %v4092_v36, %v4152_v26  ;;  %v4205_v58 = vsel %vm1372_vm15, %v1373_v32, %v1371_v28  ;;  %v1887_v34 = vmul.f32 %v1759_v54, %v1759_v54 }
 0x215   :  { %v4195_v12 = vsel %vm1365_vm14, %v1366_v1, %v1364_v14  ;;  %6393 = vst [vmem:[#allocation123_spill] sm:$0xff] %v4197_v63  ;;  %v1885_v14 = vmul.f32 %v1757_v8, %v1757_v8  ;;  %v975_v27 = vsub.f32 %v3511_v25, %v911_v9 }
 0x216   :  { %v1945_v41 = vadd.f32 %v1944_v37, %v1882_v20  ;;  %v1697_v6 = vadd.f32 %v1696_v15, %v4195_v12  ;;  %v4202_v37 = vpop.xlane.xlu1 %673  ;;  %v913_v20 = vmul.f32 2.0, %v4143_v3  ;;  %v4216_v3 = vmax.f32 %v976_v55, 0.0 }
 0x217   :  { %6394 = vst [vmem:[#allocation124_spill] sm:$0xff] %v4202_v37 }
 0x218   :  { %v1946_v31 = vadd.f32 %v1945_v41, %v1883_v4  ;;  %v1698_v62 = vadd.f32 %v1697_v6, %v4205_v58  ;;  %v1886_v4 = vmul.f32 %v1758_v19, %v1758_v19  ;;  %v977_v37 = vsub.f32 %v3517_v29, %v913_v20  ;;  %v4214_v28 = vpop.xlane.xlu0 %607 }
 0x219   :  { %6395 = vst [vmem:[#allocation125_spill] sm:$0xff] %v4214_v28  ;;  %v915_v9 = vmul.f32 2.0, %v4214_v28  ;;  %v944_v19 = vmul.f32 2.0, %v4075_v57  ;;  %v978_v6 = vsub.f32 %v3564_v43, %v914_v35  ;;  %3088 = vrsqrt.f32 %v4216_v3 }
 0x21a   :  { %v1947_v1 = vadd.f32 %v1946_v31, %v1884_v7  ;;  %v1699_v15 = vrot.slane %v1698_v62, 4  ;;  %v4218_v8 = vpop.xlane.xlu1 %671  ;;  %v4220_v7 = vmax.f32 %v975_v27, 0.0  ;;  %v4224_v29 = vmax.f32 %v977_v37, 0.0 }
 0x21b   :  { %6396 = vst [vmem:[#allocation126_spill] sm:$0xff] %v4218_v8  ;;  %v1008_v27 = vsub.f32 %v3531_v38, %v944_v19  ;;  %v4234_v37 = vmax.f32 %v978_v6, 0.0  ;;  %v916_v43 = vmul.f32 2.0, %v4197_v63  ;;  %vm1160_vm0 = vcmp.eq.f32.partialorder %v4216_v3, inf }
 0x21c   :  { %v1948_v41 = vadd.f32 %v1947_v1, %v1885_v14  ;;  %v1700_v42 = vadd.f32 %v1699_v15, %v1698_v62  ;;  %3090 = vrsqrt.f32 %v4220_v7  ;;  %v979_v14 = vsub.f32 %v3543_v45, %v915_v9 }
 0x21d   :  { %3092 = vrsqrt.f32 %v4224_v29  ;;  %v4242_v45 = vmax.f32 %v1008_v27, 0.0  ;;  %v980_v38 = vsub.f32 %v3841_v56, %v916_v43  ;;  %v943_v9 = vmul.f32 2.0, %v4148_v49 }
 0x21e   :  { %v1949_v32 = vadd.f32 %v1948_v41, %v1886_v4  ;;  %v1701_v25 = vrot.slane %v1700_v42, 2  ;;  %v4230_v1 = vpop.xlane.xlu1 %613  ;;  %3094 = vrsqrt.f32 %v4234_v37  ;;  %v1163_v19 = vand.u32 2147483648, %v4216_v3 }
 0x21f   :  { %6397 = vst [vmem:[#allocation127_spill] sm:$0xff] %v4230_v1  ;;  %v4261_v43 = vmul.f32 2.0, %v4123_v23  ;;  %vm1153_vm1 = vcmp.eq.f32.partialorder %v4220_v7, inf  ;;  %vm1167_vm2 = vcmp.eq.f32.partialorder %v4224_v29, inf  ;;  %vm1155_vm3 = vcmp.eq.f32.partialorder %v4220_v7, 0.0 }
 0x220   :  { %v1950_v31 = vadd.f32 %v1949_v32, %v1887_v34  ;;  %v1702_v55 = vadd.f32 %v1701_v25, %v1700_v42  ;;  %v918_v42 = vmul.f32 2.0, %v4230_v1  ;;  %v4240_v34 = vmax.f32 %v979_v14, 0.0 }
 0x221   :  { %vm1162_vm4 = vcmp.eq.f32.partialorder %v4216_v3, 0.0  ;;  %vm1169_vm5 = vcmp.eq.f32.partialorder %v4224_v29, 0.0  ;;  %vm1174_vm6 = vcmp.eq.f32.partialorder %v4234_v37, inf  ;;  %vm1176_vm9 = vcmp.eq.f32.partialorder %v4234_v37, 0.0 }
 0x222   :  { %v1951_v20 = vrot.slane %v1950_v31, 4  ;;  %v1703_v54 = vrot.slane %v1702_v55, 1  ;;  %3096 = vrsqrt.f32 %v4240_v34  ;;  %vm1181_vm14 = vcmp.eq.f32.partialorder %v4240_v34, inf }
 0x223   :  { %3098 = vrsqrt.f32 %v4242_v45 }
 0x224   :  { %v1952_v62 = vadd.f32 %v1951_v20, %v1950_v31  ;;  %v1704_v41 = vadd.f32 %v1703_v54, %v1702_v55  ;;  %v982_v20 = vsub.f32 %v3880_v33, %v918_v42  ;;  %v3089_v55 = vpop.eup %3088  ;;  %v1007_v42 = vsub.f32 %v3584_v59, %v943_v9 }
 0x226   :  { %v1953_v4 = vrot.slane %v1952_v62, 2  ;;  %v4238_v35 = vmul.f32 0.015625, %v1704_v41  ;;  %v3091_v14 = vpop.eup %3090  ;;  %v4272_v57 = vmax.f32 %v982_v20, 0.0  ;;  %v4283_v20 = vmax.f32 %v1007_v42, 0.0 }
 0x228   :  { %v1954_v15 = vadd.f32 %v1953_v4, %v1952_v62  ;;  %v1784_v31 = vsub.f32 %v4126_v48, %v4238_v35  ;;  %v1785_v25 = vsub.f32 %v4128_v5, %v4238_v35  ;;  %v1786_v6 = vsub.f32 %v4134_v46, %v4238_v35 }
 0x229   :  { %v1787_v27 = vsub.f32 %v4154_v13, %v4238_v35  ;;  %v4263_v4 = vmax.f32 %v980_v38, 0.0  ;;  %v1159_v38 = vmul.f32 %v3089_v55, %v4216_v3  ;;  %v1789_v59 = vsub.f32 %v4179_v24, %v4238_v35 }
 0x22a   :  { %v1955_v32 = vrot.slane %v1954_v15, 1  ;;  %v1912_v62 = vmul.f32 %v1784_v31, %v1784_v31  ;;  %v1913_v54 = vmul.f32 %v1785_v25, %v1785_v25  ;;  %v1788_v31 = vsub.f32 %v4156_v16, %v4238_v35 }
 0x22b   :  { %v1914_v25 = vmul.f32 %v1786_v6, %v1786_v6  ;;  %v1915_v9 = vmul.f32 %v1787_v27, %v1787_v27  ;;  %v1790_v49 = vsub.f32 %v4195_v12, %v4238_v35 }
 0x22c   :  { %v1956_v56 = vadd.f32 %v1955_v32, %v1954_v15  ;;  %v1996_v33 = vadd.f32 %v1913_v54, %v1912_v62  ;;  %v945_v15 = vmul.f32 2.0, %v4171_v22  ;;  %v3093_v32 = vpop.eup %3092  ;;  %v1156_v62 = vand.u32 2147483648, %v4220_v7  ;;  %v4287_v22 = vpop.xlane.xlu1 %611 }
 0x22d   :  { %v1166_v23 = vmul.f32 %v3093_v32, %v4224_v29  ;;  %6398 = vst [vmem:[#allocation128_spill] sm:$0xff] %v4287_v22  ;;  %v1916_v1 = vmul.f32 %v1788_v31, %v1788_v31  ;;  %v1917_v32 = vmul.f32 %v1789_v59, %v1789_v59  ;;  %v1918_v63 = vmul.f32 %v1790_v49, %v1790_v49 }
 0x22e   :  { %v4265_v41 = vmul.f32 0.015873017, %v1956_v56  ;;  %v1152_v56 = vmul.f32 %v3091_v14, %v4220_v7  ;;  %v1997_v54 = vadd.f32 %v1996_v33, %v1914_v25  ;;  %v1009_v55 = vsub.f32 %v3562_v53, %v945_v15  ;;  %v3095_v14 = vpop.eup %3094 }
 0x22f   :  { %v1170_v33 = vand.u32 2147483648, %v4224_v29  ;;  %v1161_v53 = vsel %vm1160_vm0, %v4216_v3, %v1159_v38  ;;  %v1791_v15 = vsub.f32 %v4205_v58, %v4238_v35  ;;  %v917_v25 = vmul.f32 2.0, %v4287_v22 }
 0x230   :  { %3100 = vrsqrt.f32 %v4265_v41  ;;  %v1998_v27 = vadd.f32 %v1997_v54, %v1915_v9  ;;  %v1154_v42 = vsel %vm1153_vm1, %v4220_v7, %v1152_v56  ;;  %v3097_v9 = vpop.eup %3096  ;;  %v1173_v54 = vmul.f32 %v3095_v14, %v4234_v37 }
 0x231   :  { %3102 = vrsqrt.f32 %v4263_v4  ;;  %v4304_v6 = vmax.f32 %v1009_v55, 0.0  ;;  %v4308_v56 = vpop.eup %3098  ;;  %v1168_v59 = vsel %vm1167_vm2, %v4224_v29, %v1166_v23  ;;  %v4316_v22 = vsel %vm1155_vm3, %v1156_v62, %v1154_v42  ;;  %v6400_v42 = vld [vmem:[#allocation22_spill] sm:$0xff] }
 0x232   :  { %3104 = vrsqrt.f32 %v4272_v57  ;;  %v1999_v31 = vadd.f32 %v1998_v27, %v1916_v1  ;;  %v981_v1 = vsub.f32 %v3862_v40, %v917_v25  ;;  %v4314_v27 = vpop.xlane.xlu0 %677  ;;  %v4318_v55 = vsel %vm1162_vm4, %v1163_v19, %v1161_v53 }
 0x233   :  { %6399 = vst [vmem:[#allocation129_spill] sm:$0xff] %v4314_v27  ;;  %v1919_v3 = vmul.f32 %v1791_v15, %v1791_v15  ;;  %v1180_v7 = vmul.f32 %v3097_v9, %v4240_v34  ;;  %v4329_v62 = vsel %vm1169_vm5, %v1170_v33, %v1168_v59  ;;  %v1175_v19 = vsel %vm1174_vm6, %v4234_v37, %v1173_v54  ;;  %v6401_v33 = vld [vmem:[#allocation21_spill] sm:$0xff] }
 0x234   :  { %v2000_v38 = vadd.f32 %v1999_v31, %v1917_v32  ;;  %v4325_v23 = vmax.f32 %v981_v1, 0.0  ;;  %v1177_v29 = vand.u32 2147483648, %v4234_v37  ;;  %vm2250_vm10 = vcmp.ge.f32.partialorder %v6400_v42, %v3942_v60  ;;  %v6402_v1 = vld [vmem:[#allocation32_spill] sm:$0xff]  ;;  %v6405_v37 = vld [vmem:[#allocation25_spill] sm:$0xff] }
 0x235   :  { %v1653_v15 = vadd.f32 %v4318_v55, %v4316_v22  ;;  %vm2251_vm11 = vcmp.ge.f32.partialorder %v6401_v33, %v3940_v61  ;;  %vm2058_vm12 = vcmp.eq.f32.partialorder %v4265_v41, inf  ;;  %vm2060_vm13 = vcmp.eq.f32.partialorder %v4265_v41, 0.0 }
 0x236   :  { %v2001_v49 = vadd.f32 %v2000_v38, %v1918_v63  ;;  %3106 = vrsqrt.f32 %v4325_v23  ;;  %v2061_v32 = vand.u32 2147483648, %v4265_v41  ;;  %v1182_v54 = vsel %vm1181_vm14, %v4240_v34, %v1180_v7  ;;  %v4357_v28 = vpop.xlane.xlu0 %675 }
 0x237   :  { %v1654_v38 = vadd.f32 %v1653_v15, %v4329_v62  ;;  %vm2252_vm15 = vcmp.ge.f32.partialorder %v6402_v1, %v3980_v39  ;;  %6403 = vst [vmem:[#allocation22_spill] sm:$0xff] %v4357_v28  ;;  %vm1183_vm0 = vcmp.eq.f32.partialorder %v4240_v34, 0.0  ;;  %vm2253_vm1 = vcmp.ge.f32.partialorder %v6405_v37, %v3953_v2  ;;  %v6422_v39 = vld [vmem:[#allocation96_spill] sm:$0xff] }
 0x238   :  { %v2002_v53 = vadd.f32 %v2001_v49, %v1919_v3  ;;  %v4353_v3 = vsel %vm1176_vm9, %v1177_v29, %v1175_v19  ;;  %v1184_v49 = vand.u32 2147483648, %v4240_v34  ;;  %3108 = vrsqrt.f32 %v4283_v20  ;;  %v6406_v34 = vld [vmem:[#allocation30_spill] sm:$0xff] }
 0x239   :  { %vm1188_vm2 = vcmp.eq.f32.partialorder %v4263_v4, inf  ;;  %vm2254_vm6 = vcmp.ge.f32.partialorder %v6406_v34, %v3972_v0  ;;  %3110 = vrsqrt.f32 %v4304_v6 }
 0x23a   :  { %v3101_v40 = vpop.eup %3100  ;;  %v2003_v9 = vrot.slane %v2002_v53, 4  ;;  %v4371_v19 = vsel %vm1183_vm0, %v1184_v49, %v1182_v54  ;;  %vm1202_vm0 = vcmp.eq.f32.partialorder %v4272_v57, inf  ;;  %v4411_v44 = vpop.xlane.xlu0 %679  ;;  %v1205_v49 = vand.u32 2147483648, %v4272_v57 }
 0x23b   :  { %v3103_v14 = vpop.eup %3102  ;;  %v2057_v63 = vmul.f32 %v3101_v40, %v4265_v41  ;;  %6408 = vst [vmem:[#allocation21_spill] sm:$0xff] %v4411_v44 }
 0x23c   :  { %v3105_v31 = vpop.eup %3104  ;;  %v1187_v40 = vmul.f32 %v3103_v14, %v4263_v4  ;;  %v2004_v7 = vadd.f32 %v2003_v9, %v2002_v53  ;;  %v1191_v53 = vand.u32 2147483648, %v4263_v4  ;;  %v1198_v9 = vand.u32 2147483648, %v4325_v23 }
 0x23d   :  { %v2059_v25 = vsel %vm2058_vm12, %v4265_v41, %v2057_v63  ;;  %v6404_v63 = vsub.f32 %v3848_v47, %v4261_v43  ;;  %v1655_v47 = vadd.f32 %v1654_v38, %v4353_v3  ;;  %v6197_v43 = vmov 0.0  }
 0x23e   :  { %v2062_v59 = vsel %vm2060_vm13, %v2061_v32, %v2059_v25  ;;  %v2005_v14 = vrot.slane %v2004_v7, 2  ;;  %v4461_v37 = vpop.xlane.xlu0 %621 }
 0x23f   :  { %v4360_v41 = vadd.f32 %v2062_v59, %v4152_v26  ;;  %v4365_v15 = vmax.f32 %v6404_v63, 0.0  ;;  %v1201_v26 = vmul.f32 %v3105_v31, %v4272_v57  ;;  %v1656_v52 = vadd.f32 %v1655_v47, %v4371_v19  ;;  %v6413_v63 = vld [vmem:[#allocation117_spill] sm:$0xff]  ;;  %6414 = vst [vmem:[#allocation32_spill] sm:$0xff] %v4461_v37 }
 0x240   :  { %v3107_v32 = vpop.eup %3106  ;;  %v2006_v31 = vadd.f32 %v2005_v14, %v2004_v7  ;;  %v6416_v14 = vld [vmem:[#allocation27_spill] sm:$0xff] }
 0x241   :  { %vm2120_vm3 = vcmp.lt.f32.partialorder %v4022_v18, %v4360_v41  ;;  %vm2121_vm4 = vcmp.lt.f32.partialorder %v4026_v10, %v4360_v41  ;;  %vm2122_vm5 = vcmp.lt.f32.partialorder %v4036_v51, %v4360_v41  ;;  %vm2123_vm9 = vcmp.lt.f32.partialorder %v4061_v11, %v4360_v41 }
 0x242   :  { %vm2440_vm12 = vmand %vm2248_vm7, %vm2120_vm3  ;;  %v4391_v18 = vmul.f32 2.0, %v4218_v8  ;;  %v1189_v10 = vsel %vm1188_vm2, %v4263_v4, %v1187_v40  ;;  %vm2124_vm7 = vcmp.lt.f32.partialorder %v6407_v21, %v4360_v41  ;;  %v1203_v42 = vsel %vm1202_vm0, %v4272_v57, %v1201_v26  ;;  %v3109_v7 = vpop.eup %3108  ;;  %v6481_v8 = vld [vmem:[#allocation84_spill] sm:$0xff] }
 0x243   :  { %vm2441_vm13 = vmand %vm2249_vm8, %vm2121_vm4  ;;  %v2504_v29 = vsel %vm2440_vm12, 1.0, %v6197_v43  ;;  %vm1190_vm8 = vcmp.eq.f32.partialorder %v4263_v4, 0.0  ;;  %v1194_v25 = vmul.f32 %v3107_v32, %v4325_v23  ;;  %vm1195_vm3 = vcmp.eq.f32.partialorder %v4325_v23, inf }
 0x244   :  { %vm2442_vm14 = vmand %vm2250_vm10, %vm2122_vm5  ;;  %v2505_v50 = vsel %vm2441_vm13, 1.0, %v6197_v43  ;;  %v4419_v60 = vsel %vm1190_vm8, %v1191_v53, %v1189_v10  ;;  %vm2125_vm10 = vcmp.lt.f32.partialorder %v4083_v30, %v4360_v41  ;;  %v2007_v33 = vrot.slane %v2006_v31, 1 }
 0x245   :  { %vm2443_vm2 = vmand %vm2251_vm11, %vm2123_vm9  ;;  %v2568_v51 = vadd.f32 %v2505_v50, %v2504_v29  ;;  %v2506_v4 = vsel %vm2442_vm14, 1.0, %v6197_v43  ;;  %v1657_v30 = vadd.f32 %v1656_v52, %v4419_v60  ;;  %vm2126_vm4 = vcmp.lt.f32.partialorder %v4092_v36, %v4360_v41  ;;  %v3111_v29 = vpop.eup %3110 }
 0x246   :  { %vm4433_vm11 = vmand %vm2252_vm15, %vm2124_vm7  ;;  %v2507_v54 = vsel %vm2443_vm2, 1.0, %v6197_v43  ;;  %v1196_v38 = vsel %vm1195_vm3, %v4325_v23, %v1194_v25  ;;  %vm1197_vm5 = vcmp.eq.f32.partialorder %v4325_v23, 0.0  ;;  %v2008_v1 = vadd.f32 %v2007_v33, %v2006_v31  ;;  %v6420_v25 = vld [vmem:[#allocation124_spill] sm:$0xff]  ;;  %v4494_v33 = vpop.xlane.xlu1 %617 }
 0x247   :  { %v2569_v11 = vadd.f32 %v2568_v51, %v2506_v4  ;;  %vm4447_vm15 = vmand %vm2253_vm1, %vm2125_vm10  ;;  %v4452_v40 = vsel %vm1197_vm5, %v1198_v9, %v1196_v38  ;;  %vm2127_vm9 = vcmp.lt.f32.partialorder %v6413_v63, %v4360_v41  ;;  %v2508_v23 = vsel %vm4433_vm11, 1.0, %v6197_v43  ;;  %v6417_v41 = vld [vmem:[#allocation94_spill] sm:$0xff]  ;;  %6421 = vst [vmem:[#allocation114_spill] sm:$0xff] %v4494_v33 }
 0x248   :  { %vm1204_vm12 = vcmp.eq.f32.partialorder %v4272_v57, 0.0  ;;  %v1658_v2 = vadd.f32 %v1657_v30, %v4452_v40  ;;  %vm2446_vm1 = vmand %vm2254_vm6, %vm2126_vm4  ;;  %v4469_v47 = vmul.f32 0.015873017, %v2008_v1  ;;  %3112 = vrsqrt.f32 %v4365_v15  ;;  %v6415_v57 = vld [vmem:[#allocation109_spill] sm:$0xff]  ;;  %v6423_v1 = vld [vmem:[#allocation106_spill] sm:$0xff] }
 0x249   :  { %v2570_v59 = vadd.f32 %v2569_v11, %v2507_v54  ;;  %v4472_v10 = vsel %vm1204_vm12, %v1205_v49, %v1203_v42  ;;  %vm2255_vm13 = vcmp.ge.f32.partialorder %v6416_v14, %v6415_v57  ;;  %v2509_v53 = vsel %vm4447_vm15, 1.0, %v6197_v43  ;;  %v4487_v42 = vpop.xlane.xlu0 %685  ;;  %v6424_v49 = vld [vmem:[#allocation20_spill] sm:$0xff]  ;;  %v6428_v14 = vld [vmem:[#allocation19_spill] sm:$0xff] }
 0x24a   :  { %v1659_v36 = vadd.f32 %v1658_v2, %v4472_v10  ;;  %vm2447_vm7 = vmand %vm2255_vm13, %vm2127_vm9  ;;  %3114 = vrsqrt.f32 %v4469_v47  ;;  %v1011_v34 = vsub.f32 %v6417_v41, %v4391_v18  ;;  %v2510_v52 = vsel %vm2446_vm1, 1.0, %v6197_v43  ;;  %6418 = vst [vmem:[#allocation25_spill] sm:$0xff] %v4487_v42  ;;  %v6430_v41 = vld [vmem:[#allocation108_spill] sm:$0xff] }
 0x24b   :  { %v2571_v26 = vadd.f32 %v2570_v59, %v2508_v23  ;;  %v1383_v32 = vmul.f32 %v4308_v56, %v4242_v45  ;;  %v2511_v51 = vsel %vm2447_vm7, 1.0, %v6197_v43  ;;  %v948_v61 = vmul.f32 2.0, %v6420_v25 }
 0x24c   :  { %v1660_v21 = vrot.slane %v1659_v36, 4  ;;  %v4492_v11 = vmax.f32 %v1011_v34, 0.0  ;;  %vm1384_vm6 = vcmp.eq.f32.partialorder %v4242_v45, inf  ;;  %v1376_v18 = vmul.f32 %v3109_v7, %v4283_v20  ;;  %v6431_v34 = vld [vmem:[#allocation26_spill] sm:$0xff] }
 0x24d   :  { %v2572_v0 = vadd.f32 %v2571_v26, %v2509_v53  ;;  %v1385_v56 = vsel %vm1384_vm6, %v4242_v45, %v1383_v32  ;;  %v1387_v9 = vand.u32 2147483648, %v4242_v45  ;;  %vm1386_vm14 = vcmp.eq.f32.partialorder %v4242_v45, 0.0  ;;  %v4510_v26 = vpop.xlane.xlu0 %683  ;;  %v6427_v45 = vld [vmem:[#allocation105_spill] sm:$0xff]  ;;  %v6433_v32 = vld [vmem:[#allocation23_spill] sm:$0xff] }
 0x24e   :  { %v1661_v31 = vadd.f32 %v1660_v21, %v1659_v36  ;;  %vm1377_vm8 = vcmp.eq.f32.partialorder %v4283_v20, inf  ;;  %v1012_v59 = vsub.f32 %v6422_v39, %v948_v61  ;;  %3116 = vrsqrt.f32 %v4492_v11  ;;  %6426 = vst [vmem:[#allocation109_spill] sm:$0xff] %v4510_v26 }
 0x24f   :  { %v2573_v50 = vadd.f32 %v2572_v0, %v2510_v52  ;;  %vm2280_vm0 = vcmp.ge.f32.partialorder %v6424_v49, %v6423_v1  ;;  %v4506_v63 = vsel %vm1386_vm14, %v1387_v9, %v1385_v56  ;;  %v1378_v7 = vsel %vm1377_vm8, %v4283_v20, %v1376_v18  ;;  %v4518_v0 = vpop.xlane.xlu1 %681  ;;  %v6435_v56 = vld [vmem:[#allocation111_spill] sm:$0xff]  ;;  %v6436_v9 = vld [vmem:[#allocation36_spill] sm:$0xff]  ;;  %v6445_v1 = vld [vmem:[#allocation17_spill] sm:$0xff] }
 0x250   :  { %v1662_v30 = vrot.slane %v1661_v31, 2  ;;  %6425 = vst [vmem:[#allocation117_spill] sm:$0xff] %v4506_v63  ;;  %v1390_v23 = vmul.f32 %v3111_v29, %v4304_v6  ;;  %vm2281_vm2 = vcmp.ge.f32.partialorder %v6428_v14, %v6427_v45  ;;  %vm1398_vm10 = vcmp.eq.f32.partialorder %v4365_v15, inf  ;;  %6429 = vst [vmem:[#allocation27_spill] sm:$0xff] %v4518_v0 }
 0x251   :  { %v4489_v4 = vadd.f32 %v2573_v50, %v2511_v51  ;;  %vm1379_vm3 = vcmp.eq.f32.partialorder %v4283_v20, 0.0  ;;  %v1380_v53 = vand.u32 2147483648, %v4283_v20  ;;  %v949_v36 = vmul.f32 2.0, %v4357_v28  ;;  %v6432_v50 = vld [vmem:[#allocation107_spill] sm:$0xff]  ;;  %v6479_v28 = vld [vmem:[#allocation16_spill] sm:$0xff] }
 0x252   :  { %v1663_v54 = vadd.f32 %v1662_v30, %v1661_v31  ;;  %v3113_v38 = vpop.eup %3112  ;;  %vm2282_vm11 = vcmp.ge.f32.partialorder %v6431_v34, %v6430_v41  ;;  %vm1391_vm4 = vcmp.eq.f32.partialorder %v4304_v6, inf  ;;  %vm2283_vm5 = vcmp.ge.f32.partialorder %v6433_v32, %v6432_v50  ;;  %v6451_v50 = vld [vmem:[#allocation34_spill] sm:$0xff] }
 0x253   :  { %6419 = vst [vmem:[#allocation30_spill] sm:$0xff] %v4489_v4  ;;  %v1397_v52 = vmul.f32 %v3113_v38, %v4365_v15  ;;  %vm2086_vm15 = vcmp.eq.f32.partialorder %v4469_v47, inf  ;;  %v2089_v20 = vand.u32 2147483648, %v4469_v47  ;;  %v4529_v51 = vsel %vm1379_vm3, %v1380_v53, %v1378_v7  ;;  %v6437_v7 = vld [vmem:[#allocation103_spill] sm:$0xff]  ;;  %v6439_v53 = vld [vmem:[#allocation110_spill] sm:$0xff] }
 0x254   :  { %v1664_v2 = vrot.slane %v1663_v54, 1  ;;  %v3115_v57 = vpop.eup %3114  ;;  %6434 = vst [vmem:[#allocation94_spill] sm:$0xff] %v4529_v51  ;;  %v4531_v31 = vmax.f32 %v1012_v59, 0.0  ;;  %vm2088_vm9 = vcmp.eq.f32.partialorder %v4469_v47, 0.0  ;;  %v1392_v18 = vsel %vm1391_vm4, %v4304_v6, %v1390_v23 }
 0x255   :  { %v2085_v29 = vmul.f32 %v3115_v57, %v4469_v47  ;;  %vm2284_vm12 = vcmp.ge.f32.partialorder %v6436_v9, %v6435_v56  ;;  %v1394_v39 = vand.u32 2147483648, %v4304_v6  ;;  %vm1393_vm1 = vcmp.eq.f32.partialorder %v4304_v6, 0.0  ;;  %v4553_v57 = vpop.xlane.xlu0 %625 }
 0x256   :  { %v1665_v21 = vadd.f32 %v1664_v2, %v1663_v54  ;;  %v1013_v2 = vsub.f32 %v6437_v7, %v949_v36  ;;  %v951_v23 = vmul.f32 2.0, %v4411_v44  ;;  %6438 = vst [vmem:[#allocation96_spill] sm:$0xff] %v4553_v57  ;;  %v1705_v36 = vadd.f32 %v4506_v63, %v4529_v51  ;;  %v6446_v44 = vld [vmem:[#allocation112_spill] sm:$0xff] }
 0x257   :  { %v2087_v61 = vsel %vm2086_vm15, %v4469_v47, %v2085_v29  ;;  %v4549_v47 = vsel %vm1398_vm10, %v4365_v15, %v1397_v52  ;;  %v6440_v29 = vld [vmem:[#allocation28_spill] sm:$0xff]  ;;  %3118 = vrsqrt.f32 %v4531_v31  ;;  %v920_v34 = vmul.f32 2.0, %v4494_v33 }
 0x258   :  { %v4536_v30 = vmul.f32 0.015625, %v1665_v21  ;;  %v2090_v54 = vsel %vm2088_vm9, %v2089_v20, %v2087_v61  ;;  %vm2285_vm13 = vcmp.ge.f32.partialorder %v6440_v29, %v6439_v53  ;;  %v4559_v21 = vsel %vm1393_vm1, %v1394_v39, %v1392_v18  ;;  %v4565_v20 = vpop.xlane.xlu1 %615  ;;  %v3117_v6 = vpop.eup %3116  ;;  %v6443_v61 = vld [vmem:[#allocation116_spill] sm:$0xff] }
 0x259   :  { %v4544_v59 = vadd.f32 %v2090_v54, %v4238_v35  ;;  %6441 = vst [vmem:[#allocation106_spill] sm:$0xff] %v4559_v21  ;;  %6442 = vst [vmem:[#allocation20_spill] sm:$0xff] %v4565_v20  ;;  %v6444_v18 = vld [vmem:[#allocation44_spill] sm:$0xff]  ;;  %v4582_v54 = vmax.f32 %v1013_v2, 0.0  ;;  %v4590_v7 = vadd.f32 %v1705_v36, %v4559_v21  ;;  %v1015_v49 = vsub.f32 %v6445_v1, %v951_v23 }
 0x25a   :  { %v1760_v35 = vsub.f32 %v4316_v22, %v4536_v30  ;;  %v1761_v52 = vsub.f32 %v4318_v55, %v4536_v30  ;;  %vm2286_vm10 = vcmp.ge.f32.partialorder %v6444_v18, %v6443_v61  ;;  %v1762_v38 = vsub.f32 %v4329_v62, %v4536_v30  ;;  %v6461_v61 = vld [vmem:[#allocation33_spill] sm:$0xff]  ;;  %v6510_v33 = vld [vmem:[#allocation64_spill] sm:$0xff] }
 0x25b   :  { %vm2152_vm7 = vcmp.lt.f32.partialorder %v4126_v48, %v4544_v59  ;;  %vm2153_vm6 = vcmp.lt.f32.partialorder %v4128_v5, %v4544_v59  ;;  %vm2154_vm14 = vcmp.lt.f32.partialorder %v4134_v46, %v4544_v59  ;;  %vm2155_vm8 = vcmp.lt.f32.partialorder %v4154_v13, %v4544_v59  ;;  %v6447_v48 = vld [vmem:[#allocation37_spill] sm:$0xff] }
 0x25c   :  { %vm2472_vm3 = vmand %vm2280_vm0, %vm2152_vm7  ;;  %v952_v5 = vmul.f32 2.0, %v4518_v0  ;;  %vm2287_vm0 = vcmp.ge.f32.partialorder %v6447_v48, %v6446_v44  ;;  %vm2156_vm15 = vcmp.lt.f32.partialorder %v4156_v16, %v4544_v59  ;;  %v1888_v14 = vmul.f32 %v1760_v35, %v1760_v35  ;;  %v4621_v35 = vpop.xlane.xlu0 %689 }
 0x25d   :  { %vm2473_vm4 = vmand %vm2281_vm2, %vm2153_vm6  ;;  %v2536_v39 = vsel %vm2472_vm3, 1.0, %v6197_v43  ;;  %v1889_v2 = vmul.f32 %v1761_v52, %v1761_v52  ;;  %v1404_v46 = vmul.f32 %v3117_v6, %v4492_v11  ;;  %vm1405_vm1 = vcmp.eq.f32.partialorder %v4492_v11, inf  ;;  %6450 = vst [vmem:[#allocation105_spill] sm:$0xff] %v4621_v35  ;;  %v4628_v52 = vpop.xlane.xlu1 %619 }
 0x25e   :  { %vm2474_vm2 = vmand %vm2282_vm11, %vm2154_vm14  ;;  %v2537_v45 = vsel %vm2473_vm4, 1.0, %v6197_v43  ;;  %v1763_v41 = vsub.f32 %v4353_v3, %v4536_v30  ;;  %vm2157_vm11 = vcmp.lt.f32.partialorder %v4179_v24, %v4544_v59  ;;  %3120 = vrsqrt.f32 %v4582_v54  ;;  %6452 = vst [vmem:[#allocation19_spill] sm:$0xff] %v4628_v52 }
 0x25f   :  { %vm4612_vm9 = vmand %vm2283_vm5, %vm2155_vm8  ;;  %v2620_v36 = vadd.f32 %v2537_v45, %v2536_v39  ;;  %v2538_v13 = vsel %vm2474_vm2, 1.0, %v6197_v43  ;;  %v1016_v32 = vsub.f32 %v6451_v50, %v952_v5  ;;  %v1764_v24 = vsub.f32 %v4371_v19, %v4536_v30 }
 0x260   :  { %vm4636_vm5 = vmand %vm2284_vm12, %vm2156_vm15  ;;  %v1890_v1 = vmul.f32 %v1762_v38, %v1762_v38  ;;  %v1957_v45 = vadd.f32 %v1889_v2, %v1888_v14  ;;  %vm2158_vm7 = vcmp.lt.f32.partialorder %v4195_v12, %v4544_v59  ;;  %v2539_v16 = vsel %vm4612_vm9, 1.0, %v6197_v43  ;;  %v6460_v12 = vld [vmem:[#allocation11_spill] sm:$0xff] }
 0x261   :  { %v2621_v39 = vadd.f32 %v2620_v36, %v2538_v13  ;;  %v4647_v5 = vmax.f32 %v1015_v49, 0.0  ;;  %v953_v56 = vmul.f32 2.0, %v4510_v26  ;;  %vm4653_vm12 = vmand %vm2285_vm13, %vm2157_vm11  ;;  %vm1400_vm6 = vcmp.eq.f32.partialorder %v4365_v15, 0.0  ;;  %v3119_v36 = vpop.eup %3118 }
 0x262   :  { %v1765_v14 = vsub.f32 %v4419_v60, %v4536_v30  ;;  %v1891_v2 = vmul.f32 %v1763_v41, %v1763_v41  ;;  %v1958_v23 = vadd.f32 %v1957_v45, %v1890_v1  ;;  %vm2159_vm14 = vcmp.lt.f32.partialorder %v4205_v58, %v4544_v59  ;;  %vm4674_vm13 = vmand %vm2286_vm10, %vm2158_vm7 }
 0x263   :  { %v2622_v38 = vadd.f32 %v2621_v39, %v2539_v16  ;;  %v2540_v49 = vsel %vm4636_vm5, 1.0, %v6197_v43  ;;  %v4665_v53 = vmax.f32 %v1016_v32, 0.0  ;;  %v954_v29 = vmul.f32 2.0, %v4487_v42  ;;  %v4680_v39 = vpop.xlane.xlu0 %623  ;;  %v4688_v16 = vpop.xlane.xlu1 %631  ;;  %vm2479_vm8 = vmand %vm2287_vm0, %vm2159_vm14 }
 0x264   :  { %v1766_v50 = vsub.f32 %v4452_v40, %v4536_v30  ;;  %v1892_v6 = vmul.f32 %v1764_v24, %v1764_v24  ;;  %v1959_v32 = vadd.f32 %v1958_v23, %v1891_v2  ;;  %6459 = vst [vmem:[#allocation108_spill] sm:$0xff] %v4680_v39  ;;  %v2541_v1 = vsel %vm4653_vm12, 1.0, %v6197_v43  ;;  %6462 = vst [vmem:[#allocation26_spill] sm:$0xff] %v4688_v16  ;;  %v6463_v23 = vld [vmem:[#allocation90_spill] sm:$0xff] }
 0x265   :  { %v2623_v13 = vadd.f32 %v2622_v38, %v2540_v49  ;;  %v984_v45 = vsub.f32 %v6460_v12, %v920_v34  ;;  %3122 = vrsqrt.f32 %v4647_v5  ;;  %v1017_v18 = vsub.f32 %v6461_v61, %v953_v56 }
 0x266   :  { %v1767_v9 = vsub.f32 %v4472_v10, %v4536_v30  ;;  %v1893_v38 = vmul.f32 %v1765_v14, %v1765_v14  ;;  %v1960_v2 = vadd.f32 %v1959_v32, %v1892_v6  ;;  %v2542_v34 = vsel %vm4674_vm13, 1.0, %v6197_v43 }
 0x267   :  { %v2624_v24 = vadd.f32 %v2623_v13, %v2541_v1  ;;  %v1411_v56 = vmul.f32 %v3119_v36, %v4531_v31  ;;  %v1406_v58 = vsel %vm1405_vm1, %v4492_v11, %v1404_v46  ;;  %3124 = vrsqrt.f32 %v4665_v53  ;;  %v4716_v61 = vpop.xlane.xlu0 %687 }
 0x268   :  { %v1894_v59 = vmul.f32 %v1766_v50, %v1766_v50  ;;  %v1961_v48 = vadd.f32 %v1960_v2, %v1893_v38  ;;  %v1018_v49 = vsub.f32 %v6463_v23, %v954_v29  ;;  %v3121_v13 = vpop.eup %3120  ;;  %v2543_v14 = vsel %vm2479_vm8, 1.0, %v6197_v43  ;;  %6465 = vst [vmem:[#allocation23_spill] sm:$0xff] %v4716_v61 }
 0x269   :  { %v2625_v44 = vadd.f32 %v2624_v24, %v2542_v34  ;;  %v4708_v6 = vmax.f32 %v984_v45, 0.0  ;;  %v922_v41 = vmul.f32 2.0, %v4461_v37  ;;  %v919_v36 = vmul.f32 2.0, %v4565_v20  ;;  %v4728_v24 = vpop.xlane.xlu1 %695 }
 0x26a   :  { %v1895_v1 = vmul.f32 %v1767_v9, %v1767_v9  ;;  %v1962_v46 = vadd.f32 %v1961_v48, %v1894_v59  ;;  %v4714_v12 = vmax.f32 %v1017_v18, 0.0  ;;  %v6466_v29 = vand.u32 2147483648, %v4365_v15  ;;  %6468 = vst [vmem:[#allocation36_spill] sm:$0xff] %v4728_v24 }
 0x26b   :  { %v4712_v32 = vadd.f32 %v2625_v44, %v2543_v14  ;;  %vm1412_vm10 = vcmp.eq.f32.partialorder %v4531_v31, inf  ;;  %vm1407_vm3 = vcmp.eq.f32.partialorder %v4492_v11, 0.0  ;;  %v921_v45 = vmul.f32 2.0, %v4628_v52  ;;  %v6471_v44 = vld [vmem:[#allocation14_spill] sm:$0xff] }
 0x26c   :  { %v4723_v50 = vsel %vm1400_vm6, %v6466_v29, %v4549_v47  ;;  %v1413_v18 = vsel %vm1412_vm10, %v4531_v31, %v1411_v56  ;;  %v6469_v9 = vand.u32 2147483648, %v4492_v11  ;;  %v1963_v2 = vadd.f32 %v1962_v46, %v1895_v1  ;;  %v6472_v56 = vld [vmem:[#allocation15_spill] sm:$0xff]  ;;  %v6506_v52 = vld [vmem:[#allocation74_spill] sm:$0xff] }
 0x26d   :  { %6464 = vst [vmem:[#allocation107_spill] sm:$0xff] %v4712_v32  ;;  %6467 = vst [vmem:[#allocation111_spill] sm:$0xff] %v4723_v50  ;;  %v4735_v34 = vmax.f32 %v1018_v49, 0.0  ;;  %v1415_v15 = vand.u32 2147483648, %v4531_v31  ;;  %v1707_v47 = vadd.f32 %v4590_v7, %v4723_v50  ;;  %3126 = vrsqrt.f32 %v4708_v6  ;;  %v6473_v7 = vld [vmem:[#allocation18_spill] sm:$0xff] }
 0x26e   :  { %v4733_v38 = vsel %vm1407_vm3, %v6469_v9, %v1406_v58  ;;  %v983_v59 = vsub.f32 %v6471_v44, %v919_v36  ;;  %vm1414_vm4 = vcmp.eq.f32.partialorder %v4531_v31, 0.0  ;;  %v1964_v48 = vrot.slane %v1963_v2, 4  ;;  %v4757_v31 = vpop.xlane.xlu0 %629  ;;  %v4763_v9 = vpop.xlane.xlu1 %637 }
 0x26f   :  { %6470 = vst [vmem:[#allocation103_spill] sm:$0xff] %v4733_v38  ;;  %v986_v23 = vsub.f32 %v6472_v56, %v922_v41  ;;  %3128 = vrsqrt.f32 %v4714_v12  ;;  %v3123_v11 = vpop.eup %3122  ;;  %v4745_v58 = vsel %vm1414_vm4, %v1415_v15, %v1413_v18  ;;  %v4748_v49 = vadd.f32 %v1707_v47, %v4733_v38  ;;  %6474 = vst [vmem:[#allocation110_spill] sm:$0xff] %v4757_v31 }
 0x270   :  { %v4751_v14 = vmul.f32 2.0, %v4314_v27  ;;  %v985_v1 = vsub.f32 %v6473_v7, %v921_v45  ;;  %v1965_v46 = vadd.f32 %v1964_v48, %v1963_v2  ;;  %vm1419_vm0 = vcmp.eq.f32.partialorder %v4582_v54, inf  ;;  %6475 = vst [vmem:[#allocation28_spill] sm:$0xff] %v4763_v9 }
 0x271   :  { %vm1421_vm15 = vcmp.eq.f32.partialorder %v4582_v54, 0.0  ;;  %3130 = vrsqrt.f32 %v4735_v34  ;;  %v3125_v41 = vpop.eup %3124  ;;  %v1422_v36 = vand.u32 2147483648, %v4582_v54  ;;  %v4761_v18 = vmax.f32 %v983_v59, 0.0 }
 0x272   :  { %v923_v45 = vmul.f32 2.0, %v4680_v39  ;;  %v1966_v2 = vrot.slane %v1965_v46, 2  ;;  %v1418_v15 = vmul.f32 %v3121_v13, %v4582_v54  ;;  %vm1433_vm2 = vcmp.eq.f32.partialorder %v4647_v5, inf }
 0x273   :  { %v4768_v47 = vmax.f32 %v986_v23, 0.0  ;;  %v1432_v44 = vmul.f32 %v3123_v11, %v4647_v5  ;;  %vm1435_vm9 = vcmp.eq.f32.partialorder %v4647_v5, 0.0  ;;  %v1436_v48 = vand.u32 2147483648, %v4647_v5  ;;  %v6476_v23 = vld [vmem:[#allocation29_spill] sm:$0xff] }
 0x274   :  { %v4773_v56 = vmax.f32 %v985_v1, 0.0  ;;  %v1967_v59 = vadd.f32 %v1966_v2, %v1965_v46  ;;  %v1439_v7 = vmul.f32 %v3125_v41, %v4665_v53  ;;  %vm1440_vm1 = vcmp.eq.f32.partialorder %v4665_v53, inf  ;;  %v4787_v41 = vpop.xlane.xlu0 %693 }
 0x275   :  { %v927_v43 = vmul.f32 2.0, %v4688_v16  ;;  %vm1442_vm11 = vcmp.eq.f32.partialorder %v4665_v53, 0.0  ;;  %3132 = vrsqrt.f32 %v4761_v18  ;;  %v924_v13 = vmul.f32 2.0, %v4553_v57  ;;  %6477 = vst [vmem:[#allocation116_spill] sm:$0xff] %v4787_v41 }
 0x276   :  { %v987_v11 = vsub.f32 %v6476_v23, %v923_v45  ;;  %v1968_v29 = vrot.slane %v1967_v59, 1  ;;  %v1420_v1 = vsel %vm1419_vm0, %v4582_v54, %v1418_v15  ;;  %3134 = vrsqrt.f32 %v4768_v47  ;;  %v4795_v23 = vpop.xlane.xlu1 %699 }
 0x277   :  { %v959_v46 = vmul.f32 2.0, %v4728_v24  ;;  %v3127_v2 = vpop.eup %3126  ;;  %v1434_v26 = vsel %vm1433_vm2, %v4647_v5, %v1432_v44  ;;  %v1443_v42 = vand.u32 2147483648, %v4665_v53  ;;  %3136 = vrsqrt.f32 %v4773_v56  ;;  %6478 = vst [vmem:[#allocation44_spill] sm:$0xff] %v4795_v23 }
 0x278   :  { %v956_v45 = vmul.f32 2.0, %v4621_v35  ;;  %v1969_v0 = vadd.f32 %v1968_v29, %v1967_v59  ;;  %v1441_v27 = vsel %vm1440_vm1, %v4665_v53, %v1439_v7  ;;  %v991_v25 = vsub.f32 %v6479_v28, %v927_v43  ;;  %v6482_v7 = vld [vmem:[#allocation71_spill] sm:$0xff] }
 0x279   :  { %v3129_v15 = vpop.eup %3128  ;;  %v926_v32 = vmul.f32 2.0, %v4757_v31  ;;  %v4804_v44 = vsel %vm1421_vm15, %v1422_v36, %v1420_v1  ;;  %v988_v16 = vsub.f32 %v6481_v8, %v924_v13  ;;  %v930_v35 = vmul.f32 2.0, %v4763_v9  ;;  %v6485_v13 = vld [vmem:[#allocation100_spill] sm:$0xff]  ;;  %v6496_v9 = vld [vmem:[#allocation70_spill] sm:$0xff] }
 0x27a   :  { %6480 = vst [vmem:[#allocation17_spill] sm:$0xff] %v4804_v44  ;;  %v4808_v57 = vmax.f32 %v987_v11, 0.0  ;;  %v4810_v29 = vmul.f32 0.015873017, %v1969_v0  ;;  %v4813_v59 = vmul.f32 %v3127_v2, %v4708_v6  ;;  %v1023_v28 = vsub.f32 %v6482_v7, %v959_v46  ;;  %v6486_v46 = vld [vmem:[#allocation98_spill] sm:$0xff]  ;;  %v4832_v7 = vpop.xlane.xlu0 %627  ;;  %v4840_v53 = vpop.xlane.xlu1 %705  ;;  %v6499_v31 = vld [vmem:[#allocation120_spill] sm:$0xff] }
 0x27b   :  { %v3131_v4 = vpop.eup %3130  ;;  %v955_v43 = vmul.f32 2.0, %v4716_v61  ;;  %v4819_v54 = vsel %vm1435_vm9, %v1436_v48, %v1434_v26  ;;  %v4823_v8 = vsel %vm1442_vm11, %v1443_v42, %v1441_v27  ;;  %v1446_v36 = vmul.f32 %v3129_v15, %v4714_v12  ;;  %6487 = vst [vmem:[#allocation34_spill] sm:$0xff] %v4832_v7  ;;  %v6488_v42 = vld [vmem:[#allocation56_spill] sm:$0xff]  ;;  %6489 = vst [vmem:[#allocation11_spill] sm:$0xff] %v4840_v53  ;;  %v6490_v48 = vld [vmem:[#allocation95_spill] sm:$0xff] }
 0x27c   :  { %6483 = vst [vmem:[#allocation112_spill] sm:$0xff] %v4819_v54  ;;  %6484 = vst [vmem:[#allocation37_spill] sm:$0xff] %v4823_v8  ;;  %v1020_v0 = vsub.f32 %v6485_v13, %v956_v45  ;;  %3138 = vrsqrt.f32 %v4810_v29  ;;  %v4829_v1 = vmax.f32 %v991_v25, 0.0  ;;  %v990_v2 = vsub.f32 %v6486_v46, %v926_v32  ;;  %v6495_v61 = vld [vmem:[#allocation40_spill] sm:$0xff]  ;;  %v6515_v44 = vld [vmem:[#allocation77_spill] sm:$0xff] }
 0x27d   :  { %vm1209_vm5 = vcmp.eq.f32.partialorder %v4761_v18, inf  ;;  %v1453_v26 = vmul.f32 %v3131_v4, %v4735_v34  ;;  %v4836_v27 = vmax.f32 %v988_v16, 0.0  ;;  %v994_v5 = vsub.f32 %v6488_v42, %v930_v35 }
 0x27e   :  { %3140 = vrsqrt.f32 %v4808_v57  ;;  %v1718_v25 = vadd.f32 %v4823_v8, %v4819_v54  ;;  %vm1447_vm7 = vcmp.eq.f32.partialorder %v4714_v12, inf  ;;  %v4845_v32 = vmax.f32 %v1023_v28, 0.0 }
 0x27f   :  { %v1019_v45 = vsub.f32 %v6490_v48, %v955_v43  ;;  %v3133_v15 = vpop.eup %3132  ;;  %vm1216_vm12 = vcmp.eq.f32.partialorder %v4708_v6, inf  ;;  %vm1454_vm6 = vcmp.eq.f32.partialorder %v4735_v34, inf  ;;  %v1457_v4 = vand.u32 2147483648, %v4735_v34 }
 0x280   :  { %v1448_v35 = vsel %vm1447_vm7, %v4714_v12, %v1446_v36  ;;  %v4852_v16 = vmax.f32 %v1020_v0, 0.0  ;;  %v3135_v13 = vpop.eup %3134  ;;  %vm1449_vm14 = vcmp.eq.f32.partialorder %v4714_v12, 0.0  ;;  %v1450_v46 = vand.u32 2147483648, %v4714_v12 }
 0x281   :  { %3142 = vrsqrt.f32 %v4829_v1  ;;  %v4857_v28 = vmax.f32 %v990_v2, 0.0  ;;  %v3137_v43 = vpop.eup %3136  ;;  %v1455_v42 = vsel %vm1454_vm6, %v4735_v34, %v1453_v26  ;;  %v4861_v48 = vmax.f32 %v994_v5, 0.0  ;;  %v4872_v2 = vpop.xlane.xlu0 %691 }
 0x282   :  { %3144 = vrsqrt.f32 %v4836_v27  ;;  %v4864_v36 = vmul.f32 2.0, %v4795_v23  ;;  %v1208_v0 = vmul.f32 %v3133_v15, %v4761_v18  ;;  %v4867_v11 = vsel %vm1449_vm14, %v1450_v46, %v1448_v35  ;;  %6492 = vst [vmem:[#allocation90_spill] sm:$0xff] %v4872_v2  ;;  %v4878_v5 = vpop.xlane.xlu1 %639 }
 0x283   :  { %6491 = vst [vmem:[#allocation33_spill] sm:$0xff] %v4867_v11  ;;  %3146 = vrsqrt.f32 %v4845_v32  ;;  %v4870_v12 = vmax.f32 %v1019_v45, 0.0  ;;  %vm1456_vm13 = vcmp.eq.f32.partialorder %v4735_v34, 0.0  ;;  %vm1223_vm8 = vcmp.eq.f32.partialorder %v4773_v56, inf  ;;  %6493 = vst [vmem:[#allocation14_spill] sm:$0xff] %v4878_v5  ;;  %v6494_v45 = vld [vmem:[#allocation118_spill] sm:$0xff] }
 0x284   :  { %v1226_v26 = vand.u32 2147483648, %v4773_v56  ;;  %3148 = vrsqrt.f32 %v4852_v16  ;;  %v1229_v15 = vmul.f32 %v3135_v13, %v4768_v47  ;;  %v4881_v35 = vsel %vm1456_vm13, %v1457_v4, %v1455_v42  ;;  %v6497_v13 = vld [vmem:[#allocation113_spill] sm:$0xff]  ;;  %v6498_v42 = vld [vmem:[#allocation31_spill] sm:$0xff] }
 0x285   :  { %v1222_v46 = vmul.f32 %v3137_v43, %v4773_v56  ;;  %3150 = vrsqrt.f32 %v4857_v28  ;;  %vm2256_vm10 = vcmp.ge.f32.partialorder %v6495_v61, %v6494_v45  ;;  %v4888_v34 = vadd.f32 %v1718_v25, %v4867_v11  ;;  %v6500_v11 = vld [vmem:[#allocation49_spill] sm:$0xff]  ;;  %v4923_v38 = vpop.xlane.xlu0 %633 }
 0x286   :  { %3152 = vrsqrt.f32 %v4861_v48  ;;  %v4894_v23 = vmul.f32 2.0, %v4840_v53  ;;  %v3139_v4 = vpop.eup %3138  ;;  %vm2257_vm3 = vcmp.ge.f32.partialorder %v6498_v42, %v6497_v13  ;;  %v4900_v43 = vmul.f32 2.0, %v4878_v5  ;;  %v6501_v5 = vld [vmem:[#allocation57_spill] sm:$0xff]  ;;  %6503 = vst [vmem:[#allocation15_spill] sm:$0xff] %v4923_v38  ;;  %v4936_v37 = vpop.xlane.xlu1 %645 }
 0x287   :  { %3154 = vrsqrt.f32 %v4870_v12  ;;  %v1210_v25 = vsel %vm1209_vm5, %v4761_v18, %v1208_v0  ;;  %v925_v39 = vmul.f32 2.0, %v4832_v7  ;;  %vm2258_vm4 = vcmp.ge.f32.partialorder %v6500_v11, %v6499_v31  ;;  %v6502_v7 = vld [vmem:[#allocation93_spill] sm:$0xff]  ;;  %6507 = vst [vmem:[#allocation18_spill] sm:$0xff] %v4936_v37 }
 0x288   :  { %v3141_v24 = vpop.eup %3140  ;;  %v2064_v53 = vmul.f32 %v3139_v4, %v4810_v29  ;;  %vm2065_vm0 = vcmp.eq.f32.partialorder %v4810_v29, inf  ;;  %vm2067_vm15 = vcmp.eq.f32.partialorder %v4810_v29, 0.0  ;;  %v2068_v8 = vand.u32 2147483648, %v4810_v29 }
 0x289   :  { %vm2259_vm2 = vcmp.ge.f32.partialorder %v6501_v5, %v4176_v17  ;;  %vm1211_vm9 = vcmp.eq.f32.partialorder %v4761_v18, 0.0  ;;  %v1217_v0 = vsel %vm1216_vm12, %v4708_v6, %v4813_v59  ;;  %v1224_v4 = vsel %vm1223_vm8, %v4773_v56, %v1222_v46  ;;  %v6505_v59 = vld [vmem:[#allocation125_spill] sm:$0xff] }
 0x28a   :  { %v989_v54 = vsub.f32 %v6502_v7, %v925_v39  ;;  %v2066_v50 = vsel %vm2065_vm0, %v4810_v29, %v2064_v53  ;;  %v6504_v21 = vand.u32 2147483648, %v4761_v18  ;;  %vm1218_vm1 = vcmp.eq.f32.partialorder %v4708_v6, 0.0  ;;  %v5008_v13 = vpop.xlane.xlu1 %709 }
 0x28b   :  { %vm1225_vm11 = vcmp.eq.f32.partialorder %v4773_v56, 0.0  ;;  %v4932_v51 = vpop.eup %3142  ;;  %vm2260_vm5 = vcmp.ge.f32.partialorder %v6506_v52, %v6505_v59  ;;  %v2069_v46 = vsel %vm2067_vm15, %v2068_v8, %v2066_v50  ;;  %vm1230_vm7 = vcmp.eq.f32.partialorder %v4768_v47, inf  ;;  %6516 = vst [vmem:[#allocation29_spill] sm:$0xff] %v5008_v13 }
 0x28c   :  { %v4928_v63 = vsel %vm1211_vm9, %v6504_v21, %v1210_v25  ;;  %v1236_v39 = vmul.f32 %v3141_v24, %v4808_v57  ;;  %v4940_v29 = vmax.f32 %v989_v54, 0.0  ;;  %v3145_v21 = vpop.eup %3144  ;;  %v4943_v18 = vadd.f32 %v2069_v46, %v4536_v30  ;;  %v6509_v25 = vld [vmem:[#allocation123_spill] sm:$0xff] }
 0x28d   :  { %v6508_v56 = vand.u32 2147483648, %v4708_v6  ;;  %v4949_v53 = vsel %vm1225_vm11, %v1226_v26, %v1224_v4  ;;  %v1231_v50 = vsel %vm1230_vm7, %v4768_v47, %v1229_v15  ;;  %v4952_v8 = vpop.eup %3146  ;;  %vm2261_vm12 = vcmp.ge.f32.partialorder %v6510_v33, %v6509_v25  ;;  %v6511_v26 = vld [vmem:[#allocation128_spill] sm:$0xff]  ;;  %v6512_v15 = vld [vmem:[#allocation83_spill] sm:$0xff] }
 0x28e   :  { %vm1232_vm6 = vcmp.eq.f32.partialorder %v4768_v47, 0.0  ;;  %v1233_v24 = vand.u32 2147483648, %v4768_v47  ;;  %vm1237_vm14 = vcmp.eq.f32.partialorder %v4808_v57, inf  ;;  %3156 = vrsqrt.f32 %v4940_v29  ;;  %v4960_v30 = vpop.eup %3148  ;;  %v5066_v25 = vpop.xlane.xlu1 %899 }
 0x28f   :  { %v4947_v7 = vsel %vm1218_vm1, %v6508_v56, %v1217_v0  ;;  %vm2128_vm13 = vcmp.lt.f32.partialorder %v4316_v22, %v4943_v18  ;;  %vm2129_vm8 = vcmp.lt.f32.partialorder %v4318_v55, %v4943_v18  ;;  %vm2130_vm0 = vcmp.lt.f32.partialorder %v4329_v62, %v4943_v18  ;;  %v3151_v54 = vpop.eup %3150  ;;  %v4980_v0 = vpop.xlane.xlu0 %697 }
 0x290   :  { %v1666_v6 = vadd.f32 %v4947_v7, %v4928_v63  ;;  %vm2131_vm15 = vcmp.lt.f32.partialorder %v4353_v3, %v4943_v18  ;;  %vm2262_vm9 = vcmp.ge.f32.partialorder %v6512_v15, %v6511_v26  ;;  %vm2448_vm1 = vmand %vm2256_vm10, %vm2128_vm13  ;;  %v1238_v22 = vsel %vm1237_vm14, %v4808_v57, %v1236_v39  ;;  %v4982_v4 = vpop.eup %3152 }
 0x291   :  { %vm1239_vm11 = vcmp.eq.f32.partialorder %v4808_v57, 0.0  ;;  %v1243_v55 = vmul.f32 %v3145_v21, %v4836_v27  ;;  %vm2449_vm7 = vmand %vm2257_vm3, %vm2129_vm8  ;;  %v6513_v46 = vmov 0.0   ;;  %v4990_v61 = vsel %vm1232_vm6, %v1233_v24, %v1231_v50  ;;  %v4994_v20 = vpop.eup %3154  ;;  %v6514_v21 = vld [vmem:[#allocation127_spill] sm:$0xff] }
 0x292   :  { %v2512_v56 = vsel %vm2448_vm1, 1.0, %v6513_v46  ;;  %v1240_v45 = vand.u32 2147483648, %v4808_v57  ;;  %v1667_v39 = vadd.f32 %v1666_v6, %v4949_v53  ;;  %vm2263_vm10 = vcmp.ge.f32.partialorder %v6515_v44, %v6514_v21  ;;  %vm2450_vm3 = vmand %vm2258_vm4, %vm2130_vm0  ;;  %v6525_v21 = vld [vmem:[#allocation92_spill] sm:$0xff] }
 0x293   :  { %vm2132_vm14 = vcmp.lt.f32.partialorder %v4371_v19, %v4943_v18  ;;  %v2513_v47 = vsel %vm2449_vm7, 1.0, %v6513_v46  ;;  %vm1244_vm6 = vcmp.eq.f32.partialorder %v4836_v27, inf  ;;  %v957_v42 = vmul.f32 2.0, %v4872_v2  ;;  %vm2451_vm13 = vmand %vm2259_vm2, %vm2131_vm15  ;;  %v6519_v19 = vld [vmem:[#allocation104_spill] sm:$0xff]  ;;  %v5046_v59 = vpop.xlane.xlu0 %701 }
 0x294   :  { %v2581_v62 = vadd.f32 %v2513_v47, %v2512_v56  ;;  %v5019_v31 = vsel %vm1239_vm11, %v1240_v45, %v1238_v22  ;;  %vm1246_vm4 = vcmp.eq.f32.partialorder %v4836_v27, 0.0  ;;  %v1257_v11 = vmul.f32 %v3151_v54, %v4857_v28  ;;  %vm5034_vm2 = vmand %vm2260_vm5, %vm2132_vm14  ;;  %6520 = vst [vmem:[#allocation16_spill] sm:$0xff] %v5046_v59 }
 0x295   :  { %vm2133_vm8 = vcmp.lt.f32.partialorder %v4419_v60, %v4943_v18  ;;  %v2514_v50 = vsel %vm2450_vm3, 1.0, %v6513_v46  ;;  %v1245_v3 = vsel %vm1244_vm6, %v4836_v27, %v1243_v55  ;;  %v928_v24 = vmul.f32 2.0, %v4923_v38 }
 0x296   :  { %v2582_v57 = vadd.f32 %v2581_v62, %v2514_v50  ;;  %v1247_v5 = vand.u32 2147483648, %v4836_v27  ;;  %vm1258_vm0 = vcmp.eq.f32.partialorder %v4857_v28, inf  ;;  %v1668_v60 = vadd.f32 %v1667_v39, %v4990_v61  ;;  %vm5051_vm5 = vmand %vm2261_vm12, %vm2133_vm8  ;;  %v6524_v50 = vld [vmem:[#allocation24_spill] sm:$0xff] }
 0x297   :  { %vm2134_vm15 = vcmp.lt.f32.partialorder %v4452_v40, %v4943_v18  ;;  %v2515_v6 = vsel %vm2451_vm13, 1.0, %v6513_v46  ;;  %v1021_v54 = vsub.f32 %v6519_v19, %v957_v42  ;;  %v960_v52 = vmul.f32 2.0, %v4980_v0  ;;  %v6523_v42 = vld [vmem:[#allocation12_spill] sm:$0xff]  ;;  %v5102_v22 = vpop.xlane.xlu0 %635 }
 0x298   :  { %v2583_v55 = vadd.f32 %v2582_v57, %v2515_v6  ;;  %v5057_v56 = vsel %vm1246_vm4, %v1247_v5, %v1245_v3  ;;  %v1259_v45 = vsel %vm1258_vm0, %v4857_v28, %v1257_v11  ;;  %v1669_v39 = vadd.f32 %v1668_v60, %v5019_v31  ;;  %v3157_v47 = vpop.eup %3156  ;;  %vm2454_vm12 = vmand %vm2262_vm9, %vm2134_vm15  ;;  %6526 = vst [vmem:[#allocation84_spill] sm:$0xff] %v5102_v22 }
 0x299   :  { %vm2135_vm1 = vcmp.lt.f32.partialorder %v4472_v10, %v4943_v18  ;;  %v2516_v33 = vsel %vm5034_vm2, 1.0, %v6513_v46  ;;  %v992_v62 = vsub.f32 %v6523_v42, %v928_v24  ;;  %v1024_v27 = vsub.f32 %v6524_v50, %v960_v52 }
 0x29a   :  { %v2584_v11 = vadd.f32 %v2583_v55, %v2516_v33  ;;  %v1250_v10 = vmul.f32 %v3157_v47, %v4940_v29  ;;  %vm1251_vm11 = vcmp.eq.f32.partialorder %v4940_v29, inf  ;;  %v962_v3 = vmul.f32 2.0, %v5046_v59  ;;  %vm2455_vm9 = vmand %vm2263_vm10, %vm2135_vm1 }
 0x29b   :  { %v2517_v24 = vsel %vm5051_vm5, 1.0, %v6513_v46  ;;  %vm1253_vm7 = vcmp.eq.f32.partialorder %v4940_v29, 0.0  ;;  %v1254_v17 = vand.u32 2147483648, %v4940_v29  ;;  %v5084_v40 = vmax.f32 %v1021_v54, 0.0 }
 0x29c   :  { %v2585_v18 = vadd.f32 %v2584_v11, %v2517_v24  ;;  %v1670_v26 = vadd.f32 %v1669_v39, %v5057_v56  ;;  %v1252_v15 = vsel %vm1251_vm11, %v4940_v29, %v1250_v10  ;;  %v5091_v57 = vmax.f32 %v1024_v27, 0.0  ;;  %v6531_v27 = vld [vmem:[#allocation102_spill] sm:$0xff]  ;;  %v6532_v10 = vld [vmem:[#allocation55_spill] sm:$0xff] }
 0x29d   :  { %v2518_v5 = vsel %vm2454_vm12, 1.0, %v6513_v46  ;;  %vm1260_vm14 = vcmp.eq.f32.partialorder %v4857_v28, 0.0  ;;  %v1261_v60 = vand.u32 2147483648, %v4857_v28  ;;  %v5096_v6 = vsel %vm1253_vm7, %v1254_v17, %v1252_v15  ;;  %v5109_v28 = vpop.xlane.xlu1 %707 }
 0x29e   :  { %v2586_v19 = vadd.f32 %v2585_v18, %v2518_v5  ;;  %v1671_v54 = vadd.f32 %v1670_v26, %v5096_v6  ;;  %v5099_v44 = vmax.f32 %v992_v62, 0.0  ;;  %v1026_v52 = vsub.f32 %v6525_v21, %v962_v3  ;;  %6528 = vst [vmem:[#allocation100_spill] sm:$0xff] %v5109_v28 }
 0x29f   :  { %v2519_v29 = vsel %vm2455_vm9, 1.0, %v6513_v46  ;;  %v934_v55 = vmul.f32 2.0, %v4936_v37  ;;  %v5106_v39 = vsel %vm1260_vm14, %v1261_v60, %v1259_v45  ;;  %3158 = vrsqrt.f32 %v5084_v40 }
 0x2a0   :  { %6527 = vst [vmem:[#allocation71_spill] sm:$0xff] %v5106_v39  ;;  %v5111_v47 = vadd.f32 %v2586_v19, %v2519_v29  ;;  %v1672_v33 = vadd.f32 %v1671_v54, %v5106_v39  ;;  %v965_v42 = vmul.f32 2.0, %v5109_v28  ;;  %3160 = vrsqrt.f32 %v5091_v57  ;;  %v5139_v19 = vpop.xlane.xlu0 %641 }
 0x2a1   :  { %v6530_v62 = vsub.f32 %v6496_v9, %v4864_v36  ;;  %v1460_v45 = vmul.f32 %v4994_v20, %v4870_v12  ;;  %v1028_v11 = vsub.f32 %v6531_v27, %v4894_v23  ;;  %v995_v3 = vsub.f32 %v6532_v10, %v4900_v43  ;;  %v6533_v36 = vld [vmem:[#allocation101_spill] sm:$0xff]  ;;  %v902_v20 = vpop.xlane.xlu1 %901  ;;  %6534 = vst [vmem:[#allocation56_spill] sm:$0xff] %v5139_v19 }
 0x2a2   :  { %6529 = vst [vmem:[#allocation98_spill] sm:$0xff] %v5111_v47  ;;  %v1673_v24 = vrot.slane %v1672_v33, 4  ;;  %v966_v17 = vmul.f32 2.0, %v5008_v13  ;;  %3162 = vrsqrt.f32 %v5099_v44  ;;  %v5129_v18 = vmax.f32 %v1026_v52, 0.0 }
 0x2a3   :  { %v5119_v50 = vmax.f32 %v6530_v62, 0.0  ;;  %vm1468_vm10 = vcmp.eq.f32.partialorder %v4852_v16, inf  ;;  %v998_v26 = vsub.f32 %v6533_v36, %v934_v55  ;;  %v929_v15 = vmul.f32 2.0, %v5102_v22 }
 0x2a4   :  { %v1720_v43 = vadd.f32 %v4888_v34, %v4881_v35  ;;  %v1674_v5 = vadd.f32 %v1673_v24, %v1672_v33  ;;  %v1029_v60 = vsub.f32 %v5066_v25, %v965_v42  ;;  %vm1461_vm3 = vcmp.eq.f32.partialorder %v4870_v12, inf  ;;  %v6535_v42 = vld [vmem:[#allocation13_spill] sm:$0xff] }
 0x2a5   :  { %3164 = vrsqrt.f32 %v5119_v50  ;;  %v5143_v54 = vmax.f32 %v1028_v11, 0.0  ;;  %v5145_v21 = vmax.f32 %v995_v3, 0.0  ;;  %v1462_v52 = vsel %vm1461_vm3, %v4870_v12, %v1460_v45 }
 0x2a6   :  { %v1675_v29 = vrot.slane %v1674_v5, 2  ;;  %3166 = vrsqrt.f32 %v5129_v18  ;;  %v1030_v55 = vsub.f32 %v902_v20, %v966_v17  ;;  %v1467_v34 = vmul.f32 %v4960_v30, %v4852_v16 }
 0x2a7   :  { %v1464_v25 = vand.u32 2147483648, %v4870_v12  ;;  %v5152_v33 = vmax.f32 %v998_v26, 0.0  ;;  %v993_v62 = vsub.f32 %v6535_v42, %v929_v15  ;;  %v5157_v27 = vmul.f32 %v4932_v51, %v4829_v1  ;;  %v5174_v26 = vpop.xlane.xlu0 %703 }
 0x2a8   :  { %vm1463_vm6 = vcmp.eq.f32.partialorder %v4870_v12, 0.0  ;;  %v1676_v45 = vadd.f32 %v1675_v29, %v1674_v5  ;;  %v5160_v11 = vmax.f32 %v1029_v60, 0.0  ;;  %v1488_v3 = vmul.f32 %v4952_v8, %v4845_v32  ;;  %6537 = vst [vmem:[#allocation118_spill] sm:$0xff] %v5174_v26 }
 0x2a9   :  { %v3159_v10 = vpop.eup %3158  ;;  %v5164_v30 = vsel %vm1463_vm6, %v1464_v25, %v1462_v52  ;;  %3168 = vrsqrt.f32 %v5143_v54  ;;  %v5168_v24 = vmul.f32 2.0, %v4787_v41  ;;  %v5171_v36 = vmax.f32 %v1030_v55, 0.0 }
 0x2aa   :  { %6536 = vst [vmem:[#allocation95_spill] sm:$0xff] %v5164_v30  ;;  %v3161_v17 = vpop.eup %3160  ;;  %3170 = vrsqrt.f32 %v5145_v21  ;;  %v1677_v51 = vrot.slane %v1676_v45, 1  ;;  %v932_v12 = vmul.f32 2.0, %v5139_v19  ;;  %v5179_v8 = vsel %vm1468_vm10, %v4852_v16, %v1467_v34 }
 0x2ab   :  { %v5183_v20 = vmul.f32 %v4982_v4, %v4861_v48  ;;  %3172 = vrsqrt.f32 %v5152_v33  ;;  %v5186_v15 = vmax.f32 %v993_v62, 0.0  ;;  %v5189_v60 = vadd.f32 %v1720_v43, %v5164_v30  ;;  %v6538_v43 = vld [vmem:[#allocation91_spill] sm:$0xff] }
 0x2ac   :  { %v3163_v5 = vpop.eup %3162  ;;  %v1678_v52 = vadd.f32 %v1677_v51, %v1676_v45  ;;  %3174 = vrsqrt.f32 %v5160_v11  ;;  %v5194_v55 = vmul.f32 %v3159_v10, %v5084_v40  ;;  %v1495_v34 = vmul.f32 %v3161_v17, %v5091_v57  ;;  %v6539_v4 = vld [vmem:[#allocation99_spill] sm:$0xff] }
 0x2ad   :  { %v963_v25 = vmul.f32 2.0, %v5174_v26  ;;  %3176 = vrsqrt.f32 %v5171_v36  ;;  %v996_v62 = vsub.f32 %v6538_v43, %v932_v12  ;;  %vm1489_vm13 = vcmp.eq.f32.partialorder %v4845_v32, inf }
 0x2ae   :  { %v5199_v42 = vmul.f32 0.015625, %v1678_v52  ;;  %v5205_v51 = vmul.f32 %v3163_v5, %v5099_v44  ;;  %3178 = vrsqrt.f32 %v5186_v15  ;;  %v1490_v10 = vsel %vm1489_vm13, %v4845_v32, %v1488_v3 }
 0x2af   :  { %v3165_v45 = vpop.eup %3164  ;;  %vm1491_vm4 = vcmp.eq.f32.partialorder %v4845_v32, 0.0  ;;  %vm1496_vm8 = vcmp.eq.f32.partialorder %v5091_v57, inf  ;;  %v1492_v5 = vand.u32 2147483648, %v4845_v32  ;;  %v1499_v3 = vand.u32 2147483648, %v5091_v57 }
 0x2b0   :  { %v3167_v17 = vpop.eup %3166  ;;  %v1768_v52 = vsub.f32 %v4928_v63, %v5199_v42  ;;  %v1769_v23 = vsub.f32 %v4947_v7, %v5199_v42  ;;  %v1770_v12 = vsub.f32 %v4949_v53, %v5199_v42  ;;  %v1497_v43 = vsel %vm1496_vm8, %v5091_v57, %v1495_v34 }
 0x2b1   :  { %v1027_v9 = vsub.f32 %v6539_v4, %v963_v25  ;;  %v1771_v29 = vsub.f32 %v4990_v61, %v5199_v42  ;;  %v1502_v13 = vmul.f32 %v3165_v45, %v5119_v50  ;;  %v5224_v26 = vmax.f32 %v996_v62, 0.0 }
 0x2b2   :  { %v1896_v41 = vmul.f32 %v1768_v52, %v1768_v52  ;;  %v1897_v2 = vmul.f32 %v1769_v23, %v1769_v23  ;;  %v5228_v47 = vsel %vm1491_vm4, %v1492_v5, %v1490_v10  ;;  %vm1498_vm2 = vcmp.eq.f32.partialorder %v5091_v57, 0.0 }
 0x2b3   :  { %v3169_v37 = vpop.eup %3168  ;;  %v1509_v34 = vmul.f32 %v3167_v17, %v5129_v18  ;;  %v1772_v4 = vsub.f32 %v5019_v31, %v5199_v42  ;;  %v1898_v25 = vmul.f32 %v1770_v12, %v1770_v12  ;;  %v5236_v52 = vsel %vm1498_vm2, %v1499_v3, %v1497_v43  ;;  %v5249_v12 = vpop.xlane.xlu0 %643 }
 0x2b4   :  { %v5232_v19 = vpop.eup %3170  ;;  %v1970_v23 = vadd.f32 %v1897_v2, %v1896_v41  ;;  %vm1503_vm0 = vcmp.eq.f32.partialorder %v5119_v50, inf  ;;  %vm1505_vm15 = vcmp.eq.f32.partialorder %v5119_v50, 0.0  ;;  %v1506_v32 = vand.u32 2147483648, %v5119_v50  ;;  %6540 = vst [vmem:[#allocation40_spill] sm:$0xff] %v5249_v12 }
 0x2b5   :  { %v5238_v45 = vpop.eup %3172  ;;  %v5243_v57 = vmax.f32 %v1027_v9, 0.0  ;;  %vm1265_vm5 = vcmp.eq.f32.partialorder %v4829_v1, inf  ;;  %v1773_v10 = vsub.f32 %v5057_v56, %v5199_v42  ;;  %v1899_v17 = vmul.f32 %v1771_v29, %v1771_v29 }
 0x2b6   :  { %v3175_v62 = vpop.eup %3174  ;;  %v1971_v41 = vadd.f32 %v1970_v23, %v1898_v25  ;;  %v1504_v2 = vsel %vm1503_vm0, %v5119_v50, %v1502_v13  ;;  %vm1272_vm1 = vcmp.eq.f32.partialorder %v5099_v44, inf  ;;  %vm1510_vm12 = vcmp.eq.f32.partialorder %v5129_v18, inf }
 0x2b7   :  { %v1523_v5 = vmul.f32 %v3169_v37, %v5143_v54  ;;  %v1731_v9 = vadd.f32 %v5236_v52, %v5228_v47  ;;  %3180 = vrsqrt.f32 %v5243_v57  ;;  %v3177_v43 = vpop.eup %3176  ;;  %v1774_v29 = vsub.f32 %v5096_v6, %v5199_v42 }
 0x2b8   :  { %v1900_v3 = vmul.f32 %v1772_v4, %v1772_v4  ;;  %v1972_v25 = vadd.f32 %v1971_v41, %v1899_v17  ;;  %vm1279_vm11 = vcmp.eq.f32.partialorder %v5186_v15, inf  ;;  %v1511_v13 = vsel %vm1510_vm12, %v5129_v18, %v1509_v34  ;;  %v3179_v23 = vpop.eup %3178 }
 0x2b9   :  { %3182 = vrsqrt.f32 %v5224_v26  ;;  %v5264_v37 = vsel %vm1505_vm15, %v1506_v32, %v1504_v2  ;;  %vm1512_vm7 = vcmp.eq.f32.partialorder %v5129_v18, 0.0  ;;  %v1513_v22 = vand.u32 2147483648, %v5129_v18 }
 0x2ba   :  { %v1775_v59 = vsub.f32 %v5106_v39, %v5199_v42  ;;  %v1901_v4 = vmul.f32 %v1773_v10, %v1773_v10  ;;  %v1973_v17 = vadd.f32 %v1972_v25, %v1900_v3  ;;  %vm1524_vm9 = vcmp.eq.f32.partialorder %v5143_v54, inf  ;;  %v870_v10 = vpop.xlane.xlu0 %869 }
 0x2bb   :  { %vm1538_vm14 = vcmp.eq.f32.partialorder %v5171_v36, inf  ;;  %v5272_v34 = vsel %vm1512_vm7, %v1513_v22, %v1511_v13  ;;  %v1525_v41 = vsel %vm1524_vm9, %v5143_v54, %v1523_v5  ;;  %v1732_v50 = vadd.f32 %v1731_v9, %v5264_v37 }
 0x2bc   :  { %v1530_v32 = vmul.f32 %v3175_v62, %v5160_v11  ;;  %v1902_v2 = vmul.f32 %v1774_v29, %v1774_v29  ;;  %v1974_v28 = vadd.f32 %v1973_v17, %v1901_v4  ;;  %v1527_v18 = vand.u32 2147483648, %v5143_v54 }
 0x2bd   :  { %vm1531_vm10 = vcmp.eq.f32.partialorder %v5160_v11, inf  ;;  %v1537_v3 = vmul.f32 %v3177_v43, %v5171_v36  ;;  %v1278_v25 = vmul.f32 %v3179_v23, %v5186_v15  ;;  %v1282_v22 = vand.u32 2147483648, %v5186_v15 }
 0x2be   :  { %vm1526_vm3 = vcmp.eq.f32.partialorder %v5143_v54, 0.0  ;;  %v1903_v5 = vmul.f32 %v1775_v59, %v1775_v59  ;;  %v1975_v13 = vadd.f32 %v1974_v28, %v1902_v2  ;;  %vm1533_vm6 = vcmp.eq.f32.partialorder %v5160_v11, 0.0 }
 0x2bf   :  { %v5283_v9 = vsel %vm1526_vm3, %v1527_v18, %v1525_v41  ;;  %v1733_v62 = vadd.f32 %v1732_v50, %v5272_v34  ;;  %v1532_v29 = vsel %vm1531_vm10, %v5160_v11, %v1530_v32  ;;  %v1534_v4 = vand.u32 2147483648, %v5160_v11 }
 0x2c0   :  { %v1266_v43 = vsel %vm1265_vm5, %v4829_v1, %v5157_v27  ;;  %v1976_v23 = vadd.f32 %v1975_v13, %v1903_v5  ;;  %vm1517_vm13 = vcmp.eq.f32.partialorder %v5243_v57, inf  ;;  %v1273_v59 = vsel %vm1272_vm1, %v5099_v44, %v5205_v51  ;;  %v886_v51 = vpop.xlane.xlu0 %885  ;;  %v6542_v13 = vld [vmem:[#allocation97_spill] sm:$0xff] }
 0x2c1   :  { %v933_v28 = vmul.f32 2.0, %v5249_v12  ;;  %v3181_v54 = vpop.eup %3180  ;;  %vm1519_vm4 = vcmp.eq.f32.partialorder %v5243_v57, 0.0  ;;  %v1520_v17 = vand.u32 2147483648, %v5243_v57  ;;  %v1280_v41 = vsel %vm1279_vm11, %v5186_v15, %v1278_v25 }
 0x2c2   :  { %v1014_v27 = vsub.f32 %v870_v10, %v4751_v14  ;;  %v1977_v50 = vrot.slane %v1976_v23, 4  ;;  %v1516_v32 = vmul.f32 %v3181_v54, %v5243_v57  ;;  %vm1267_vm8 = vcmp.eq.f32.partialorder %v4829_v1, 0.0 }
 0x2c3   :  { %vm1274_vm2 = vcmp.eq.f32.partialorder %v5099_v44, 0.0  ;;  %v3183_v2 = vpop.eup %3182  ;;  %v6541_v18 = vand.u32 2147483648, %v5099_v44  ;;  %vm1281_vm0 = vcmp.eq.f32.partialorder %v5186_v15, 0.0  ;;  %v997_v12 = vsub.f32 %v6542_v13, %v933_v28 }
 0x2c4   :  { %v5314_v25 = vmax.f32 %v1014_v27, 0.0  ;;  %v1978_v14 = vadd.f32 %v1977_v50, %v1976_v23  ;;  %v1518_v10 = vsel %vm1517_vm13, %v5243_v57, %v1516_v32  ;;  %v6543_v54 = vand.u32 2147483648, %v4829_v1 }
 0x2c5   :  { %v5310_v5 = vsel %vm1274_vm2, %v6541_v18, %v1273_v59  ;;  %v5323_v39 = vsel %vm1281_vm0, %v1282_v22, %v1280_v41  ;;  %v5327_v44 = vsel %vm1519_vm4, %v1520_v17, %v1518_v10  ;;  %v5329_v15 = vmax.f32 %v997_v12, 0.0 }
 0x2c6   :  { %v5321_v38 = vsel %vm1267_vm8, %v6543_v54, %v1266_v43  ;;  %3184 = vrsqrt.f32 %v5314_v25  ;;  %v1022_v23 = vsub.f32 %v886_v51, %v5168_v24  ;;  %v1979_v59 = vrot.slane %v1978_v14, 2 }
 0x2c7   :  { %vm1475_vm15 = vcmp.eq.f32.partialorder %v5084_v40, inf  ;;  %v1539_v1 = vsel %vm1538_vm14, %v5171_v36, %v1537_v3  ;;  %v1734_v22 = vadd.f32 %v1733_v62, %v5327_v44  ;;  %v1679_v57 = vadd.f32 %v5310_v5, %v5321_v38 }
 0x2c8   :  { %vm1540_vm5 = vcmp.eq.f32.partialorder %v5171_v36, 0.0  ;;  %vm1286_vm1 = vcmp.eq.f32.partialorder %v4861_v48, inf  ;;  %v1292_v12 = vmul.f32 %v5232_v19, %v5145_v21  ;;  %3186 = vrsqrt.f32 %v5329_v15 }
 0x2c9   :  { %v1980_v24 = vadd.f32 %v1979_v59, %v1978_v14  ;;  %v1735_v43 = vadd.f32 %v1734_v22, %v5283_v9  ;;  %v1287_v3 = vsel %vm1286_vm1, %v4861_v48, %v5183_v20  ;;  %v1680_v62 = vadd.f32 %v1679_v57, %v5323_v39 }
 0x2ca   :  { %v5351_v28 = vsel %vm1533_vm6, %v1534_v4, %v1532_v29  ;;  %v1289_v17 = vand.u32 2147483648, %v4861_v48  ;;  %v1299_v41 = vmul.f32 %v3183_v2, %v5224_v26  ;;  %v5355_v27 = vmax.f32 %v1022_v23, 0.0 }
 0x2cb   :  { %v1981_v19 = vrot.slane %v1980_v24, 1  ;;  %v1736_v50 = vadd.f32 %v1735_v43, %v5351_v28  ;;  %vm1288_vm12 = vcmp.eq.f32.partialorder %v4861_v48, 0.0  ;;  %vm1293_vm11 = vcmp.eq.f32.partialorder %v5145_v21, inf }
 0x2cc   :  { %v6544_v20 = vand.u32 2147483648, %v5171_v36  ;;  %v5366_v29 = vsel %vm1288_vm12, %v1289_v17, %v1287_v3  ;;  %v1294_v4 = vsel %vm1293_vm11, %v5145_v21, %v1292_v12  ;;  %3188 = vrsqrt.f32 %v5355_v27 }
 0x2cd   :  { %v1982_v32 = vadd.f32 %v1981_v19, %v1980_v24  ;;  %vm1300_vm7 = vcmp.eq.f32.partialorder %v5224_v26, inf  ;;  %v1681_v48 = vadd.f32 %v1680_v62, %v5366_v29  ;;  %v1478_v2 = vand.u32 2147483648, %v5084_v40 }
 0x2ce   :  { %v5364_v11 = vsel %vm1540_vm5, %v6544_v20, %v1539_v1  ;;  %v1296_v18 = vand.u32 2147483648, %v5145_v21  ;;  %v1301_v36 = vsel %vm1300_vm7, %v5224_v26, %v1299_v41  ;;  %v1313_v13 = vmul.f32 %v5238_v45, %v5152_v33 }
 0x2cf   :  { %6545 = vst [vmem:[#allocation70_spill] sm:$0xff] %v5364_v11  ;;  %v1737_v51 = vadd.f32 %v1736_v50, %v5364_v11  ;;  %vm1470_vm9 = vcmp.eq.f32.partialorder %v4852_v16, 0.0  ;;  %v5379_v14 = vmul.f32 0.015873017, %v1982_v32  ;;  %vm1295_vm14 = vcmp.eq.f32.partialorder %v5145_v21, 0.0 }
 0x2d0   :  { %v1303_v54 = vand.u32 2147483648, %v5224_v26  ;;  %v3185_v23 = vpop.eup %3184  ;;  %v1476_v59 = vsel %vm1475_vm15, %v5084_v40, %v5194_v55  ;;  %v5387_v1 = vsel %vm1295_vm14, %v1296_v18, %v1294_v4  ;;  %vm1302_vm10 = vcmp.eq.f32.partialorder %v5224_v26, 0.0  ;;  %v6546_v55 = vld [vmem:[#allocation17_spill] sm:$0xff] }
 0x2d1   :  { %v1738_v10 = vrot.slane %v1737_v51, 4  ;;  %v1709_v45 = vadd.f32 %v4748_v49, %v4745_v58  ;;  %3190 = vrsqrt.f32 %v5379_v14  ;;  %vm1314_vm3 = vcmp.eq.f32.partialorder %v5152_v33, inf }
 0x2d2   :  { %v5393_v22 = vsel %vm1302_vm10, %v1303_v54, %v1301_v36  ;;  %v1682_v21 = vadd.f32 %v1681_v48, %v5387_v1  ;;  %v3187_v57 = vpop.eup %3186  ;;  %v1315_v24 = vsel %vm1314_vm3, %v5152_v33, %v1313_v13  ;;  %v1425_v3 = vmul.f32 %v3185_v23, %v5314_v25 }
 0x2d3   :  { %v1739_v12 = vadd.f32 %v1738_v10, %v1737_v51  ;;  %v1710_v43 = vadd.f32 %v1709_v45, %v6546_v55  ;;  %v1306_v26 = vmul.f32 %v3187_v57, %v5329_v15  ;;  %vm1426_vm6 = vcmp.eq.f32.partialorder %v5314_v25, inf }
 0x2d4   :  { %vm1428_vm13 = vcmp.eq.f32.partialorder %v5314_v25, 0.0  ;;  %v1429_v49 = vand.u32 2147483648, %v5314_v25  ;;  %vm1307_vm4 = vcmp.eq.f32.partialorder %v5329_v15, inf  ;;  %v1310_v17 = vand.u32 2147483648, %v5329_v15 }
 0x2d5   :  { %v1740_v62 = vrot.slane %v1739_v12, 2  ;;  %v1427_v41 = vsel %vm1426_vm6, %v5314_v25, %v1425_v3  ;;  %v1683_v19 = vadd.f32 %v1682_v21, %v5393_v22  ;;  %v1308_v50 = vsel %vm1307_vm4, %v5329_v15, %v1306_v26 }
 0x2d6   :  { %vm1309_vm8 = vcmp.eq.f32.partialorder %v5329_v15, 0.0  ;;  %v5410_v20 = vsel %vm1428_vm13, %v1429_v49, %v1427_v41  ;;  %v3189_v4 = vpop.eup %3188  ;;  %v1317_v51 = vand.u32 2147483648, %v5152_v33  ;;  %vm1477_vm2 = vcmp.eq.f32.partialorder %v5084_v40, 0.0  ;;  %v6551_v41 = vld [vmem:[#allocation20_spill] sm:$0xff] }
 0x2d7   :  { %v1741_v32 = vadd.f32 %v1740_v62, %v1739_v12  ;;  %v5413_v48 = vsel %vm1309_vm8, %v1310_v17, %v1308_v50  ;;  %v1711_v18 = vadd.f32 %v1710_v43, %v5410_v20  ;;  %vm1316_vm0 = vcmp.eq.f32.partialorder %v5152_v33, 0.0 }
 0x2d8   :  { %v1684_v25 = vadd.f32 %v1683_v19, %v5413_v48  ;;  %v1481_v36 = vmul.f32 %v3189_v4, %v5355_v27  ;;  %v6547_v15 = vand.u32 2147483648, %v4852_v16  ;;  %v5427_v10 = vsel %vm1477_vm2, %v1478_v2, %v1476_v59  ;;  %v6552_v19 = vld [vmem:[#allocation42_spill] sm:$0xff] }
 0x2d9   :  { %6549 = vst [vmem:[#allocation31_spill] sm:$0xff] %v5427_v10  ;;  %v1742_v54 = vrot.slane %v1741_v32, 1  ;;  %v5429_v23 = vsel %vm1316_vm0, %v1317_v51, %v1315_v24  ;;  %v1712_v45 = vrot.slane %v1711_v18, 4  ;;  %vm1482_vm15 = vcmp.eq.f32.partialorder %v5355_v27, inf }
 0x2da   :  { %v5425_v13 = vsel %vm1470_vm9, %v6547_v15, %v5179_v8  ;;  %v1685_v40 = vadd.f32 %v1684_v25, %v5429_v23  ;;  %v1483_v57 = vsel %vm1482_vm15, %v5355_v27, %v1481_v36  ;;  %v1485_v8 = vand.u32 2147483648, %v5355_v27  ;;  %v6553_v25 = vld [vmem:[#allocation114_spill] sm:$0xff]  ;;  %v6554_v36 = vld [vmem:[#allocation39_spill] sm:$0xff]  ;;  %v6555_v15 = vld [vmem:[#allocation32_spill] sm:$0xff] }
 0x2db   :  { %6548 = vst [vmem:[#allocation113_spill] sm:$0xff] %v5425_v13  ;;  %v1722_v33 = vadd.f32 %v5189_v60, %v5425_v13  ;;  %v1743_v21 = vadd.f32 %v1742_v54, %v1741_v32  ;;  %v3191_v12 = vpop.eup %3190  ;;  %vm2072_vm5 = vcmp.eq.f32.partialorder %v5379_v14, inf  ;;  %vm1484_vm1 = vcmp.eq.f32.partialorder %v5355_v27, 0.0  ;;  %v6556_v54 = vld [vmem:[#allocation45_spill] sm:$0xff] }
 0x2dc   :  { %v2071_v2 = vmul.f32 %v3191_v12, %v5379_v14  ;;  %v2075_v60 = vand.u32 2147483648, %v5379_v14  ;;  %v1686_v24 = vrot.slane %v1685_v40, 4  ;;  %v1713_v43 = vadd.f32 %v1712_v45, %v1711_v18  ;;  %v6558_v45 = vld [vmem:[#allocation47_spill] sm:$0xff] }
 0x2dd   :  { %v1723_v16 = vadd.f32 %v1722_v33, %v5427_v10  ;;  %v5440_v59 = vmul.f32 0.015625, %v1743_v21  ;;  %v5444_v3 = vsel %vm1484_vm1, %v1485_v8, %v1483_v57  ;;  %vm2074_vm12 = vcmp.eq.f32.partialorder %v5379_v14, 0.0 }
 0x2de   :  { %6550 = vst [vmem:[#allocation120_spill] sm:$0xff] %v5444_v3  ;;  %v2073_v26 = vsel %vm2072_vm5, %v5379_v14, %v2071_v2  ;;  %vm2264_vm11 = vcmp.ge.f32.partialorder %v6552_v19, %v6551_v41  ;;  %v1687_v51 = vadd.f32 %v1686_v24, %v1685_v40  ;;  %v1714_v18 = vrot.slane %v1713_v43, 2  ;;  %v6557_v40 = vld [vmem:[#allocation19_spill] sm:$0xff] }
 0x2df   :  { %v1808_v49 = vsub.f32 %v5228_v47, %v5440_v59  ;;  %v1809_v62 = vsub.f32 %v5236_v52, %v5440_v59  ;;  %v2076_v17 = vsel %vm2074_vm12, %v2075_v60, %v2073_v26  ;;  %v1810_v50 = vsub.f32 %v5264_v37, %v5440_v59 }
 0x2e0   :  { %v5455_v27 = vadd.f32 %v2076_v17, %v5199_v42  ;;  %v1724_v4 = vadd.f32 %v1723_v16, %v5444_v3  ;;  %v1811_v42 = vsub.f32 %v5272_v34, %v5440_v59  ;;  %vm2265_vm10 = vcmp.ge.f32.partialorder %v6554_v36, %v6553_v25 }
 0x2e1   :  { %v1936_v32 = vmul.f32 %v1808_v49, %v1808_v49  ;;  %v1937_v14 = vmul.f32 %v1809_v62, %v1809_v62  ;;  %vm2267_vm3 = vcmp.ge.f32.partialorder %v6556_v54, %v6555_v15  ;;  %vm2266_vm6 = vcmp.ge.f32.partialorder %v6558_v45, %v6557_v40 }
 0x2e2   :  { %vm2136_vm7 = vcmp.lt.f32.partialorder %v4928_v63, %v5455_v27  ;;  %vm2137_vm9 = vcmp.lt.f32.partialorder %v4947_v7, %v5455_v27  ;;  %vm2138_vm14 = vcmp.lt.f32.partialorder %v4949_v53, %v5455_v27  ;;  %vm2139_vm13 = vcmp.lt.f32.partialorder %v4990_v61, %v5455_v27 }
 0x2e3   :  { %vm2456_vm4 = vmand %vm2264_vm11, %vm2136_vm7  ;;  %v1812_v7 = vsub.f32 %v5327_v44, %v5440_v59  ;;  %v1938_v53 = vmul.f32 %v1810_v50, %v1810_v50  ;;  %v1725_v33 = vrot.slane %v1724_v4, 4  ;;  %v2035_v57 = vadd.f32 %v1937_v14, %v1936_v32 }
 0x2e4   :  { %vm2457_vm8 = vmand %vm2265_vm10, %vm2137_vm9  ;;  %v2520_v63 = vsel %vm2456_vm4, 1.0, %v6513_v46  ;;  %v1688_v12 = vrot.slane %v1687_v51, 2  ;;  %v1715_v16 = vadd.f32 %v1714_v18, %v1713_v43  ;;  %v1813_v8 = vsub.f32 %v5283_v9, %v5440_v59 }
 0x2e5   :  { %vm2458_vm2 = vmand %vm2266_vm6, %vm2138_vm14  ;;  %v2521_v21 = vsel %vm2457_vm8, 1.0, %v6513_v46  ;;  %v1939_v2 = vmul.f32 %v1811_v42, %v1811_v42  ;;  %v2036_v24 = vadd.f32 %v2035_v57, %v1938_v53  ;;  %v1814_v17 = vsub.f32 %v5351_v28, %v5440_v59 }
 0x2e6   :  { %vm2459_vm0 = vmand %vm2267_vm3, %vm2139_vm13  ;;  %v2594_v61 = vadd.f32 %v2521_v21, %v2520_v63  ;;  %v2522_v60 = vsel %vm2458_vm2, 1.0, %v6513_v46  ;;  %v1689_v26 = vadd.f32 %v1688_v12, %v1687_v51  ;;  %v1716_v49 = vrot.slane %v1715_v16, 1 }
 0x2e7   :  { %v1940_v41 = vmul.f32 %v1812_v7, %v1812_v7  ;;  %v1726_v19 = vadd.f32 %v1725_v33, %v1724_v4  ;;  %v2523_v50 = vsel %vm2459_vm0, 1.0, %v6513_v46  ;;  %v2037_v43 = vadd.f32 %v2036_v24, %v1939_v2  ;;  %v6560_v24 = vld [vmem:[#allocation117_spill] sm:$0xff] }
 0x2e8   :  { %v2595_v62 = vadd.f32 %v2594_v61, %v2522_v60  ;;  %v1690_v32 = vrot.slane %v1689_v26, 1  ;;  %v1717_v14 = vadd.f32 %v1716_v49, %v1715_v16  ;;  %v1815_v42 = vsub.f32 %v5364_v11, %v5440_v59  ;;  %v6559_v16 = vld [vmem:[#allocation94_spill] sm:$0xff] }
 0x2e9   :  { %v1941_v25 = vmul.f32 %v1813_v8, %v1813_v8  ;;  %v2038_v36 = vadd.f32 %v2037_v43, %v1940_v41  ;;  %v1942_v15 = vmul.f32 %v1814_v17, %v1814_v17  ;;  %v1727_v4 = vrot.slane %v1726_v19, 2  ;;  %v6561_v43 = vld [vmem:[#allocation106_spill] sm:$0xff] }
 0x2ea   :  { %v5489_v18 = vadd.f32 %v2595_v62, %v2523_v50  ;;  %v1691_v51 = vadd.f32 %v1690_v32, %v1689_v26  ;;  %v5495_v45 = vmul.f32 0.015625, %v1717_v14  ;;  %v1943_v63 = vmul.f32 %v1815_v42, %v1815_v42 }
 0x2eb   :  { %v2039_v54 = vadd.f32 %v2038_v36, %v1941_v25  ;;  %v1728_v8 = vadd.f32 %v1727_v4, %v1726_v19  ;;  %vm2140_vm7 = vcmp.lt.f32.partialorder %v5019_v31, %v5455_v27  ;;  %vm2141_vm6 = vcmp.lt.f32.partialorder %v5057_v56, %v5455_v27  ;;  %v6593_v56 = vld [vmem:[#allocation88_spill] sm:$0xff] }
 0x2ec   :  { %v5493_v40 = vmul.f32 0.015625, %v1691_v51  ;;  %v1792_v61 = vsub.f32 %v6559_v16, %v5495_v45  ;;  %v1793_v26 = vsub.f32 %v6560_v24, %v5495_v45  ;;  %v1794_v32 = vsub.f32 %v6561_v43, %v5495_v45 }
 0x2ed   :  { %v2040_v7 = vadd.f32 %v2039_v54, %v1942_v15  ;;  %v1729_v42 = vrot.slane %v1728_v8, 1  ;;  %v6562_v54 = vld [vmem:[#allocation111_spill] sm:$0xff] }
 0x2ee   :  { %v1776_v53 = vsub.f32 %v5321_v38, %v5493_v40  ;;  %v1777_v33 = vsub.f32 %v5310_v5, %v5493_v40  ;;  %v1778_v21 = vsub.f32 %v5323_v39, %v5493_v40  ;;  %v1779_v2 = vsub.f32 %v5366_v29, %v5493_v40 }
 0x2ef   :  { %v2041_v57 = vadd.f32 %v2040_v7, %v1943_v63  ;;  %v1780_v62 = vsub.f32 %v5387_v1, %v5493_v40  ;;  %v1920_v14 = vmul.f32 %v1792_v61, %v1792_v61  ;;  %v1781_v19 = vsub.f32 %v5393_v22, %v5493_v40 }
 0x2f0   :  { %v1904_v12 = vmul.f32 %v1776_v53, %v1776_v53  ;;  %v1905_v60 = vmul.f32 %v1777_v33, %v1777_v33  ;;  %v1906_v17 = vmul.f32 %v1778_v21, %v1778_v21  ;;  %v1907_v25 = vmul.f32 %v1779_v2, %v1779_v2  ;;  %v6563_v33 = vld [vmem:[#allocation103_spill] sm:$0xff] }
 0x2f1   :  { %v2042_v49 = vrot.slane %v2041_v57, 4  ;;  %v1921_v51 = vmul.f32 %v1793_v26, %v1793_v26  ;;  %v1795_v4 = vsub.f32 %v6562_v54, %v5495_v45  ;;  %v1782_v63 = vsub.f32 %v5413_v48, %v5493_v40 }
 0x2f2   :  { %v1983_v41 = vadd.f32 %v1905_v60, %v1904_v12  ;;  %v1908_v7 = vmul.f32 %v1780_v62, %v1780_v62  ;;  %v1796_v21 = vsub.f32 %v6563_v33, %v5495_v45  ;;  %v1922_v12 = vmul.f32 %v1794_v32, %v1794_v32 }
 0x2f3   :  { %v2043_v50 = vadd.f32 %v2042_v49, %v2041_v57  ;;  %v2009_v61 = vadd.f32 %v1921_v51, %v1920_v14  ;;  %v1730_v60 = vadd.f32 %v1729_v42, %v1728_v8  ;;  %v1783_v2 = vsub.f32 %v5429_v23, %v5493_v40 }
 0x2f4   :  { %v1984_v36 = vadd.f32 %v1983_v41, %v1906_v17  ;;  %v1909_v26 = vmul.f32 %v1781_v19, %v1781_v19  ;;  %v1923_v41 = vmul.f32 %v1795_v4, %v1795_v4  ;;  %v1910_v43 = vmul.f32 %v1782_v63, %v1782_v63  ;;  %v6564_v19 = vld [vmem:[#allocation112_spill] sm:$0xff] }
 0x2f5   :  { %v2044_v15 = vrot.slane %v2043_v50, 2  ;;  %v2010_v11 = vadd.f32 %v2009_v61, %v1922_v12  ;;  %v5523_v54 = vmul.f32 0.015625, %v1730_v60  ;;  %v1911_v14 = vmul.f32 %v1783_v2, %v1783_v2 }
 0x2f6   :  { %v1985_v53 = vadd.f32 %v1984_v36, %v1907_v25  ;;  %v1797_v25 = vsub.f32 %v4745_v58, %v5495_v45  ;;  %v1798_v42 = vsub.f32 %v6546_v55, %v5495_v45  ;;  %v1799_v12 = vsub.f32 %v5410_v20, %v5495_v45 }
 0x2f7   :  { %v2045_v57 = vadd.f32 %v2044_v15, %v2043_v50  ;;  %v1924_v50 = vmul.f32 %v1796_v21, %v1796_v21  ;;  %v2011_v32 = vadd.f32 %v2010_v11, %v1923_v41  ;;  %v1800_v51 = vsub.f32 %v6564_v19, %v5523_v54  ;;  %v6566_v11 = vld [vmem:[#allocation33_spill] sm:$0xff] }
 0x2f8   :  { %v1986_v49 = vadd.f32 %v1985_v53, %v1908_v7  ;;  %v6565_v7 = vld [vmem:[#allocation37_spill] sm:$0xff]  ;;  %v1926_v61 = vmul.f32 %v1798_v42, %v1798_v42  ;;  %v1927_v41 = vmul.f32 %v1799_v12, %v1799_v12 }
 0x2f9   :  { %v2046_v17 = vrot.slane %v2045_v57, 1  ;;  %v2012_v4 = vadd.f32 %v2011_v32, %v1924_v50  ;;  %v1801_v63 = vsub.f32 %v6565_v7, %v5523_v54  ;;  %v1928_v2 = vmul.f32 %v1800_v51, %v1800_v51 }
 0x2fa   :  { %v1987_v62 = vadd.f32 %v1986_v49, %v1909_v26  ;;  %v1803_v26 = vsub.f32 %v4881_v35, %v5523_v54 }
 0x2fb   :  { %v2047_v36 = vadd.f32 %v2046_v17, %v2045_v57  ;;  %v1925_v57 = vmul.f32 %v1797_v25, %v1797_v25  ;;  %v1929_v49 = vmul.f32 %v1801_v63, %v1801_v63  ;;  %v1806_v63 = vsub.f32 %v5427_v10, %v5523_v54  ;;  %v6598_v10 = vld [vmem:[#allocation28_spill] sm:$0xff] }
 0x2fc   :  { %v1988_v8 = vadd.f32 %v1987_v62, %v1910_v43  ;;  %v1802_v43 = vsub.f32 %v6566_v11, %v5523_v54  ;;  %v1931_v42 = vmul.f32 %v1803_v26, %v1803_v26 }
 0x2fd   :  { %v2055_v15 = vmul.f32 0.015873017, %v2047_v36  ;;  %v2013_v60 = vadd.f32 %v2012_v4, %v1925_v57  ;;  %v1804_v36 = vsub.f32 %v5164_v30, %v5523_v54  ;;  %v2022_v25 = vadd.f32 %v1929_v49, %v1928_v2  ;;  %v6599_v30 = vld [vmem:[#allocation72_spill] sm:$0xff] }
 0x2fe   :  { %v1989_v53 = vadd.f32 %v1988_v8, %v1911_v14  ;;  %v1930_v50 = vmul.f32 %v1802_v43, %v1802_v43  ;;  %v1805_v8 = vsub.f32 %v5425_v13, %v5523_v54  ;;  %v1807_v43 = vsub.f32 %v5444_v3, %v5523_v54  ;;  %v6597_v3 = vld [vmem:[#allocation76_spill] sm:$0xff] }
 0x2ff   :  { %3192 = vrsqrt.f32 %v2055_v15  ;;  %v2014_v62 = vadd.f32 %v2013_v60, %v1926_v61  ;;  %vm2107_vm15 = vcmp.eq.f32.partialorder %v2055_v15, inf  ;;  %v2110_v26 = vand.u32 2147483648, %v2055_v15 }
 0x300   :  { %v1990_v21 = vrot.slane %v1989_v53, 4  ;;  %v2023_v4 = vadd.f32 %v2022_v25, %v1930_v50  ;;  %v1933_v2 = vmul.f32 %v1805_v8, %v1805_v8  ;;  %vm2109_vm5 = vcmp.eq.f32.partialorder %v2055_v15, 0.0 }
 0x301   :  { %v2015_v14 = vadd.f32 %v2014_v62, %v1927_v41 }
 0x302   :  { %v1991_v17 = vadd.f32 %v1990_v21, %v1989_v53  ;;  %v1932_v53 = vmul.f32 %v1804_v36, %v1804_v36  ;;  %v2024_v12 = vadd.f32 %v2023_v4, %v1931_v42 }
 0x303   :  { %v2016_v57 = vrot.slane %v2015_v14, 4 }
 0x304   :  { %v1992_v32 = vrot.slane %v1991_v17, 2  ;;  %v2025_v49 = vadd.f32 %v2024_v12, %v1932_v53  ;;  %v6567_v53 = vld [vmem:[#allocation36_spill] sm:$0xff] }
 0x305   :  { %v2017_v61 = vadd.f32 %v2016_v57, %v2015_v14  ;;  %v1935_v14 = vmul.f32 %v1807_v43, %v1807_v43  ;;  %v6568_v12 = vld [vmem:[#allocation68_spill] sm:$0xff]  ;;  %v6576_v43 = vld [vmem:[#allocation51_spill] sm:$0xff] }
 0x306   :  { %v1993_v51 = vadd.f32 %v1992_v32, %v1991_v17  ;;  %v1934_v17 = vmul.f32 %v1806_v63, %v1806_v63  ;;  %v2026_v50 = vadd.f32 %v2025_v49, %v1933_v2  ;;  %vm2304_vm1 = vcmp.ge.f32.partialorder %v6568_v12, %v6567_v53  ;;  %v6570_v63 = vld [vmem:[#allocation108_spill] sm:$0xff] }
 0x307   :  { %v2018_v13 = vrot.slane %v2017_v61, 2 }
 0x308   :  { %v1994_v21 = vrot.slane %v1993_v51, 1  ;;  %v2027_v4 = vadd.f32 %v2026_v50, %v1934_v17  ;;  %v6580_v17 = vld [vmem:[#allocation79_spill] sm:$0xff]  ;;  %v6581_v50 = vld [vmem:[#allocation110_spill] sm:$0xff] }
 0x309   :  { %v3193_v60 = vpop.eup %3192  ;;  %v2019_v36 = vadd.f32 %v2018_v13, %v2017_v61  ;;  %v6569_v13 = vld [vmem:[#allocation66_spill] sm:$0xff] }
 0x30a   :  { %v2106_v41 = vmul.f32 %v3193_v60, %v2055_v15  ;;  %v1995_v62 = vadd.f32 %v1994_v21, %v1993_v51  ;;  %v2028_v51 = vadd.f32 %v2027_v4, %v1935_v14  ;;  %vm2305_vm9 = vcmp.ge.f32.partialorder %v6569_v13, %v4980_v0  ;;  %v6571_v21 = vld [vmem:[#allocation53_spill] sm:$0xff]  ;;  %v6572_v61 = vld [vmem:[#allocation30_spill] sm:$0xff]  ;;  %v6575_v0 = vld [vmem:[#allocation96_spill] sm:$0xff] }
 0x30b   :  { %v2020_v8 = vrot.slane %v2019_v36, 1  ;;  %vm2268_vm3 = vcmp.ge.f32.partialorder %v6571_v21, %v6570_v63  ;;  %vm2269_vm4 = vcmp.ge.f32.partialorder %v6576_v43, %v6575_v0  ;;  %v6585_v14 = vld [vmem:[#allocation34_spill] sm:$0xff]  ;;  %v6586_v4 = vld [vmem:[#allocation61_spill] sm:$0xff]  ;;  %v6589_v13 = vld [vmem:[#allocation71_spill] sm:$0xff] }
 0x30c   :  { %v2108_v25 = vsel %vm2107_vm15, %v2055_v15, %v2106_v41  ;;  %v5547_v32 = vmul.f32 0.015873017, %v1995_v62  ;;  %v2029_v15 = vrot.slane %v2028_v51, 4  ;;  %vm5568_vm13 = vmand %vm2268_vm3, %vm2140_vm7  ;;  %v6577_v41 = vld [vmem:[#allocation44_spill] sm:$0xff]  ;;  %v6578_v62 = vld [vmem:[#allocation75_spill] sm:$0xff]  ;;  %vm2143_vm7 = vcmp.lt.f32.partialorder %v6589_v13, %v5455_v27 }
 0x30d   :  { %v2111_v42 = vsel %vm2109_vm5, %v2110_v26, %v2108_v25  ;;  %vm2306_vm2 = vcmp.ge.f32.partialorder %v6578_v62, %v6577_v41  ;;  %v6579_v26 = vld [vmem:[#allocation11_spill] sm:$0xff]  ;;  %v6582_v25 = vld [vmem:[#allocation58_spill] sm:$0xff]  ;;  %v6591_v63 = vld [vmem:[#allocation65_spill] sm:$0xff] }
 0x30e   :  { %v5550_v57 = vadd.f32 %v2111_v42, %v5440_v59  ;;  %3194 = vrsqrt.f32 %v5547_v32  ;;  %v2021_v59 = vadd.f32 %v2020_v8, %v2019_v36  ;;  %vm2309_vm0 = vcmp.ge.f32.partialorder %v6580_v17, %v6579_v26  ;;  %v6583_v36 = vld [vmem:[#allocation26_spill] sm:$0xff]  ;;  %v6584_v42 = vld [vmem:[#allocation67_spill] sm:$0xff]  ;;  %v6592_v21 = vld [vmem:[#allocation100_spill] sm:$0xff] }
 0x30f   :  { %vm2271_vm15 = vcmp.ge.f32.partialorder %v6582_v25, %v6581_v50  ;;  %vm2272_vm5 = vcmp.ge.f32.partialorder %v6584_v42, %v6583_v36  ;;  %v6594_v0 = vld [vmem:[#allocation16_spill] sm:$0xff]  ;;  %v6595_v43 = vld [vmem:[#allocation73_spill] sm:$0xff]  ;;  %v6608_v25 = vld [vmem:[#allocation98_spill] sm:$0xff] }
 0x310   :  { %vm2176_vm12 = vcmp.lt.f32.partialorder %v5228_v47, %v5550_v57  ;;  %vm2177_vm11 = vcmp.lt.f32.partialorder %v5236_v52, %v5550_v57  ;;  %v5572_v31 = vmul.f32 0.015873017, %v2021_v59  ;;  %v2030_v52 = vadd.f32 %v2029_v15, %v2028_v51  ;;  %v6590_v15 = vld [vmem:[#allocation15_spill] sm:$0xff]  ;;  %v6596_v60 = vld [vmem:[#allocation84_spill] sm:$0xff]  ;;  %v6603_v41 = vld [vmem:[#allocation81_spill] sm:$0xff] }
 0x311   :  { %vm2496_vm14 = vmand %vm2304_vm1, %vm2176_vm12  ;;  %vm2178_vm8 = vcmp.lt.f32.partialorder %v5264_v37, %v5550_v57  ;;  %vm2142_vm1 = vcmp.lt.f32.partialorder %v5096_v6, %v5455_v27  ;;  %vm2270_vm12 = vcmp.ge.f32.partialorder %v6586_v4, %v6585_v14  ;;  %v2524_v51 = vsel %vm5568_vm13, 1.0, %v6513_v46  ;;  %v6619_v6 = vld [vmem:[#allocation115_spill] sm:$0xff]  ;;  %v6621_v26 = vld [vmem:[#allocation122_spill] sm:$0xff] }
 0x312   :  { %vm2497_vm10 = vmand %vm2305_vm9, %vm2177_vm11  ;;  %v2560_v2 = vsel %vm2496_vm14, 1.0, %v6513_v46  ;;  %3196 = vrsqrt.f32 %v5572_v31  ;;  %v2031_v53 = vrot.slane %v2030_v52, 2  ;;  %v2597_v59 = vadd.f32 %v5489_v18, %v2524_v51  ;;  %v6654_v37 = vld [vmem:[#allocation70_spill] sm:$0xff] }
 0x313   :  { %v2561_v49 = vsel %vm2497_vm10, 1.0, %v6513_v46  ;;  %vm5596_vm11 = vmand %vm2269_vm4, %vm2141_vm6  ;;  %vm2273_vm9 = vcmp.ge.f32.partialorder %v6591_v63, %v6590_v15  ;;  %vm2310_vm14 = vcmp.ge.f32.partialorder %v6593_v56, %v6592_v21  ;;  %vm2307_vm10 = vcmp.ge.f32.partialorder %v6595_v43, %v6594_v0  ;;  %v6614_v43 = vld [vmem:[#allocation89_spill] sm:$0xff]  ;;  %v6642_v0 = vld [vmem:[#allocation18_spill] sm:$0xff] }
 0x314   :  { %vm2498_vm3 = vmand %vm2306_vm2, %vm2178_vm8  ;;  %v2659_v47 = vadd.f32 %v2561_v49, %v2560_v2  ;;  %vm2179_vm13 = vcmp.lt.f32.partialorder %v5272_v34, %v5550_v57  ;;  %v2032_v51 = vadd.f32 %v2031_v53, %v2030_v52  ;;  %v2525_v2 = vsel %vm5596_vm11, 1.0, %v6513_v46  ;;  %v6602_v49 = vld [vmem:[#allocation14_spill] sm:$0xff]  ;;  %v6606_v53 = vld [vmem:[#allocation56_spill] sm:$0xff] }
 0x315   :  { %vm5631_vm8 = vmand %vm2270_vm12, %vm2142_vm1  ;;  %vm2079_vm2 = vcmp.eq.f32.partialorder %v5547_v32, inf  ;;  %vm2081_vm6 = vcmp.eq.f32.partialorder %v5547_v32, 0.0  ;;  %v2082_v52 = vand.u32 2147483648, %v5547_v32  ;;  %vm2180_vm12 = vcmp.lt.f32.partialorder %v5327_v44, %v5550_v57  ;;  %v6632_v56 = vld [vmem:[#allocation69_spill] sm:$0xff] }
 0x316   :  { %vm5649_vm1 = vmand %vm2271_vm15, %vm2143_vm7  ;;  %v2562_v62 = vsel %vm2498_vm3, 1.0, %v6513_v46  ;;  %v2033_v4 = vrot.slane %v2032_v51, 1  ;;  %v2598_v8 = vadd.f32 %v2597_v59, %v2525_v2  ;;  %vm2181_vm4 = vcmp.lt.f32.partialorder %v5283_v9, %v5550_v57  ;;  %v6665_v21 = vld [vmem:[#allocation41_spill] sm:$0xff] }
 0x317   :  { %vm2499_vm15 = vmand %vm2307_vm10, %vm2179_vm13  ;;  %v2660_v27 = vadd.f32 %v2659_v47, %v2562_v62  ;;  %v2588_v13 = vrot.slane %v6608_v25, 4  ;;  %v2526_v9 = vsel %vm5631_vm8, 1.0, %v6513_v46  ;;  %v2527_v34 = vsel %vm5649_vm1, 1.0, %v6513_v46  ;;  %v6615_v47 = vld [vmem:[#allocation121_spill] sm:$0xff]  ;;  %v6620_v62 = vld [vmem:[#allocation35_spill] sm:$0xff] }
 0x318   :  { %v3195_v12 = vpop.eup %3194  ;;  %v2034_v2 = vadd.f32 %v2033_v4, %v2032_v51  ;;  %vm2182_vm10 = vcmp.lt.f32.partialorder %v5351_v28, %v5550_v57  ;;  %v6616_v51 = vld [vmem:[#allocation50_spill] sm:$0xff]  ;;  %vm5693_vm8 = vmand %vm2309_vm0, %vm2181_vm4  ;;  %vm2093_vm4 = vcmp.eq.f32.partialorder %v5572_v31, inf  ;;  %v6625_v28 = vld [vmem:[#allocation119_spill] sm:$0xff]  ;;  %v2096_v63 = vand.u32 2147483648, %v5572_v31 }
 0x319   :  { %v2078_v18 = vmul.f32 %v3195_v12, %v5547_v32  ;;  %v6607_v12 = vld [vmem:[#allocation80_spill] sm:$0xff] }
 0x31a   :  { %vm2277_vm11 = vcmp.ge.f32.partialorder %v6607_v12, %v6606_v53  ;;  %v5726_v42 = vmul.f32 0.015873017, %v2034_v2  ;;  %v6639_v2 = vld [vmem:[#allocation107_spill] sm:$0xff]  ;;  %v6643_v53 = vld [vmem:[#allocation85_spill] sm:$0xff]  ;;  %v5804_v12 = vadd.f32 %v2588_v13, %v6608_v25  ;;  %v6649_v25 = vld [vmem:[#allocation106_spill] sm:$0xff] }
 0x31b   :  { %v2080_v14 = vsel %vm2079_vm2, %v5547_v32, %v2078_v18  ;;  %v6609_v32 = vld [vmem:[#allocation118_spill] sm:$0xff] }
 0x31c   :  { %v2083_v50 = vsel %vm2081_vm6, %v2082_v52, %v2080_v14  ;;  %v6610_v18 = vld [vmem:[#allocation82_spill] sm:$0xff]  ;;  %v2563_v52 = vsel %vm2499_vm15, 1.0, %v6513_v46  ;;  %v3197_v44 = vpop.eup %3196  ;;  %v2599_v14 = vadd.f32 %v2598_v8, %v2526_v9  ;;  %v6626_v8 = vld [vmem:[#allocation43_spill] sm:$0xff]  ;;  %3198 = vrsqrt.f32 %v5726_v42 }
 0x31d   :  { %vm2308_vm7 = vcmp.ge.f32.partialorder %v6610_v18, %v6609_v32  ;;  %v2115_v59 = vadd.f32 %v2083_v50, %v5493_v40  ;;  %v6613_v40 = vld [vmem:[#allocation40_spill] sm:$0xff]  ;;  %v2661_v4 = vadd.f32 %v2660_v27, %v2563_v52  ;;  %v2092_v36 = vmul.f32 %v3197_v44, %v5572_v31  ;;  %v6652_v13 = vld [vmem:[#allocation22_spill] sm:$0xff] }
 0x31e   :  { %vm5682_vm3 = vmand %vm2308_vm7, %vm2180_vm12  ;;  %v2600_v27 = vadd.f32 %v2599_v14, %v2527_v34  ;;  %v2627_v9 = vrot.slane %v6639_v2, 4  ;;  %v6640_v34 = vld [vmem:[#allocation124_spill] sm:$0xff]  ;;  %v2565_v52 = vsel %vm5693_vm8, 1.0, %v6513_v46 }
 0x31f   :  { %vm2144_vm2 = vcmp.lt.f32.partialorder %v5321_v38, %v2115_v59  ;;  %vm2145_vm1 = vcmp.lt.f32.partialorder %v5310_v5, %v2115_v59  ;;  %vm2146_vm12 = vcmp.lt.f32.partialorder %v5323_v39, %v2115_v59  ;;  %vm2147_vm13 = vcmp.lt.f32.partialorder %v5366_v29, %v2115_v59  ;;  %v6622_v38 = vld [vmem:[#allocation60_spill] sm:$0xff]  ;;  %vm5716_vm7 = vmand %vm2310_vm14, %vm2182_vm10 }
 0x320   :  { %vm2464_vm0 = vmand %vm2272_vm5, %vm2144_vm2  ;;  %vm2148_vm6 = vcmp.lt.f32.partialorder %v5387_v1, %v2115_v59  ;;  %vm2149_vm14 = vcmp.lt.f32.partialorder %v5393_v22, %v2115_v59  ;;  %vm6627_vm10 = vcmp.ge.f32.partialorder %v6597_v3, %v6596_v60  ;;  %v2094_v3 = vsel %vm2093_vm4, %v5572_v31, %v2092_v36  ;;  %v6631_v60 = vld [vmem:[#allocation126_spill] sm:$0xff]  ;;  %v6641_v22 = vld [vmem:[#allocation63_spill] sm:$0xff] }
 0x321   :  { %vm2465_vm5 = vmand %vm2273_vm9, %vm2145_vm1  ;;  %v2528_v17 = vsel %vm2464_vm0, 1.0, %v6513_v46  ;;  %vm2095_vm9 = vcmp.eq.f32.partialorder %v5572_v31, 0.0  ;;  %vm2150_vm1 = vcmp.lt.f32.partialorder %v5413_v48, %v2115_v59  ;;  %vm6628_vm0 = vcmp.ge.f32.partialorder %v6599_v30, %v6598_v10  ;;  %v6660_v36 = vld [vmem:[#allocation86_spill] sm:$0xff]  ;;  %v6668_v30 = vld [vmem:[#allocation27_spill] sm:$0xff] }
 0x322   :  { %vm2466_vm15 = vmand %vm6627_vm10, %vm2146_vm12  ;;  %v2529_v15 = vsel %vm2465_vm5, 1.0, %v6513_v46  ;;  %vm2292_vm12 = vcmp.ge.f32.partialorder %v6632_v56, %v6631_v60  ;;  %v2564_v29 = vsel %vm5682_vm3, 1.0, %v6513_v46  ;;  %vm2151_vm5 = vcmp.lt.f32.partialorder %v5429_v23, %v2115_v59  ;;  %v6650_v23 = vld [vmem:[#allocation111_spill] sm:$0xff] }
 0x323   :  { %vm5745_vm2 = vmand %vm6628_vm0, %vm2147_vm13  ;;  %v2607_v39 = vadd.f32 %v2529_v15, %v2528_v17  ;;  %vm6633_vm13 = vcmp.ge.f32.partialorder %v6603_v41, %v6602_v49  ;;  %v2530_v10 = vsel %vm2466_vm15, 1.0, %v6513_v46  ;;  %v2097_v31 = vsel %vm2095_vm9, %v2096_v63, %v2094_v3  ;;  %v6653_v59 = vld [vmem:[#allocation87_spill] sm:$0xff]  ;;  %v6658_v17 = vld [vmem:[#allocation78_spill] sm:$0xff] }
 0x324   :  { %vm5764_vm10 = vmand %vm6633_vm13, %vm2148_vm6  ;;  %v2662_v50 = vadd.f32 %v2661_v4, %v2564_v29  ;;  %v5779_v49 = vadd.f32 %v2097_v31, %v5495_v45  ;;  %v6638_v41 = vrot.slane %v6572_v61, 4  ;;  %vm6644_vm4 = vcmp.ge.f32.partialorder %v6614_v43, %v6613_v40  ;;  %v6657_v4 = vld [vmem:[#allocation129_spill] sm:$0xff] }
 0x325   :  { %vm5774_vm3 = vmand %vm2277_vm11, %vm2149_vm14  ;;  %v2608_v1 = vadd.f32 %v2607_v39, %v2530_v10  ;;  %vm2279_vm11 = vcmp.ge.f32.partialorder %v6643_v53, %v6642_v0  ;;  %v2532_v43 = vsel %vm5764_vm10, 1.0, %v6513_v46  ;;  %vm6651_vm0 = vcmp.ge.f32.partialorder %v6616_v51, %v6615_v47  ;;  %v6664_v63 = vld [vmem:[#allocation21_spill] sm:$0xff]  ;;  %v6671_v0 = vld [vmem:[#allocation46_spill] sm:$0xff] }
 0x326   :  { %v5784_v18 = vadd.f32 %v6638_v41, %v6572_v61  ;;  %vm5796_vm15 = vmand %vm6644_vm4, %vm2150_vm1  ;;  %v2531_v61 = vsel %vm5745_vm2, 1.0, %v6513_v46  ;;  %vm2160_vm9 = vcmp.lt.f32.partialorder %v6559_v16, %v5779_v49  ;;  %vm2161_vm2 = vcmp.lt.f32.partialorder %v6560_v24, %v5779_v49  ;;  %v3199_v29 = vpop.eup %3198  ;;  %v6670_v41 = vld [vmem:[#allocation25_spill] sm:$0xff]  ;;  %v6684_v39 = vld [vmem:[#allocation31_spill] sm:$0xff] }
 0x327   :  { %vm5811_vm14 = vmand %vm2279_vm11, %vm2151_vm5  ;;  %v2609_v40 = vadd.f32 %v2608_v1, %v2531_v61  ;;  %vm2162_vm8 = vcmp.lt.f32.partialorder %v6649_v25, %v5779_v49  ;;  %vm2163_vm1 = vcmp.lt.f32.partialorder %v6650_v23, %v5779_v49  ;;  %v2601_v16 = vrot.slane %v2600_v27, 4  ;;  %v6676_v25 = vld [vmem:[#allocation109_spill] sm:$0xff]  ;;  %v6677_v23 = vld [vmem:[#allocation48_spill] sm:$0xff] }
 0x328   :  { %vm2480_vm5 = vmand %vm6651_vm0, %vm2160_vm9  ;;  %vm2183_vm10 = vcmp.lt.f32.partialorder %v6654_v37, %v5550_v57  ;;  %v2663_v44 = vadd.f32 %v2662_v50, %v2565_v52  ;;  %vm6655_vm11 = vcmp.ge.f32.partialorder %v6620_v62, %v6619_v6  ;;  %v2533_v24 = vsel %vm5774_vm3, 1.0, %v6513_v46  ;;  %v6659_v62 = vld [vmem:[#allocation29_spill] sm:$0xff]  ;;  %v6669_v57 = vld [vmem:[#allocation38_spill] sm:$0xff] }
 0x329   :  { %v2610_v14 = vadd.f32 %v2609_v40, %v2532_v43  ;;  %vm2481_vm4 = vmand %vm6655_vm11, %vm2161_vm2  ;;  %vm2164_vm9 = vcmp.lt.f32.partialorder %v6563_v33, %v5779_v49  ;;  %vm6656_vm0 = vcmp.ge.f32.partialorder %v6622_v38, %v6621_v26  ;;  %v2544_v47 = vsel %vm2480_vm5, 1.0, %v6513_v46 }
 0x32a   :  { %vm2482_vm13 = vmand %vm6656_vm0, %vm2162_vm8  ;;  %v2545_v51 = vsel %vm2481_vm4, 1.0, %v6513_v46  ;;  %vm2295_vm6 = vcmp.ge.f32.partialorder %v6658_v17, %v6657_v4  ;;  %v2590_v6 = vrot.slane %v5804_v12, 2  ;;  %vm2311_vm2 = vcmp.ge.f32.partialorder %v6660_v36, %v6659_v62  ;;  %v6679_v17 = vld [vmem:[#allocation23_spill] sm:$0xff]  ;;  %v6681_v62 = vld [vmem:[#allocation113_spill] sm:$0xff] }
 0x32b   :  { %v2611_v15 = vadd.f32 %v2610_v14, %v2533_v24  ;;  %vm6661_vm3 = vcmp.ge.f32.partialorder %v6626_v8, %v6625_v28  ;;  %v2633_v38 = vadd.f32 %v2545_v51, %v2544_v47  ;;  %vm2296_vm5 = vcmp.ge.f32.partialorder %v6665_v21, %v6664_v63  ;;  %vm5866_vm11 = vmand %vm2311_vm2, %vm2183_vm10 }
 0x32c   :  { %vm5857_vm8 = vmand %vm6661_vm3, %vm2163_vm1  ;;  %v2566_v3 = vsel %vm5716_vm7, 1.0, %v6513_v46  ;;  %v2534_v28 = vsel %vm5796_vm15, 1.0, %v6513_v46  ;;  %vm2165_vm1 = vcmp.lt.f32.partialorder %v4745_v58, %v5779_v49  ;;  %v2546_v8 = vsel %vm2482_vm13, 1.0, %v6513_v46 }
 0x32d   :  { %vm2297_vm10 = vcmp.ge.f32.partialorder %v6669_v57, %v6668_v30  ;;  %v2602_v10 = vadd.f32 %v2601_v16, %v2600_v27  ;;  %v2664_v31 = vadd.f32 %v2663_v44, %v2566_v3  ;;  %v2612_v50 = vadd.f32 %v2611_v15, %v2534_v28  ;;  %vm2484_vm7 = vmand %vm2292_vm12, %vm2164_vm9  ;;  %v6683_v15 = vld [vmem:[#allocation52_spill] sm:$0xff]  ;;  %v6685_v57 = vld [vmem:[#allocation90_spill] sm:$0xff] }
 0x32e   :  { %v2634_v5 = vadd.f32 %v2633_v38, %v2546_v8  ;;  %v2535_v32 = vsel %vm5811_vm14, 1.0, %v6513_v46  ;;  %v2099_v1 = vmul.f32 %v3199_v29, %v5726_v42  ;;  %vm2100_vm15 = vcmp.eq.f32.partialorder %v5726_v42, inf }
 0x32f   :  { %v2547_v27 = vsel %vm5857_vm8, 1.0, %v6513_v46  ;;  %vm2299_vm13 = vcmp.ge.f32.partialorder %v6671_v0, %v6670_v41  ;;  %v2613_v33 = vadd.f32 %v2612_v50, %v2535_v32  ;;  %v2103_v60 = vand.u32 2147483648, %v5726_v42  ;;  %v6688_v41 = vld [vmem:[#allocation116_spill] sm:$0xff]  ;;  %v6689_v0 = vld [vmem:[#allocation59_spill] sm:$0xff] }
 0x330   :  { %vm2166_vm12 = vcmp.lt.f32.partialorder %v6546_v55, %v5779_v49  ;;  %vm6672_vm14 = vcmp.ge.f32.partialorder %v6641_v22, %v6640_v34  ;;  %v2635_v56 = vadd.f32 %v2634_v5, %v2547_v27  ;;  %v2567_v53 = vsel %vm5866_vm11, 1.0, %v6513_v46 }
 0x331   :  { %vm2485_vm4 = vmand %vm6672_vm14, %vm2165_vm1  ;;  %v2101_v45 = vsel %vm2100_vm15, %v5726_v42, %v2099_v1  ;;  %vm2102_vm9 = vcmp.eq.f32.partialorder %v5726_v42, 0.0  ;;  %v2548_v61 = vsel %vm2484_vm7, 1.0, %v6513_v46  ;;  %v2614_v52 = vrot.slane %v2613_v33, 4 }
 0x332   :  { %vm2167_vm0 = vcmp.lt.f32.partialorder %v5410_v20, %v5779_v49  ;;  %v2104_v58 = vsel %vm2102_vm9, %v2103_v60, %v2101_v45  ;;  %v2636_v55 = vadd.f32 %v2635_v56, %v2548_v61  ;;  %v2603_v48 = vrot.slane %v2602_v10, 2 }
 0x333   :  { %v2665_v34 = vadd.f32 %v2664_v31, %v2567_v53  ;;  %v5915_v22 = vadd.f32 %v2104_v58, %v5523_v54  ;;  %vm6673_vm2 = vcmp.ge.f32.partialorder %v6653_v59, %v6652_v13  ;;  %v2549_v42 = vsel %vm2485_vm4, 1.0, %v6513_v46  ;;  %vm2487_vm15 = vmand %vm2295_vm6, %vm2167_vm0  ;;  %v6687_v31 = vld [vmem:[#allocation120_spill] sm:$0xff]  ;;  %v2793_v53 = vld [vmem:[%s6040_s3] ss:$0 sm:$0xff]  ;;  %s3279_s3 = smov [#allocation7]  }
 0x334   :  { %vm5920_vm3 = vmand %vm6673_vm2, %vm2166_vm12  ;;  %v2577_v43 = vrot.slane %v5784_v18, 2  ;;  %vm2298_vm8 = vcmp.ge.f32.partialorder %v6677_v23, %v6676_v25  ;;  %v2615_v16 = vadd.f32 %v2614_v52, %v2613_v33  ;;  %v2637_v37 = vadd.f32 %v2636_v55, %v2549_v42  ;;  %s2782_s16 = sshll.u32 %s3279_s3, 4  ;;  %s2783_s16 = int_to_ptr.vmem [resolvable:$true] %s2782_s16 }
 0x335   :  { %v2628_v54 = vadd.f32 %v2627_v9, %v6639_v2  ;;  %vm2168_vm11 = vcmp.lt.f32.partialorder %v6564_v19, %v5915_v22  ;;  %vm2169_vm1 = vcmp.lt.f32.partialorder %v6565_v7, %v5915_v22  ;;  %vm2170_vm7 = vcmp.lt.f32.partialorder %v6566_v11, %v5915_v22  ;;  %v6678_v9 = vld [vmem:[#allocation95_spill] sm:$0xff]  ;;  %s3246_s17 = scalar_lea.vmem %s2783_s16, 128  ;;  %p3251_p3 = scmp.lt.s32.totalorder %s2783_s16, %s2783_s16 }
 0x336   :  { %v2591_v13 = vadd.f32 %v2590_v6, %v5804_v12  ;;  %v2616_v59 = vrot.slane %v2615_v16, 2  ;;  %vm2171_vm12 = vcmp.lt.f32.partialorder %v4881_v35, %v5915_v22  ;;  %vm2488_vm14 = vmand %vm2296_vm5, %vm2168_vm11  ;;  %v2550_v19 = vsel %vm5920_vm3, 1.0, %v6513_v46  ;;  %v6680_v6 = vld [vmem:[#allocation54_spill] sm:$0xff]  ;;  %p3247_p2 = scmp.ne.s32.totalorder %s2783_s16, %s3246_s17  ;;  %p3252_p4 = scmp.lt.s32.totalorder %s3246_s17, %s3246_s17 }
 0x337   :  { %v2604_v7 = vadd.f32 %v2603_v48, %v2602_v10  ;;  %v2666_v20 = vrot.slane %v2665_v34, 4  ;;  %vm2489_vm6 = vmand %vm2297_vm10, %vm2169_vm1  ;;  %v2552_v11 = vsel %vm2488_vm14, 1.0, %v6513_v46  ;;  %v2638_v49 = vadd.f32 %v2637_v37, %v2550_v19  ;;  %v6686_v10 = vld [vmem:[#allocation62_spill] sm:$0xff] }
 0x338   :  { %v2617_v2 = vadd.f32 %v2616_v59, %v2615_v16  ;;  %vm2172_vm4 = vcmp.lt.f32.partialorder %v6678_v9, %v5915_v22  ;;  %vm2490_vm5 = vmand %vm2298_vm8, %vm2170_vm7  ;;  %v2551_v12 = vsel %vm2487_vm15, 1.0, %v6513_v46  ;;  %v2553_v44 = vsel %vm2489_vm6, 1.0, %v6513_v46  ;;  %p3253_p5 = por %p3252_p4, %p3251_p3 }
 0x339   :  { %v2578_v14 = vadd.f32 %v2577_v43, %v5784_v18  ;;  %v2629_v24 = vrot.slane %v2628_v54, 2  ;;  %vm2491_vm10 = vmand %vm2299_vm13, %vm2171_vm12  ;;  %v2639_v47 = vadd.f32 %v2638_v49, %v2551_v12  ;;  %v2646_v51 = vadd.f32 %v2553_v44, %v2552_v11  ;;  %v6682_v18 = vld [vmem:[#allocation105_spill] sm:$0xff] }
 0x33a   :  { %v2592_v4 = vrot.slane %v2591_v13, 1  ;;  %vm2300_vm9 = vcmp.ge.f32.partialorder %v6680_v6, %v6679_v17  ;;  %vm2173_vm0 = vcmp.lt.f32.partialorder %v6681_v62, %v5915_v22  ;;  %v2554_v36 = vsel %vm2490_vm5, 1.0, %v6513_v46  ;;  %p3254_p6 = pnand %p3253_p5, %p3247_p2 }
 0x33b   :  { %vm2301_vm2 = vcmp.ge.f32.partialorder %v6683_v15, %v6682_v18  ;;  %v2605_v26 = vrot.slane %v2604_v7, 1  ;;  %vm2492_vm3 = vmand %vm2300_vm9, %vm2172_vm4  ;;  %v2640_v35 = vrot.slane %v2639_v47, 4  ;;  %v2647_v38 = vadd.f32 %v2646_v51, %v2554_v36 }
 0x33c   :  { %v2667_v63 = vadd.f32 %v2666_v20, %v2665_v34  ;;  %v2618_v21 = vrot.slane %v2617_v2, 1  ;;  %vm2174_vm13 = vcmp.lt.f32.partialorder %v6684_v39, %v5915_v22  ;;  %v2555_v3 = vsel %vm2491_vm10, 1.0, %v6513_v46  ;;  %vm2493_vm8 = vmand %vm2301_vm2, %vm2173_vm0 }
 0x33d   :  { %v2630_v28 = vadd.f32 %v2629_v24, %v2628_v54  ;;  %v2641_v8 = vadd.f32 %v2640_v35, %v2639_v47  ;;  %v2648_v29 = vadd.f32 %v2647_v38, %v2555_v3  ;;  %v2593_v30 = vadd.f32 %v2592_v4, %v2591_v13 }
 0x33e   :  { %vm2302_vm11 = vcmp.ge.f32.partialorder %v6686_v10, %v6685_v57  ;;  %vm2175_vm1 = vcmp.lt.f32.partialorder %v6687_v31, %v5915_v22  ;;  %v2556_v50 = vsel %vm2492_vm3, 1.0, %v6513_v46  ;;  %v2579_v5 = vrot.slane %v2578_v14, 1 }
 0x33f   :  { %v2606_v32 = vadd.f32 %v2605_v26, %v2604_v7  ;;  %vm2494_vm7 = vmand %vm2302_vm11, %vm2174_vm13  ;;  %v2642_v1 = vrot.slane %v2641_v8, 2  ;;  %v2649_v27 = vadd.f32 %v2648_v29, %v2556_v50  ;;  %vm2303_vm15 = vcmp.ge.f32.partialorder %v6689_v0, %v6688_v41 }
 0x340   :  { %v2619_v33 = vadd.f32 %v2618_v21, %v2617_v2  ;;  %v2557_v60 = vsel %vm2493_vm8, 1.0, %v6513_v46  ;;  %v2668_v56 = vrot.slane %v2667_v63, 2  ;;  %v2631_v45 = vrot.slane %v2630_v28, 1  ;;  %vm2495_vm12 = vmand %vm2303_vm15, %vm2175_vm1 }
 0x341   :  { %v2643_v61 = vadd.f32 %v2642_v1, %v2641_v8  ;;  %v2650_v52 = vadd.f32 %v2649_v27, %v2557_v60  ;;  %v5994_v58 = vmul.f32 %v2793_v53, %v2593_v30  ;;  %v2558_v55 = vsel %vm2494_vm7, 1.0, %v6513_v46 }
 0x342   :  { %v2580_v48 = vadd.f32 %v2579_v5, %v2578_v14  ;;  %v5997_v34 = vmul.f32 %v2793_v53, %v2606_v32  ;;  %v5999_v40 = vmul.f32 %v2793_v53, %v2619_v33  ;;  %v2559_v42 = vsel %vm2495_vm12, 1.0, %v6513_v46 }
 0x343   :  { %v2651_v22 = vadd.f32 %v2650_v52, %v2558_v55  ;;  %v2644_v43 = vrot.slane %v2643_v61, 1  ;;  %v2669_v25 = vadd.f32 %v2668_v56, %v2667_v63  ;;  %v2632_v23 = vadd.f32 %v2631_v45, %v2630_v28 }
 0x344   :  { %v2687_v37 = vmul.f32 %v5994_v58, %v5994_v58  ;;  %v2678_v54 = vmul.f32 %v2793_v53, %v2580_v48  ;;  %v2688_v13 = vmul.f32 %v5997_v34, %v5997_v34  ;;  %v2689_v20 = vmul.f32 %v5999_v40, %v5999_v40 }
 0x345   :  { %v2652_v16 = vadd.f32 %v2651_v22, %v2559_v42  ;;  %v2645_v19 = vadd.f32 %v2644_v43, %v2643_v61  ;;  %v2670_v7 = vrot.slane %v2669_v25, 1  ;;  %v2682_v11 = vmul.f32 %v2793_v53, %v2632_v23 }
 0x346   :  { %v2702_v46 = vrot.slane %v2687_v37, 7  ;;  %v2705_v2 = vrot.slane %v2688_v13, 6  ;;  %v2686_v12 = vmul.f32 %v2678_v54, %v2678_v54  ;;  %vm2703_vm14 = vcmask 1041409  }
 0x347   :  { %v2653_v59 = vrot.slane %v2652_v16, 4  ;;  %v2671_v44 = vadd.f32 %v2670_v7, %v2669_v25  ;;  %v2683_v14 = vmul.f32 %v2793_v53, %v2645_v19  ;;  %vm2706_vm6 = vcmask 1042434  }
 0x348   :  { %v2708_v24 = vrot.slane %v2689_v20, 5  ;;  %v2690_v51 = vmul.f32 %v2682_v11, %v2682_v11  ;;  %vm2709_vm4 = vcmask 1043459   ;;  %v2704_v4 = vsel %vm2703_vm14, %v2702_v46, %v2686_v12 }
 0x349   :  { %v2654_v49 = vadd.f32 %v2653_v59, %v2652_v16  ;;  %v2707_v6 = vsel %vm2706_vm6, %v2705_v2, %v2704_v4  ;;  %v2685_v62 = vmul.f32 %v2793_v53, %v2671_v44  ;;  %v2691_v36 = vmul.f32 %v2683_v14, %v2683_v14 }
 0x34a   :  { %v2710_v18 = vsel %vm2709_vm4, %v2708_v24, %v2707_v6  ;;  %vm2712_vm5 = vcmask 1044484   ;;  %v2711_v26 = vrot.slane %v2690_v51, 4  ;;  %vm2715_vm10 = vcmask 1045509  }
 0x34b   :  { %v2655_v9 = vrot.slane %v2654_v49, 2  ;;  %v2693_v63 = vmul.f32 %v2685_v62, %v2685_v62  ;;  %v2714_v21 = vrot.slane %v2691_v36, 3  ;;  %vm2718_vm9 = vcmask 1046534  }
 0x34c   :  { %v2713_v38 = vsel %vm2712_vm5, %v2711_v26, %v2710_v18  ;;  %vm2721_vm0 = vcmask 1047559  }
 0x34d   :  { %v2656_v47 = vadd.f32 %v2655_v9, %v2654_v49  ;;  %v2716_v3 = vsel %vm2715_vm10, %v2714_v21, %v2713_v38  ;;  %v2720_v8 = vrot.slane %v2693_v63, 1 }
 0x34f   :  { %v2657_v17 = vrot.slane %v2656_v47, 1 }
 0x351   :  { %v2658_v15 = vadd.f32 %v2657_v17, %v2656_v47 }
 0x353   :  { %v2684_v35 = vmul.f32 %v2793_v53, %v2658_v15 }
 0x355   :  { %v2692_v39 = vmul.f32 %v2684_v35, %v2684_v35 }
 0x357   :  { %v2717_v28 = vrot.slane %v2692_v39, 2 }
 0x359   :  { %v2719_v29 = vsel %vm2718_vm9, %v2717_v28, %v2716_v3 }
 0x35a   :  { %v2722_v30 = vsel %vm2721_vm0, %v2720_v8, %v2719_v29 }
 0x35b   :  { %2724 = vadd.xlane.f32.xlu0 %v2722_v30 }
 0x3e8   :  { %v2725_v57 = vpop.xlane.xlu0 %2724 }
 0x3e9   :  { %v2726_v10 = vmax.f32 %v2725_v57, 1e-24 }
 0x3eb   :  { %3200 = vrsqrt.f32 %v2726_v10 }
 0x3f5   :  { %v3201_v31 = vpop.eup %3200 }
 0x3f6   :  { %v2729_v50 = vrot.slane %v3201_v31, 1  ;;  %v2730_v5 = vrot.slane %v3201_v31, 2  ;;  %v2731_v32 = vrot.slane %v3201_v31, 3  ;;  %v2732_v1 = vrot.slane %v3201_v31, 4 }
 0x3f7   :  { %v2733_v27 = vrot.slane %v3201_v31, 5  ;;  %v2734_v41 = vrot.slane %v3201_v31, 6  ;;  %v2735_v0 = vrot.slane %v3201_v31, 7  ;;  %v2744_v45 = vmul.f32 %v3201_v31, %v2678_v54 }
 0x3f8   :  { %v2745_v33 = vmul.f32 %v2729_v50, %v5994_v58  ;;  %v2746_v60 = vmul.f32 %v2730_v5, %v5997_v34  ;;  %v2747_v56 = vmul.f32 %v2731_v32, %v5999_v40  ;;  %v2748_v53 = vmul.f32 %v2732_v1, %v2682_v11 }
 0x3f9   :  { %v2749_v61 = vmul.f32 %v2733_v27, %v2683_v14  ;;  %v2750_v48 = vmul.f32 %v2734_v41, %v2684_v35  ;;  %v2751_v22 = vmul.f32 %v2735_v0, %v2685_v62 }
 0x3fa   :  { %v2760_v52 = vrot.slane %v2745_v33, 7  ;;  %v2762_v55 = vrot.slane %v2746_v60, 6  ;;  %v2764_v43 = vrot.slane %v2747_v56, 5  ;;  %v2766_v23 = vrot.slane %v2748_v53, 4 }
 0x3fb   :  { %v2768_v58 = vrot.slane %v2749_v61, 3  ;;  %v2770_v40 = vrot.slane %v2750_v48, 2  ;;  %v2772_v54 = vrot.slane %v2751_v22, 1 }
 0x3fc   :  { %v2761_v42 = vsel %vm2703_vm14, %v2760_v52, %v2744_v45 }
 0x3fd   :  { %v2763_v25 = vsel %vm2706_vm6, %v2762_v55, %v2761_v42 }
 0x3fe   :  { %v2765_v16 = vsel %vm2709_vm4, %v2764_v43, %v2763_v25 }
 0x3ff   :  { %v2767_v34 = vsel %vm2712_vm5, %v2766_v23, %v2765_v16 }
 0x400   :  { %v2769_v37 = vsel %vm2715_vm10, %v2768_v58, %v2767_v34 }
 0x401   :  { %v2771_v13 = vsel %vm2718_vm9, %v2770_v40, %v2769_v37 }
 0x402   :  { %v2773_v59 = vsel %vm2721_vm0, %v2772_v54, %v2771_v13 }
 0x403   :  { %2775 = vst [vmem:[#allocation7] sm:$0xff] %v2773_v59 }
 0x404   :  { %3257 = shalt.err (!%p3254_p6)
}
 0x405   :  { %s3258_s20 = scalar_lea.hbm %s6041_s4, 128 }
 0x406   :  { %p3259_p7 = scmp.ne.s32.totalorder %s6041_s4, %s3258_s20  ;;  %p3262_p8 = scmp.lt.u32.totalorder %s3258_s20, %s6041_s4 }
 0x408   :  { %p3264_p9 = pnand %p3262_p8, %p3259_p7 }
 0x40a   :  { %3267 = shalt.err (!%p3264_p9)
}
 0x40b   :  { %2785 = dma.vmem_to_hbm [thread:$0]  %s2783_s16, 128, %s6041_s4, [#allocation4]  }
 0x40c   :  { %3272 = dma.done.wait [#allocation4], 128  }
 0x40d   :  { %3273 = vsyncadd [#allocation4], 4294967168 }
 0x40e   :  { %2789 = vsyncpa [#allocation3], 1 }
 0x40f   :  { %2790 = vsyncpa [#allocation6], 1 }
 0x410   :  { %2791 = vsyncpa [#allocation4], 1 }

</bundles_post_ra>
